<compile_context>
chip_gen: v7x
topology: tpu7x:2x2x1
jax: 0.10.0
libtpu: 0.0.40
codegen_flags: <defaults>
</compile_context>

<pallas_src>
import functools

import jax
import jax.numpy as jnp
import numpy as np
from jax import lax
from jax.experimental import pallas as pl
from jax.experimental.pallas import tpu as pltpu

NEG = -1e30

_CompilerParams = getattr(pltpu, "CompilerParams", None) or getattr(pltpu, "TPUCompilerParams")


def round_up(x, m):
    return (x + m - 1) // m * m


def _vmem_limit_bytes():
    """~3/4 of physical VMEM (96 MiB on v5e/v6e, 48 MiB on v7x); safe fallback."""
    try:
        info = pltpu.get_tpu_info()
        for name in ("vmem_capacity_bytes", "vmem_size_bytes", "vmem_bytes"):
            cap = getattr(info, name, None)
            if cap:
                return int(min(cap * 3 // 4, 100 * 1024 * 1024))
    except Exception:
        pass
    return 48 * 1024 * 1024


def _pick_batch_tile(B):
    """Batch tile: fill MXU rows (<=128) but keep >=2 grid steps when possible
    so the 'parallel' batch axis can shard across v7x's two TensorCores."""
    b8 = round_up(max(B, 1), 8)
    if b8 <= 8:
        return 8, b8
    bt = min(128, round_up((b8 + 1) // 2, 8))
    return bt, round_up(b8, bt)


# -----------------------------------------------------------------------------
# Pallas kernel: attention + GRU step + gen/copy scores + combined softmax
# (all shapes lane/sublane padded in the wrapper; padded rows/cols are zero)
# -----------------------------------------------------------------------------
def bspan_decoder_kernel(
    enc_ref,    # [BT, Tup, Hp] f32  u_enc_out (batch-major, padded)
    h_ref,      # [BT, Hp]     f32  last_hidden
    embz_ref,   # [BT, ECp]    f32  emb(z_{t-1}) at lanes [H:H+E], zeros elsewhere
    col_ref,    # [BT, Tup]    i32  copy-target column per token (unk -> V+t)
    valid_ref,  # [BT, Tup]    f32  1.0 where token not in ignore_index([0])
    we_ref,     # [Hp, 2Hp]    bf16 fused enc-side weights  [wa_e | wc1]
    wh_ref,     # [Hp, 4Hp]    bf16 fused hidden-side weights [wa_h | whh(r|z|n)]
    ba_ref,     # [1, Hp]      f32  Attn.attn bias
    v_ref,      # [1, Hp]      f32  Attn.v
    wih_ref,    # [ECp, 3Hp]   bf16 GRU W_ih^T over packed [context | emb(z)]
    bih_ref,    # [1, 3Hp]     f32
    bhh_ref,    # [1, 3Hp]     f32
    bc1_ref,    # [1, Hp]      f32  proj_copy1 bias
    wp_ref,     # [HCp, VTp]   bf16 proj W^T over packed [gru_out | context]
    bp_ref,     # [1, VTp]     f32  proj bias; NEG on columns >= V
    h_out_ref,  # [BT, Hp]     f32
    proba_ref,  # [BT, VTp]    f32
    *, Tu, V, E, H, Hp,
):
    f32, bf16 = jnp.float32, jnp.bfloat16
    enc = enc_ref[...]
    h = h_ref[...]
    BT, Tup, _ = enc.shape
    VTp = proba_ref.shape[1]
    ECp = embz_ref.shape[1]
    HCp = wp_ref.shape[0]

    t_valid = lax.broadcasted_iota(jnp.int32, (BT, Tup), 1) < Tu     # mask padded Tu rows

    # ---- fused MXU projections (bf16 operands, f32 accumulation) -----------
    enc_flat = enc.reshape(BT * Tup, Hp)                              # tile-aligned collapse
    ep = jnp.dot(enc_flat.astype(bf16), we_ref[...], preferred_element_type=f32)
    part_e = ep[:, :Hp].reshape(BT, Tup, Hp)                          # Attn.attn (enc half)
    uc_pre = ep[:, Hp:].reshape(BT, Tup, Hp)                          # proj_copy1 pre-act

    hh = jnp.dot(h.astype(bf16), wh_ref[...], preferred_element_type=f32)
    part_h = hh[:, :Hp]                                               # Attn.attn (hidden half)
    gh = hh[:, Hp:] + bhh_ref[...]                                    # GRU W_hh @ h  (r|z|n)

    # ---- Attn.forward(last_hidden, u_enc_out) ------------------------------
    energy = jnp.tanh(part_h[:, None, :] + part_e + ba_ref[...])
    att = jnp.sum(energy * v_ref[...], axis=-1)                       # [BT, Tup]
    att = jnp.where(t_valid, att, NEG)
    att = jnp.exp(att - jnp.max(att, axis=-1, keepdims=True))
    alpha = att * pl.reciprocal(jnp.sum(att, axis=-1, keepdims=True), approx=True)
    context = jnp.sum(alpha[:, :, None] * enc, axis=1)                # [BT,Hp], cols>=H zero

    # ---- GRU cell: input packed as [context | emb(z)] in one lane block ----
    ctx_ec = context
    if ECp > Hp:   # static; only when E + H > 128
        ctx_ec = jnp.concatenate([context, jnp.zeros((BT, ECp - Hp), f32)], axis=-1)
    gru_in = embz_ref[...] + ctx_ec                                   # emb(z) lives at [H:H+E]
    gi = jnp.dot(gru_in.astype(bf16), wih_ref[...], preferred_element_type=f32) + bih_ref[...]
    r = jax.nn.sigmoid(gi[:, :Hp] + gh[:, :Hp])
    zg = jax.nn.sigmoid(gi[:, Hp:2 * Hp] + gh[:, Hp:2 * Hp])
    n = jnp.tanh(gi[:, 2 * Hp:3 * Hp] + r * gh[:, 2 * Hp:3 * Hp])
    h_new = (1.0 - zg) * n + zg * h                                   # [BT,Hp], cols>=H zero

    # ---- gen_score = proj([gru_out | context]) with a packed 128-lane K ----
    h_hc = h_new
    if HCp > Hp:   # static; only when 2H > 128
        h_hc = jnp.concatenate([h_new, jnp.zeros((BT, HCp - Hp), f32)], axis=-1)
    # move context to lanes [H:2H] via an exact one-hot MXU matmul (tiny)
    ri = lax.broadcasted_iota(jnp.int32, (Hp, HCp), 0)
    ci = lax.broadcasted_iota(jnp.int32, (Hp, HCp), 1)
    shift = jnp.where((ci == ri + H) & (ri < H), 1.0, 0.0)
    proj_in = h_hc + jnp.dot(context, shift, preferred_element_type=f32)
    gen_score = (jnp.dot(proj_in.astype(bf16), wp_ref[...], preferred_element_type=f32)
                 + bp_ref[...])                                       # [BT, VTp]

    # ---- copy score (closed form; no dense sparse matrix, no vocab-wide ----
    # ---- log/exp round trip) -------------------------------------------------
    uc = jnp.tanh(uc_pre + bc1_ref[...])
    ucs = jnp.sum(uc * h_new[:, None, :], axis=-1)                    # [BT, Tup]
    ucs = jnp.where(t_valid, ucs, NEG)
    ucs_max = jnp.max(ucs, axis=1, keepdims=True)
    uce = jnp.exp(ucs - ucs_max)                                      # 0 on padded t
    wgt = uce * valid_ref[...]                                        # ignore_index -> 0
    col = col_ref[...]
    col_iota = lax.broadcasted_iota(jnp.int32, (BT, VTp), 1)
    scat = jnp.zeros((BT, VTp), f32)
    # static unroll over the Tu real tokens; only one [BT,VTp] buffer stays live
    # (static lane slices avoid dynamic-lane indexing)
    for t in range(Tu):
        scat = scat + jnp.where(col[:, t:t + 1] == col_iota, wgt[:, t:t + 1], 0.0)
    u_all = jnp.sum(uce, axis=1, keepdims=True)
    # sum_t uce_t * sparse_row_t  ==  scat*(1-1e-10) + 1e-10*sum_t uce_t
    c_lin = scat * (1.0 - 1e-10) + 1e-10 * u_all
    c_lin = jnp.where(col_iota < (V + Tu), c_lin, 0.0)                # kill padded columns

    # ---- softmax over [gen_score ; log(c_lin)+ucs_max] ---------------------
    m = jnp.maximum(jnp.max(gen_score, axis=1, keepdims=True),
                    ucs_max + jnp.log(jnp.max(c_lin, axis=1, keepdims=True)))
    e_gen = jnp.exp(gen_score - m)              # exactly 0 on cols >= V   (NEG bias)
    e_uc = c_lin * jnp.exp(ucs_max - m)         # exactly 0 on cols >= V+Tu
    denom = (jnp.sum(e_gen, axis=1, keepdims=True)
             + jnp.sum(e_uc, axis=1, keepdims=True))

    h_out_ref[...] = h_new
    proba_ref[...] = (e_gen + e_uc) / denom     # exact final normalisation


# -----------------------------------------------------------------------------
# Parameter init (synthetic, matching the module's shapes)
# -----------------------------------------------------------------------------
def init_params(key, E, H, V):
    ks = jax.random.split(key, 12)

    def lin(k, fan_in, shape):
        bound = 1.0 / np.sqrt(fan_in)
        return jax.random.uniform(k, shape, jnp.float32, -bound, bound)

    p = {}
    p["emb"] = jax.random.normal(ks[0], (V, E), jnp.float32)                 # nn.Embedding
    wa_t = lin(ks[1], 2 * H, (2 * H, H))                                     # Attn.attn W^T
    p["wa_h"], p["wa_e"] = wa_t[:H], wa_t[H:]
    p["ba"] = lin(ks[2], 2 * H, (1, H))
    p["v"] = jax.random.normal(ks[3], (1, H), jnp.float32) / np.sqrt(H)      # Attn.v
    # TODO(synk): init_gru's orthogonal re-init of weight_hh replaced by uniform (init-time only).
    wih_t = lin(ks[4], H, (E + H, 3 * H))                                    # GRU W_ih^T
    p["wih_e"], p["wih_c"] = wih_t[:E], wih_t[E:]
    p["bih"] = lin(ks[5], H, (1, 3 * H))
    p["whh"] = lin(ks[6], H, (H, 3 * H))                                     # GRU W_hh^T
    p["bhh"] = lin(ks[7], H, (1, 3 * H))
    wp_t = lin(ks[8], 2 * H, (2 * H, V))                                     # proj W^T
    p["wp_g"], p["wp_c"] = wp_t[:H], wp_t[H:]
    p["bp"] = lin(ks[9], 2 * H, (1, V))
    p["wc1"] = lin(ks[10], H, (H, H))                                        # proj_copy1 W^T
    p["bc1"] = lin(ks[11], H, (1, H))
    return p


def pack_params(p, Tu):
    """Pad/fuse weights once at init (hoisted out of the per-token forward)."""
    f32, bf16 = jnp.float32, jnp.bfloat16
    V, E = p["emb"].shape
    H = p["wa_h"].shape[0]
    Hp = round_up(H, 128)
    ECp = round_up(E + H, 128)      # packed GRU-input contraction
    HCp = round_up(2 * H, 128)      # packed projection contraction
    VTp = round_up(V + Tu, 128)

    def z(*s):
        return jnp.zeros(s, f32)

    # fused enc-side projection: enc @ [wa_e | wc1]
    we = z(Hp, 2 * Hp).at[:H, :H].set(p["wa_e"]).at[:H, Hp:Hp + H].set(p["wc1"])
    # fused hidden-side projection: h @ [wa_h | whh(r|z|n)]
    wh = z(Hp, 4 * Hp).at[:H, :H].set(p["wa_h"])
    wih = z(ECp, 3 * Hp)
    bih = z(1, 3 * Hp)
    bhh = z(1, 3 * Hp)
    for g in range(3):  # gate blocks at 128-aligned offsets g*Hp
        wh = wh.at[:H, (1 + g) * Hp:(1 + g) * Hp + H].set(p["whh"][:, g * H:(g + 1) * H])
        bhh = bhh.at[:, g * Hp:g * Hp + H].set(p["bhh"][:, g * H:(g + 1) * H])
        # GRU input packed in one 128-lane block: context at [0:H], emb(z) at [H:H+E]
        wih = wih.at[:H, g * Hp:g * Hp + H].set(p["wih_c"][:, g * H:(g + 1) * H])
        wih = wih.at[H:H + E, g * Hp:g * Hp + H].set(p["wih_e"][:, g * H:(g + 1) * H])
        bih = bih.at[:, g * Hp:g * Hp + H].set(p["bih"][:, g * H:(g + 1) * H])

    # fused output projection over packed [gru_out | context]
    wp = z(HCp, VTp).at[:H, :V].set(p["wp_g"]).at[H:2 * H, :V].set(p["wp_c"])
    bp = jnp.full((1, VTp), NEG, f32).at[:, :V].set(p["bp"])   # kill non-vocab cols in gen softmax

    return dict(
        we=we.astype(bf16), wh=wh.astype(bf16), wih=wih.astype(bf16), wp=wp.astype(bf16),
        ba=z(1, Hp).at[:, :H].set(p["ba"]),
        v=z(1, Hp).at[:, :H].set(p["v"]),
        bih=bih, bhh=bhh,
        bc1=z(1, Hp).at[:, :H].set(p["bc1"]),
        bp=bp,
        emb=p["emb"],
        dims=dict(E=E, H=H, V=V, Tu=Tu, Hp=Hp, ECp=ECp, HCp=HCp, VTp=VTp),
    )


# -----------------------------------------------------------------------------
# Per-decode-step wrapper
# -----------------------------------------------------------------------------
def bspan_decoder_forward(packed, u_enc_out, z_tm1, last_hidden, u_input):
    """
    u_enc_out: [Tu,B,H] f32; z_tm1: [1,B] i32; last_hidden: [1,B,H] f32; u_input: [Tu,B] i32.
    Returns (gru_out [1,B,H], last_hidden [1,B,H], proba [B, V+Tu]).
    """
    Tu, B, H = u_enc_out.shape
    d = packed["dims"]
    assert H == d["H"] and Tu == d["Tu"]
    E, V = d["E"], d["V"]
    Hp, ECp, HCp, VTp = d["Hp"], d["ECp"], d["HCp"], d["VTp"]
    Tup = round_up(Tu, 8)
    BT, Bp = _pick_batch_tile(B)

    # batch-major, zero-padded activations (padding rows/cols are inert by construction)
    enc = jnp.transpose(u_enc_out, (1, 0, 2))                                 # [B,Tu,H]
    enc_p = jnp.zeros((Bp, Tup, Hp), jnp.float32).at[:B, :Tu, :H].set(enc)
    h0_p = jnp.zeros((Bp, Hp), jnp.float32).at[:B, :H].set(last_hidden[0])
    embz = packed["emb"][z_tm1[0]]                                            # [B,E]
    embz_p = jnp.zeros((Bp, ECp), jnp.float32).at[:B, H:H + E].set(embz)      # lanes [H:H+E]

    # copy-column ids + validity mask replace the dense [B,Tu,V+Tu] sparse matrix
    t_ids = jnp.arange(Tu, dtype=jnp.int32)[:, None]
    col = jnp.where(u_input == 2, V + t_ids, u_input).astype(jnp.int32)       # unk -> V+t
    valid = (u_input != 0).astype(jnp.float32)                                # ignore_index = [0]
    col_p = jnp.zeros((Bp, Tup), jnp.int32).at[:B, :Tu].set(col.T)
    valid_p = jnp.zeros((Bp, Tup), jnp.float32).at[:B, :Tu].set(valid.T)

    kernel = functools.partial(bspan_decoder_kernel, Tu=Tu, V=V, E=E, H=H, Hp=Hp)

    def call(single_buffer):
        bmap2 = lambda i: (i, 0)
        bmap3 = lambda i: (i, 0, 0)

        def wspec(shape):
            # grid-invariant weights: single-buffer them to free VMEM (v7x esp.)
            if single_buffer:
                return pl.BlockSpec(shape, lambda i: (0,) * len(shape),
                                    pipeline_mode=pl.Buffered(1))
            return pl.BlockSpec(shape, lambda i: (0,) * len(shape))

        return pl.pallas_call(
            kernel,
            grid=(Bp // BT,),
            in_specs=[
                pl.BlockSpec((BT, Tup, Hp), bmap3),      # enc
                pl.BlockSpec((BT, Hp), bmap2),           # last_hidden
                pl.BlockSpec((BT, ECp), bmap2),          # emb(z)
                pl.BlockSpec((BT, Tup), bmap2),          # copy col ids
                pl.BlockSpec((BT, Tup), bmap2),          # validity mask
                wspec((Hp, 2 * Hp)),                     # we  = [wa_e | wc1]
                wspec((Hp, 4 * Hp)),                     # wh  = [wa_h | whh]
                wspec((1, Hp)),                          # ba
                wspec((1, Hp)),                          # v
                wspec((ECp, 3 * Hp)),                    # wih (packed)
                wspec((1, 3 * Hp)),                      # bih
                wspec((1, 3 * Hp)),                      # bhh
                wspec((1, Hp)),                          # bc1
                wspec((HCp, VTp)),                       # wp (packed, vocab-padded)
                wspec((1, VTp)),                         # bp
            ],
            out_specs=(pl.BlockSpec((BT, Hp), bmap2),
                       pl.BlockSpec((BT, VTp), bmap2)),
            out_shape=(jax.ShapeDtypeStruct((Bp, Hp), jnp.float32),
                       jax.ShapeDtypeStruct((Bp, VTp), jnp.float32)),
            compiler_params=_CompilerParams(
                dimension_semantics=("parallel",),       # shards batch across v7x's 2 TCs
                vmem_limit_bytes=_vmem_limit_bytes(),
            ),
        )(enc_p, h0_p, embz_p, col_p, valid_p,
          packed["we"], packed["wh"], packed["ba"], packed["v"],
          packed["wih"], packed["bih"], packed["bhh"], packed["bc1"],
          packed["wp"], packed["bp"])

    use_buffered = hasattr(pl, "Buffered")
    while True:
        try:
            h_out_p, proba_p = call(use_buffered)
            break
        except Exception:
            if not use_buffered:
                raise
            use_buffered = False   # fall back if pipeline_mode/Buffered(1) is unsupported

    h_new = h_out_p[:B, :H]
    proba = proba_p[:B, :V + Tu]
    # gru_out == last_hidden for a single-layer, single-step GRU
    return h_new[None], h_new[None], proba
    # TODO(synk): pv_z_enc_out branch (previous-turn copy via proj_copy2) and a
    # vocab-axis grid with two-pass/online softmax for very large V are not implemented.


# -----------------------------------------------------------------------------
# Pure-JAX reference (dense sparse-matrix semantics, for correctness checking)
# -----------------------------------------------------------------------------
def get_sparse_input_aug_jax(x, vocab_size):
    Tu, B = x.shape
    aug = vocab_size + Tu
    t_idx = jnp.arange(Tu, dtype=x.dtype)[:, None]
    col = jnp.where(x == 2, vocab_size + t_idx, x)
    onehot = jax.nn.one_hot(col, aug, dtype=jnp.float32)
    valid = (x != 0)[:, :, None].astype(jnp.float32)
    result = jnp.where(onehot * valid > 0, 1.0, 1e-10)
    return jnp.transpose(result, (1, 0, 2))


def reference_forward(params, u_enc_out, z_tm1, last_hidden, u_input, V):
    hp = jax.lax.Precision.HIGHEST
    Tu, B, H = u_enc_out.shape
    enc = jnp.transpose(u_enc_out, (1, 0, 2))
    h = last_hidden[0]
    embz = params["emb"][z_tm1[0]]
    sparse_u = get_sparse_input_aug_jax(u_input, V)

    part_h = jnp.dot(h, params["wa_h"], precision=hp)
    part_e = jnp.einsum("bth,hk->btk", enc, params["wa_e"], precision=hp)
    energy = jnp.tanh(part_h[:, None, :] + part_e + params["ba"])
    att = jnp.sum(energy * params["v"], axis=-1)
    alpha = jax.nn.softmax(att, axis=-1)
    context = jnp.einsum("bt,bth->bh", alpha, enc, precision=hp)

    gi = (jnp.dot(embz, params["wih_e"], precision=hp)
          + jnp.dot(context, params["wih_c"], precision=hp) + params["bih"])
    gh = jnp.dot(h, params["whh"], precision=hp) + params["bhh"]
    r = jax.nn.sigmoid(gi[:, :H] + gh[:, :H])
    zg = jax.nn.sigmoid(gi[:, H:2 * H] + gh[:, H:2 * H])
    n = jnp.tanh(gi[:, 2 * H:] + r * gh[:, 2 * H:])
    h_new = (1.0 - zg) * n + zg * h

    gen_score = (jnp.dot(h_new, params["wp_g"], precision=hp)
                 + jnp.dot(context, params["wp_c"], precision=hp) + params["bp"])

    uc = jnp.tanh(jnp.einsum("bth,hk->btk", enc, params["wc1"], precision=hp) + params["bc1"])
    ucs = jnp.einsum("bth,bh->bt", uc, h_new, precision=hp)
    ucs_max = jnp.max(ucs, axis=1, keepdims=True)
    uce = jnp.exp(ucs - ucs_max)
    u_copy = jnp.log(jnp.einsum("bt,btv->bv", uce, sparse_u, precision=hp)) + ucs_max

    scores = jax.nn.softmax(jnp.concatenate([gen_score, u_copy], axis=1), axis=1)
    gen_s, uc_s = scores[:, :V], scores[:, V:]
    proba = jnp.concatenate([gen_s + uc_s[:, :V], uc_s[:, V:]], axis=1)
    return h_new[None], h_new[None], proba


# -----------------------------------------------------------------------------
if __name__ == "__main__":
    B, Tu, H, E, V = 2, 8, 32, 32, 32

    key = jax.random.PRNGKey(0)
    kp, k1, k2, k3, k4 = jax.random.split(key, 5)
    params = init_params(kp, E, H, V)
    packed = pack_params(params, Tu)       # hoisted: built once, reused every decode step

    u_enc_out = jax.random.normal(k1, (Tu, B, H), jnp.float32)
    last_hidden = jax.random.normal(k2, (1, B, H), jnp.float32)
    z_tm1 = jax.random.randint(k3, (1, B), 0, V, dtype=jnp.int32)
    u_input = jax.random.randint(k4, (Tu, B), 0, V, dtype=jnp.int32)
    # exercise ignore-index (0) and unk (2) paths of get_sparse_input_aug
    u_input = u_input.at[0, 0].set(0).at[1, 1].set(2)

    gru_out, h_new, proba = bspan_decoder_forward(
        packed, u_enc_out, z_tm1, last_hidden, u_input)
    jax.block_until_ready((gru_out, h_new, proba))

    r_gru, r_h, r_proba = reference_forward(
        params, u_enc_out, z_tm1, last_hidden, u_input, V)

    assert gru_out.shape == (1, B, H) and h_new.shape == (1, B, H)
    assert proba.shape == (B, V + Tu)
    # bf16 matmul operands (f32 accumulation) -> ~1e-3 scale error on the hidden state
    assert np.max(np.abs(np.asarray(h_new) - np.asarray(r_h))) < 2e-2
    assert np.max(np.abs(np.asarray(gru_out) - np.asarray(r_gru))) < 2e-2
    assert np.max(np.abs(np.asarray(proba) - np.asarray(r_proba))) < 1e-2
    # exact final normalisation -> rows of proba sum to 1
    assert np.max(np.abs(np.asarray(proba).sum(-1) - 1.0)) < 1e-3

    print("KERNEL_OK")
</pallas_src>

<mosaic_0001>
module attributes {stable_mosaic.version = 11 : i64} {
  func.func @bspan_decoder_kernel(%arg0: i32, %arg1: memref<8x8x128xf32, #tpu.memory_space<vmem>>, %arg2: memref<8x128xf32, #tpu.memory_space<vmem>>, %arg3: memref<8x128xf32, #tpu.memory_space<vmem>>, %arg4: memref<8x8xi32, #tpu.memory_space<vmem>>, %arg5: memref<8x8xf32, #tpu.memory_space<vmem>>, %arg6: memref<128x256xbf16, #tpu.memory_space<vmem>>, %arg7: memref<128x512xbf16, #tpu.memory_space<vmem>>, %arg8: memref<1x128xf32, #tpu.memory_space<vmem>>, %arg9: memref<1x128xf32, #tpu.memory_space<vmem>>, %arg10: memref<128x384xbf16, #tpu.memory_space<vmem>>, %arg11: memref<1x384xf32, #tpu.memory_space<vmem>>, %arg12: memref<1x384xf32, #tpu.memory_space<vmem>>, %arg13: memref<1x128xf32, #tpu.memory_space<vmem>>, %arg14: memref<128x128xbf16, #tpu.memory_space<vmem>>, %arg15: memref<1x128xf32, #tpu.memory_space<vmem>>, %arg16: memref<8x128xf32, #tpu.memory_space<vmem>>, %arg17: memref<8x128xf32, #tpu.memory_space<vmem>>) attributes {dimension_semantics = [#tpu.dimension_semantics<parallel>], iteration_bounds = array<i64: 1>, scalar_prefetch = 0 : i64, scratch_operands = 0 : i64, tpu.core_type = #tpu.core_type<tc>, window_params = [{transform_indices = @transform_0, window_bounds = array<i64: 8, 8, 128>}, {transform_indices = @transform_1, window_bounds = array<i64: 8, 128>}, {transform_indices = @transform_2, window_bounds = array<i64: 8, 128>}, {transform_indices = @transform_3, window_bounds = array<i64: 8, 8>}, {transform_indices = @transform_4, window_bounds = array<i64: 8, 8>}, {pipeline_mode = #tpu.pipeline_mode<synchronous>, transform_indices = @transform_5, window_bounds = array<i64: 128, 256>}, {pipeline_mode = #tpu.pipeline_mode<synchronous>, transform_indices = @transform_6, window_bounds = array<i64: 128, 512>}, {pipeline_mode = #tpu.pipeline_mode<synchronous>, transform_indices = @transform_7, window_bounds = array<i64: 1, 128>}, {pipeline_mode = #tpu.pipeline_mode<synchronous>, transform_indices = @transform_8, window_bounds = array<i64: 1, 128>}, {pipeline_mode = #tpu.pipeline_mode<synchronous>, transform_indices = @transform_9, window_bounds = array<i64: 128, 384>}, {pipeline_mode = #tpu.pipeline_mode<synchronous>, transform_indices = @transform_10, window_bounds = array<i64: 1, 384>}, {pipeline_mode = #tpu.pipeline_mode<synchronous>, transform_indices = @transform_11, window_bounds = array<i64: 1, 384>}, {pipeline_mode = #tpu.pipeline_mode<synchronous>, transform_indices = @transform_12, window_bounds = array<i64: 1, 128>}, {pipeline_mode = #tpu.pipeline_mode<synchronous>, transform_indices = @transform_13, window_bounds = array<i64: 128, 128>}, {pipeline_mode = #tpu.pipeline_mode<synchronous>, transform_indices = @transform_14, window_bounds = array<i64: 1, 128>}, {transform_indices = @transform_15, window_bounds = array<i64: 8, 128>}, {transform_indices = @transform_16, window_bounds = array<i64: 8, 128>}]} {
    %c0 = arith.constant 0 : index
    %c0_0 = arith.constant 0 : index
    %c0_1 = arith.constant 0 : index
    %0 = vector.load %arg1[%c0, %c0_0, %c0_1] : memref<8x8x128xf32, #tpu.memory_space<vmem>>, vector<8x8x128xf32>
    %c0_2 = arith.constant 0 : index
    %c0_3 = arith.constant 0 : index
    %1 = vector.load %arg2[%c0_2, %c0_3] : memref<8x128xf32, #tpu.memory_space<vmem>>, vector<8x128xf32>
    %2 = tpu.iota {dimensions = array<i32: 1>} : vector<8x8xi32>
    %c8_i32 = arith.constant 8 : i32
    %3 = vector.broadcast %c8_i32 : i32 to vector<8x8xi32>
    %4 = arith.cmpi slt, %2, %3 : vector<8x8xi32>
    %5 = vector.shape_cast %0 : vector<8x8x128xf32> to vector<64x128xf32>
    %6 = arith.truncf %5 : vector<64x128xf32> to vector<64x128xbf16>
    %c0_4 = arith.constant 0 : index
    %c0_5 = arith.constant 0 : index
    %7 = vector.load %arg6[%c0_4, %c0_5] : memref<128x256xbf16, #tpu.memory_space<vmem>>, vector<128x256xbf16>
    %cst = arith.constant dense<0.000000e+00> : vector<64x256xf32>
    %8 = tpu.matmul %6, %7, %cst {dimension_numbers = #tpu.dot_dimension_numbers<[1], [0], [0], [1], [0, 0, 1, 1], [], []>} : vector<64x128xbf16>, vector<128x256xbf16>, vector<64x256xf32> -> vector<64x256xf32>
    %9 = vector.extract_strided_slice %8 {offsets = [0, 0], sizes = [64, 128], strides = [1, 1]} : vector<64x256xf32> to vector<64x128xf32>
    %10 = vector.shape_cast %9 : vector<64x128xf32> to vector<8x8x128xf32>
    %11 = vector.extract_strided_slice %8 {offsets = [0, 128], sizes = [64, 128], strides = [1, 1]} : vector<64x256xf32> to vector<64x128xf32>
    %12 = vector.shape_cast %11 : vector<64x128xf32> to vector<8x8x128xf32>
    %13 = arith.truncf %1 : vector<8x128xf32> to vector<8x128xbf16>
    %c0_6 = arith.constant 0 : index
    %c0_7 = arith.constant 0 : index
    %14 = vector.load %arg7[%c0_6, %c0_7] : memref<128x512xbf16, #tpu.memory_space<vmem>>, vector<128x512xbf16>
    %cst_8 = arith.constant dense<0.000000e+00> : vector<8x512xf32>
    %15 = tpu.matmul %13, %14, %cst_8 {dimension_numbers = #tpu.dot_dimension_numbers<[1], [0], [0], [1], [0, 0, 1, 1], [], []>} : vector<8x128xbf16>, vector<128x512xbf16>, vector<8x512xf32> -> vector<8x512xf32>
    %16 = vector.extract_strided_slice %15 {offsets = [0, 0], sizes = [8, 128], strides = [1, 1]} : vector<8x512xf32> to vector<8x128xf32>
    %17 = vector.extract_strided_slice %15 {offsets = [0, 128], sizes = [8, 384], strides = [1, 1]} : vector<8x512xf32> to vector<8x384xf32>
    %c0_9 = arith.constant 0 : index
    %c0_10 = arith.constant 0 : index
    %18 = vector.load %arg12[%c0_9, %c0_10] : memref<1x384xf32, #tpu.memory_space<vmem>>, vector<1x384xf32>
    %19 = vector.broadcast %18 : vector<1x384xf32> to vector<8x384xf32>
    %20 = arith.addf %17, %19 : vector<8x384xf32>
    %21 = vector.shape_cast %16 : vector<8x128xf32> to vector<8x1x128xf32>
    %22 = vector.broadcast %21 : vector<8x1x128xf32> to vector<8x8x128xf32>
    %23 = arith.addf %22, %10 : vector<8x8x128xf32>
    %c0_11 = arith.constant 0 : index
    %c0_12 = arith.constant 0 : index
    %24 = vector.load %arg8[%c0_11, %c0_12] : memref<1x128xf32, #tpu.memory_space<vmem>>, vector<1x128xf32>
    %25 = vector.shape_cast %24 : vector<1x128xf32> to vector<1x1x128xf32>
    %26 = vector.broadcast %25 : vector<1x1x128xf32> to vector<8x8x128xf32>
    %27 = arith.addf %23, %26 : vector<8x8x128xf32>
    %28 = math.tanh %27 : vector<8x8x128xf32>
    %c0_13 = arith.constant 0 : index
    %c0_14 = arith.constant 0 : index
    %29 = vector.load %arg9[%c0_13, %c0_14] : memref<1x128xf32, #tpu.memory_space<vmem>>, vector<1x128xf32>
    %30 = vector.shape_cast %29 : vector<1x128xf32> to vector<1x1x128xf32>
    %31 = vector.broadcast %30 : vector<1x1x128xf32> to vector<8x8x128xf32>
    %32 = arith.mulf %28, %31 : vector<8x8x128xf32>
    %cst_15 = arith.constant dense<0.000000e+00> : vector<8x8xf32>
    %33 = vector.multi_reduction <add>, %32, %cst_15 [2] : vector<8x8x128xf32> to vector<8x8xf32>
    %cst_16 = arith.constant -1.000000e+30 : f32
    %34 = vector.broadcast %cst_16 : f32 to vector<8x8xf32>
    %35 = arith.select %4, %33, %34 : vector<8x8xi1>, vector<8x8xf32>
    %cst_17 = arith.constant dense<0xFF800000> : vector<8xf32>
    %36 = vector.multi_reduction <maximumf>, %35, %cst_17 [1] : vector<8x8xf32> to vector<8xf32>
    %37 = vector.shape_cast %36 : vector<8xf32> to vector<8x1xf32>
    %38 = vector.broadcast %37 : vector<8x1xf32> to vector<8x8xf32>
    %39 = arith.subf %35, %38 : vector<8x8xf32>
    %40 = math.exp %39 : vector<8x8xf32>
    %cst_18 = arith.constant dense<0.000000e+00> : vector<8xf32>
    %41 = vector.multi_reduction <add>, %40, %cst_18 [1] : vector<8x8xf32> to vector<8xf32>
    %42 = vector.shape_cast %41 : vector<8xf32> to vector<8x1xf32>
    %43 = tpu.reciprocal %42 {approx = true} : vector<8x1xf32> -> vector<8x1xf32>
    %44 = vector.broadcast %43 : vector<8x1xf32> to vector<8x8xf32>
    %45 = arith.mulf %40, %44 : vector<8x8xf32>
    %46 = vector.shape_cast %45 : vector<8x8xf32> to vector<8x8x1xf32>
    %47 = vector.broadcast %46 : vector<8x8x1xf32> to vector<8x8x128xf32>
    %48 = arith.mulf %47, %0 : vector<8x8x128xf32>
    %cst_19 = arith.constant dense<0.000000e+00> : vector<8x128xf32>
    %49 = vector.multi_reduction <add>, %48, %cst_19 [1] : vector<8x8x128xf32> to vector<8x128xf32>
    %c0_20 = arith.constant 0 : index
    %c0_21 = arith.constant 0 : index
    %50 = vector.load %arg3[%c0_20, %c0_21] : memref<8x128xf32, #tpu.memory_space<vmem>>, vector<8x128xf32>
    %51 = arith.addf %50, %49 : vector<8x128xf32>
    %52 = arith.truncf %51 : vector<8x128xf32> to vector<8x128xbf16>
    %c0_22 = arith.constant 0 : index
    %c0_23 = arith.constant 0 : index
    %53 = vector.load %arg10[%c0_22, %c0_23] : memref<128x384xbf16, #tpu.memory_space<vmem>>, vector<128x384xbf16>
    %cst_24 = arith.constant dense<0.000000e+00> : vector<8x384xf32>
    %54 = tpu.matmul %52, %53, %cst_24 {dimension_numbers = #tpu.dot_dimension_numbers<[1], [0], [0], [1], [0, 0, 1, 1], [], []>} : vector<8x128xbf16>, vector<128x384xbf16>, vector<8x384xf32> -> vector<8x384xf32>
    %c0_25 = arith.constant 0 : index
    %c0_26 = arith.constant 0 : index
    %55 = vector.load %arg11[%c0_25, %c0_26] : memref<1x384xf32, #tpu.memory_space<vmem>>, vector<1x384xf32>
    %56 = vector.broadcast %55 : vector<1x384xf32> to vector<8x384xf32>
    %57 = arith.addf %54, %56 : vector<8x384xf32>
    %58 = vector.extract_strided_slice %57 {offsets = [0, 0], sizes = [8, 128], strides = [1, 1]} : vector<8x384xf32> to vector<8x128xf32>
    %59 = vector.extract_strided_slice %20 {offsets = [0, 0], sizes = [8, 128], strides = [1, 1]} : vector<8x384xf32> to vector<8x128xf32>
    %60 = arith.addf %58, %59 : vector<8x128xf32>
    %61 = arith.negf %60 : vector<8x128xf32>
    %62 = math.exp %61 : vector<8x128xf32>
    %cst_27 = arith.constant 1.000000e+00 : f32
    %63 = vector.broadcast %cst_27 : f32 to vector<8x128xf32>
    %64 = arith.addf %63, %62 : vector<8x128xf32>
    %65 = arith.divf %63, %64 : vector<8x128xf32>
    %66 = vector.extract_strided_slice %57 {offsets = [0, 128], sizes = [8, 128], strides = [1, 1]} : vector<8x384xf32> to vector<8x128xf32>
    %67 = vector.extract_strided_slice %20 {offsets = [0, 128], sizes = [8, 128], strides = [1, 1]} : vector<8x384xf32> to vector<8x128xf32>
    %68 = arith.addf %66, %67 : vector<8x128xf32>
    %69 = arith.negf %68 : vector<8x128xf32>
    %70 = math.exp %69 : vector<8x128xf32>
    %cst_28 = arith.constant 1.000000e+00 : f32
    %71 = vector.broadcast %cst_28 : f32 to vector<8x128xf32>
    %72 = arith.addf %71, %70 : vector<8x128xf32>
    %73 = arith.divf %71, %72 : vector<8x128xf32>
    %74 = vector.extract_strided_slice %57 {offsets = [0, 256], sizes = [8, 128], strides = [1, 1]} : vector<8x384xf32> to vector<8x128xf32>
    %75 = vector.extract_strided_slice %20 {offsets = [0, 256], sizes = [8, 128], strides = [1, 1]} : vector<8x384xf32> to vector<8x128xf32>
    %76 = arith.mulf %65, %75 : vector<8x128xf32>
    %77 = arith.addf %74, %76 : vector<8x128xf32>
    %78 = math.tanh %77 : vector<8x128xf32>
    %cst_29 = arith.constant 1.000000e+00 : f32
    %79 = vector.broadcast %cst_29 : f32 to vector<8x128xf32>
    %80 = arith.subf %79, %73 : vector<8x128xf32>
    %81 = arith.mulf %80, %78 : vector<8x128xf32>
    %82 = arith.mulf %73, %1 : vector<8x128xf32>
    %83 = arith.addf %81, %82 : vector<8x128xf32>
    %84 = tpu.iota {dimensions = array<i32: 0>} : vector<128x128xi32>
    %85 = tpu.iota {dimensions = array<i32: 1>} : vector<128x128xi32>
    %c32_i32 = arith.constant 32 : i32
    %86 = vector.broadcast %c32_i32 : i32 to vector<128x128xi32>
    %87 = arith.addi %84, %86 : vector<128x128xi32>
    %88 = arith.cmpi eq, %85, %87 : vector<128x128xi32>
    %c32_i32_30 = arith.constant 32 : i32
    %89 = vector.broadcast %c32_i32_30 : i32 to vector<128x128xi32>
    %90 = arith.cmpi slt, %84, %89 : vector<128x128xi32>
    %91 = arith.andi %88, %90 : vector<128x128xi1>
    %cst_31 = arith.constant 1.000000e+00 : f32
    %cst_32 = arith.constant 0.000000e+00 : f32
    %92 = vector.broadcast %cst_31 : f32 to vector<128x128xf32>
    %93 = vector.broadcast %cst_32 : f32 to vector<128x128xf32>
    %94 = arith.select %91, %92, %93 : vector<128x128xi1>, vector<128x128xf32>
    %cst_33 = arith.constant dense<0.000000e+00> : vector<8x128xf32>
    %95 = tpu.matmul %49, %94, %cst_33 {dimension_numbers = #tpu.dot_dimension_numbers<[1], [0], [0], [1], [0, 0, 1, 1], [], []>} : vector<8x128xf32>, vector<128x128xf32>, vector<8x128xf32> -> vector<8x128xf32>
    %96 = arith.addf %83, %95 : vector<8x128xf32>
    %97 = arith.truncf %96 : vector<8x128xf32> to vector<8x128xbf16>
    %c0_34 = arith.constant 0 : index
    %c0_35 = arith.constant 0 : index
    %98 = vector.load %arg14[%c0_34, %c0_35] : memref<128x128xbf16, #tpu.memory_space<vmem>>, vector<128x128xbf16>
    %cst_36 = arith.constant dense<0.000000e+00> : vector<8x128xf32>
    %99 = tpu.matmul %97, %98, %cst_36 {dimension_numbers = #tpu.dot_dimension_numbers<[1], [0], [0], [1], [0, 0, 1, 1], [], []>} : vector<8x128xbf16>, vector<128x128xbf16>, vector<8x128xf32> -> vector<8x128xf32>
    %c0_37 = arith.constant 0 : index
    %c0_38 = arith.constant 0 : index
    %100 = vector.load %arg15[%c0_37, %c0_38] : memref<1x128xf32, #tpu.memory_space<vmem>>, vector<1x128xf32>
    %101 = vector.broadcast %100 : vector<1x128xf32> to vector<8x128xf32>
    %102 = arith.addf %99, %101 : vector<8x128xf32>
    %c0_39 = arith.constant 0 : index
    %c0_40 = arith.constant 0 : index
    %103 = vector.load %arg13[%c0_39, %c0_40] : memref<1x128xf32, #tpu.memory_space<vmem>>, vector<1x128xf32>
    %104 = vector.shape_cast %103 : vector<1x128xf32> to vector<1x1x128xf32>
    %105 = vector.broadcast %104 : vector<1x1x128xf32> to vector<8x8x128xf32>
    %106 = arith.addf %12, %105 : vector<8x8x128xf32>
    %107 = math.tanh %106 : vector<8x8x128xf32>
    %108 = vector.shape_cast %83 : vector<8x128xf32> to vector<8x1x128xf32>
    %109 = vector.broadcast %108 : vector<8x1x128xf32> to vector<8x8x128xf32>
    %110 = arith.mulf %107, %109 : vector<8x8x128xf32>
    %cst_41 = arith.constant dense<0.000000e+00> : vector<8x8xf32>
    %111 = vector.multi_reduction <add>, %110, %cst_41 [2] : vector<8x8x128xf32> to vector<8x8xf32>
    %cst_42 = arith.constant -1.000000e+30 : f32
    %112 = vector.broadcast %cst_42 : f32 to vector<8x8xf32>
    %113 = arith.select %4, %111, %112 : vector<8x8xi1>, vector<8x8xf32>
    %cst_43 = arith.constant dense<0xFF800000> : vector<8xf32>
    %114 = vector.multi_reduction <maximumf>, %113, %cst_43 [1] : vector<8x8xf32> to vector<8xf32>
    %115 = vector.shape_cast %114 : vector<8xf32> to vector<8x1xf32>
    %116 = vector.broadcast %115 : vector<8x1xf32> to vector<8x8xf32>
    %117 = arith.subf %113, %116 : vector<8x8xf32>
    %118 = math.exp %117 : vector<8x8xf32>
    %c0_44 = arith.constant 0 : index
    %c0_45 = arith.constant 0 : index
    %119 = vector.load %arg5[%c0_44, %c0_45] : memref<8x8xf32, #tpu.memory_space<vmem>>, vector<8x8xf32>
    %120 = arith.mulf %118, %119 : vector<8x8xf32>
    %c0_46 = arith.constant 0 : index
    %c0_47 = arith.constant 0 : index
    %121 = vector.load %arg4[%c0_46, %c0_47] : memref<8x8xi32, #tpu.memory_space<vmem>>, vector<8x8xi32>
    %122 = tpu.iota {dimensions = array<i32: 1>} : vector<8x128xi32>
    %cst_48 = arith.constant 0.000000e+00 : f32
    %123 = vector.broadcast %cst_48 : f32 to vector<8x128xf32>
    %124 = vector.extract_strided_slice %121 {offsets = [0, 0], sizes = [8, 1], strides = [1, 1]} : vector<8x8xi32> to vector<8x1xi32>
    %125 = vector.broadcast %124 : vector<8x1xi32> to vector<8x128xi32>
    %126 = arith.cmpi eq, %125, %122 : vector<8x128xi32>
    %127 = vector.extract_strided_slice %120 {offsets = [0, 0], sizes = [8, 1], strides = [1, 1]} : vector<8x8xf32> to vector<8x1xf32>
    %cst_49 = arith.constant 0.000000e+00 : f32
    %128 = vector.shape_cast %127 : vector<8x1xf32> to vector<8x1xf32>
    %129 = vector.broadcast %128 : vector<8x1xf32> to vector<8x128xf32>
    %130 = vector.broadcast %cst_49 : f32 to vector<8x128xf32>
    %131 = arith.select %126, %129, %130 : vector<8x128xi1>, vector<8x128xf32>
    %132 = arith.addf %123, %131 : vector<8x128xf32>
    %133 = vector.extract_strided_slice %121 {offsets = [0, 1], sizes = [8, 1], strides = [1, 1]} : vector<8x8xi32> to vector<8x1xi32>
    %134 = vector.broadcast %133 : vector<8x1xi32> to vector<8x128xi32>
    %135 = arith.cmpi eq, %134, %122 : vector<8x128xi32>
    %136 = vector.extract_strided_slice %120 {offsets = [0, 1], sizes = [8, 1], strides = [1, 1]} : vector<8x8xf32> to vector<8x1xf32>
    %cst_50 = arith.constant 0.000000e+00 : f32
    %137 = vector.shape_cast %136 : vector<8x1xf32> to vector<8x1xf32>
    %138 = vector.broadcast %137 : vector<8x1xf32> to vector<8x128xf32>
    %139 = vector.broadcast %cst_50 : f32 to vector<8x128xf32>
    %140 = arith.select %135, %138, %139 : vector<8x128xi1>, vector<8x128xf32>
    %141 = arith.addf %132, %140 : vector<8x128xf32>
    %142 = vector.extract_strided_slice %121 {offsets = [0, 2], sizes = [8, 1], strides = [1, 1]} : vector<8x8xi32> to vector<8x1xi32>
    %143 = vector.broadcast %142 : vector<8x1xi32> to vector<8x128xi32>
    %144 = arith.cmpi eq, %143, %122 : vector<8x128xi32>
    %145 = vector.extract_strided_slice %120 {offsets = [0, 2], sizes = [8, 1], strides = [1, 1]} : vector<8x8xf32> to vector<8x1xf32>
    %cst_51 = arith.constant 0.000000e+00 : f32
    %146 = vector.shape_cast %145 : vector<8x1xf32> to vector<8x1xf32>
    %147 = vector.broadcast %146 : vector<8x1xf32> to vector<8x128xf32>
    %148 = vector.broadcast %cst_51 : f32 to vector<8x128xf32>
    %149 = arith.select %144, %147, %148 : vector<8x128xi1>, vector<8x128xf32>
    %150 = arith.addf %141, %149 : vector<8x128xf32>
    %151 = vector.extract_strided_slice %121 {offsets = [0, 3], sizes = [8, 1], strides = [1, 1]} : vector<8x8xi32> to vector<8x1xi32>
    %152 = vector.broadcast %151 : vector<8x1xi32> to vector<8x128xi32>
    %153 = arith.cmpi eq, %152, %122 : vector<8x128xi32>
    %154 = vector.extract_strided_slice %120 {offsets = [0, 3], sizes = [8, 1], strides = [1, 1]} : vector<8x8xf32> to vector<8x1xf32>
    %cst_52 = arith.constant 0.000000e+00 : f32
    %155 = vector.shape_cast %154 : vector<8x1xf32> to vector<8x1xf32>
    %156 = vector.broadcast %155 : vector<8x1xf32> to vector<8x128xf32>
    %157 = vector.broadcast %cst_52 : f32 to vector<8x128xf32>
    %158 = arith.select %153, %156, %157 : vector<8x128xi1>, vector<8x128xf32>
    %159 = arith.addf %150, %158 : vector<8x128xf32>
    %160 = vector.extract_strided_slice %121 {offsets = [0, 4], sizes = [8, 1], strides = [1, 1]} : vector<8x8xi32> to vector<8x1xi32>
    %161 = vector.broadcast %160 : vector<8x1xi32> to vector<8x128xi32>
    %162 = arith.cmpi eq, %161, %122 : vector<8x128xi32>
    %163 = vector.extract_strided_slice %120 {offsets = [0, 4], sizes = [8, 1], strides = [1, 1]} : vector<8x8xf32> to vector<8x1xf32>
    %cst_53 = arith.constant 0.000000e+00 : f32
    %164 = vector.shape_cast %163 : vector<8x1xf32> to vector<8x1xf32>
    %165 = vector.broadcast %164 : vector<8x1xf32> to vector<8x128xf32>
    %166 = vector.broadcast %cst_53 : f32 to vector<8x128xf32>
    %167 = arith.select %162, %165, %166 : vector<8x128xi1>, vector<8x128xf32>
    %168 = arith.addf %159, %167 : vector<8x128xf32>
    %169 = vector.extract_strided_slice %121 {offsets = [0, 5], sizes = [8, 1], strides = [1, 1]} : vector<8x8xi32> to vector<8x1xi32>
    %170 = vector.broadcast %169 : vector<8x1xi32> to vector<8x128xi32>
    %171 = arith.cmpi eq, %170, %122 : vector<8x128xi32>
    %172 = vector.extract_strided_slice %120 {offsets = [0, 5], sizes = [8, 1], strides = [1, 1]} : vector<8x8xf32> to vector<8x1xf32>
    %cst_54 = arith.constant 0.000000e+00 : f32
    %173 = vector.shape_cast %172 : vector<8x1xf32> to vector<8x1xf32>
    %174 = vector.broadcast %173 : vector<8x1xf32> to vector<8x128xf32>
    %175 = vector.broadcast %cst_54 : f32 to vector<8x128xf32>
    %176 = arith.select %171, %174, %175 : vector<8x128xi1>, vector<8x128xf32>
    %177 = arith.addf %168, %176 : vector<8x128xf32>
    %178 = vector.extract_strided_slice %121 {offsets = [0, 6], sizes = [8, 1], strides = [1, 1]} : vector<8x8xi32> to vector<8x1xi32>
    %179 = vector.broadcast %178 : vector<8x1xi32> to vector<8x128xi32>
    %180 = arith.cmpi eq, %179, %122 : vector<8x128xi32>
    %181 = vector.extract_strided_slice %120 {offsets = [0, 6], sizes = [8, 1], strides = [1, 1]} : vector<8x8xf32> to vector<8x1xf32>
    %cst_55 = arith.constant 0.000000e+00 : f32
    %182 = vector.shape_cast %181 : vector<8x1xf32> to vector<8x1xf32>
    %183 = vector.broadcast %182 : vector<8x1xf32> to vector<8x128xf32>
    %184 = vector.broadcast %cst_55 : f32 to vector<8x128xf32>
    %185 = arith.select %180, %183, %184 : vector<8x128xi1>, vector<8x128xf32>
    %186 = arith.addf %177, %185 : vector<8x128xf32>
    %187 = vector.extract_strided_slice %121 {offsets = [0, 7], sizes = [8, 1], strides = [1, 1]} : vector<8x8xi32> to vector<8x1xi32>
    %188 = vector.broadcast %187 : vector<8x1xi32> to vector<8x128xi32>
    %189 = arith.cmpi eq, %188, %122 : vector<8x128xi32>
    %190 = vector.extract_strided_slice %120 {offsets = [0, 7], sizes = [8, 1], strides = [1, 1]} : vector<8x8xf32> to vector<8x1xf32>
    %cst_56 = arith.constant 0.000000e+00 : f32
    %191 = vector.shape_cast %190 : vector<8x1xf32> to vector<8x1xf32>
    %192 = vector.broadcast %191 : vector<8x1xf32> to vector<8x128xf32>
    %193 = vector.broadcast %cst_56 : f32 to vector<8x128xf32>
    %194 = arith.select %189, %192, %193 : vector<8x128xi1>, vector<8x128xf32>
    %195 = arith.addf %186, %194 : vector<8x128xf32>
    %cst_57 = arith.constant dense<0.000000e+00> : vector<8xf32>
    %196 = vector.multi_reduction <add>, %118, %cst_57 [1] : vector<8x8xf32> to vector<8xf32>
    %197 = vector.shape_cast %196 : vector<8xf32> to vector<8x1xf32>
    %cst_58 = arith.constant 1.000000e+00 : f32
    %198 = vector.broadcast %cst_58 : f32 to vector<8x128xf32>
    %199 = arith.mulf %195, %198 : vector<8x128xf32>
    %cst_59 = arith.constant 1.000000e-10 : f32
    %200 = vector.broadcast %cst_59 : f32 to vector<8x1xf32>
    %201 = arith.mulf %200, %197 : vector<8x1xf32>
    %202 = vector.broadcast %201 : vector<8x1xf32> to vector<8x128xf32>
    %203 = arith.addf %199, %202 : vector<8x128xf32>
    %c40_i32 = arith.constant 40 : i32
    %204 = vector.broadcast %c40_i32 : i32 to vector<8x128xi32>
    %205 = arith.cmpi slt, %122, %204 : vector<8x128xi32>
    %cst_60 = arith.constant 0.000000e+00 : f32
    %206 = vector.broadcast %cst_60 : f32 to vector<8x128xf32>
    %207 = arith.select %205, %203, %206 : vector<8x128xi1>, vector<8x128xf32>
    %cst_61 = arith.constant dense<0xFF800000> : vector<8xf32>
    %208 = vector.multi_reduction <maximumf>, %102, %cst_61 [1] : vector<8x128xf32> to vector<8xf32>
    %209 = vector.shape_cast %208 : vector<8xf32> to vector<8x1xf32>
    %cst_62 = arith.constant dense<0xFF800000> : vector<8xf32>
    %210 = vector.multi_reduction <maximumf>, %207, %cst_62 [1] : vector<8x128xf32> to vector<8xf32>
    %211 = vector.shape_cast %210 : vector<8xf32> to vector<8x1xf32>
    %212 = math.log %211 : vector<8x1xf32>
    %213 = arith.addf %115, %212 : vector<8x1xf32>
    %214 = arith.maximumf %209, %213 : vector<8x1xf32>
    %215 = vector.broadcast %214 : vector<8x1xf32> to vector<8x128xf32>
    %216 = arith.subf %102, %215 : vector<8x128xf32>
    %217 = math.exp %216 : vector<8x128xf32>
    %218 = arith.subf %115, %214 : vector<8x1xf32>
    %219 = math.exp %218 : vector<8x1xf32>
    %220 = vector.broadcast %219 : vector<8x1xf32> to vector<8x128xf32>
    %221 = arith.mulf %207, %220 : vector<8x128xf32>
    %cst_63 = arith.constant dense<0.000000e+00> : vector<8xf32>
    %222 = vector.multi_reduction <add>, %217, %cst_63 [1] : vector<8x128xf32> to vector<8xf32>
    %223 = vector.shape_cast %222 : vector<8xf32> to vector<8x1xf32>
    %cst_64 = arith.constant dense<0.000000e+00> : vector<8xf32>
    %224 = vector.multi_reduction <add>, %221, %cst_64 [1] : vector<8x128xf32> to vector<8xf32>
    %225 = vector.shape_cast %224 : vector<8xf32> to vector<8x1xf32>
    %226 = arith.addf %223, %225 : vector<8x1xf32>
    %c0_65 = arith.constant 0 : index
    %c0_66 = arith.constant 0 : index
    %227 = vector.load %arg16[%c0_65, %c0_66] : memref<8x128xf32, #tpu.memory_space<vmem>>, vector<8x128xf32>
    tpu.vector_store %arg16[%c0_65, %c0_66], %83 {strides = array<i32>} : memref<8x128xf32, #tpu.memory_space<vmem>>, vector<8x128xf32>,
    %228 = arith.addf %217, %221 : vector<8x128xf32>
    %229 = vector.broadcast %226 : vector<8x1xf32> to vector<8x128xf32>
    %230 = arith.divf %228, %229 : vector<8x128xf32>
    %c0_67 = arith.constant 0 : index
    %c0_68 = arith.constant 0 : index
    %231 = vector.load %arg17[%c0_67, %c0_68] : memref<8x128xf32, #tpu.memory_space<vmem>>, vector<8x128xf32>
    tpu.vector_store %arg17[%c0_67, %c0_68], %230 {strides = array<i32>} : memref<8x128xf32, #tpu.memory_space<vmem>>, vector<8x128xf32>,
    return
  }
  func.func @transform_0(%arg0: i32) -> (i32, i32, i32) {
    %c0_i32 = arith.constant 0 : i32
    %c0_i32_0 = arith.constant 0 : i32
    %c0_i32_1 = arith.constant 0 : i32
    return %arg0, %c0_i32, %c0_i32_0 : i32, i32, i32
  }
  func.func @transform_1(%arg0: i32) -> (i32, i32) {
    %c0_i32 = arith.constant 0 : i32
    %c0_i32_0 = arith.constant 0 : i32
    return %arg0, %c0_i32 : i32, i32
  }
  func.func @transform_2(%arg0: i32) -> (i32, i32) {
    %c0_i32 = arith.constant 0 : i32
    %c0_i32_0 = arith.constant 0 : i32
    return %arg0, %c0_i32 : i32, i32
  }
  func.func @transform_3(%arg0: i32) -> (i32, i32) {
    %c0_i32 = arith.constant 0 : i32
    %c0_i32_0 = arith.constant 0 : i32
    return %arg0, %c0_i32 : i32, i32
  }
  func.func @transform_4(%arg0: i32) -> (i32, i32) {
    %c0_i32 = arith.constant 0 : i32
    %c0_i32_0 = arith.constant 0 : i32
    return %arg0, %c0_i32 : i32, i32
  }
  func.func @transform_5(%arg0: i32) -> (i32, i32) {
    %c0_i32 = arith.constant 0 : i32
    %c0_i32_0 = arith.constant 0 : i32
    %c0_i32_1 = arith.constant 0 : i32
    return %c0_i32, %c0_i32_0 : i32, i32
  }
  func.func @transform_6(%arg0: i32) -> (i32, i32) {
    %c0_i32 = arith.constant 0 : i32
    %c0_i32_0 = arith.constant 0 : i32
    %c0_i32_1 = arith.constant 0 : i32
    return %c0_i32, %c0_i32_0 : i32, i32
  }
  func.func @transform_7(%arg0: i32) -> (i32, i32) {
    %c0_i32 = arith.constant 0 : i32
    %c0_i32_0 = arith.constant 0 : i32
    %c0_i32_1 = arith.constant 0 : i32
    return %c0_i32, %c0_i32_0 : i32, i32
  }
  func.func @transform_8(%arg0: i32) -> (i32, i32) {
    %c0_i32 = arith.constant 0 : i32
    %c0_i32_0 = arith.constant 0 : i32
    %c0_i32_1 = arith.constant 0 : i32
    return %c0_i32, %c0_i32_0 : i32, i32
  }
  func.func @transform_9(%arg0: i32) -> (i32, i32) {
    %c0_i32 = arith.constant 0 : i32
    %c0_i32_0 = arith.constant 0 : i32
    %c0_i32_1 = arith.constant 0 : i32
    return %c0_i32, %c0_i32_0 : i32, i32
  }
  func.func @transform_10(%arg0: i32) -> (i32, i32) {
    %c0_i32 = arith.constant 0 : i32
    %c0_i32_0 = arith.constant 0 : i32
    %c0_i32_1 = arith.constant 0 : i32
    return %c0_i32, %c0_i32_0 : i32, i32
  }
  func.func @transform_11(%arg0: i32) -> (i32, i32) {
    %c0_i32 = arith.constant 0 : i32
    %c0_i32_0 = arith.constant 0 : i32
    %c0_i32_1 = arith.constant 0 : i32
    return %c0_i32, %c0_i32_0 : i32, i32
  }
  func.func @transform_12(%arg0: i32) -> (i32, i32) {
    %c0_i32 = arith.constant 0 : i32
    %c0_i32_0 = arith.constant 0 : i32
    %c0_i32_1 = arith.constant 0 : i32
    return %c0_i32, %c0_i32_0 : i32, i32
  }
  func.func @transform_13(%arg0: i32) -> (i32, i32) {
    %c0_i32 = arith.constant 0 : i32
    %c0_i32_0 = arith.constant 0 : i32
    %c0_i32_1 = arith.constant 0 : i32
    return %c0_i32, %c0_i32_0 : i32, i32
  }
  func.func @transform_14(%arg0: i32) -> (i32, i32) {
    %c0_i32 = arith.constant 0 : i32
    %c0_i32_0 = arith.constant 0 : i32
    %c0_i32_1 = arith.constant 0 : i32
    return %c0_i32, %c0_i32_0 : i32, i32
  }
  func.func @transform_15(%arg0: i32) -> (i32, i32) {
    %c0_i32 = arith.constant 0 : i32
    %c0_i32_0 = arith.constant 0 : i32
    return %arg0, %c0_i32 : i32, i32
  }
  func.func @transform_16(%arg0: i32) -> (i32, i32) {
    %c0_i32 = arith.constant 0 : i32
    %c0_i32_0 = arith.constant 0 : i32
    return %arg0, %c0_i32 : i32, i32
  }
}

module attributes {stable_mosaic.version = 11 : i64} {
  func.func @bspan_decoder_kernel(%arg0: i32, %arg1: memref<8x8x128xf32, #tpu.memory_space<vmem>>, %arg2: memref<8x128xf32, #tpu.memory_space<vmem>>, %arg3: memref<8x128xf32, #tpu.memory_space<vmem>>, %arg4: memref<8x8xi32, #tpu.memory_space<vmem>>, %arg5: memref<8x8xf32, #tpu.memory_space<vmem>>, %arg6: memref<128x256xbf16, #tpu.memory_space<vmem>>, %arg7: memref<128x512xbf16, #tpu.memory_space<vmem>>, %arg8: memref<1x128xf32, #tpu.memory_space<vmem>>, %arg9: memref<1x128xf32, #tpu.memory_space<vmem>>, %arg10: memref<128x384xbf16, #tpu.memory_space<vmem>>, %arg11: memref<1x384xf32, #tpu.memory_space<vmem>>, %arg12: memref<1x384xf32, #tpu.memory_space<vmem>>, %arg13: memref<1x128xf32, #tpu.memory_space<vmem>>, %arg14: memref<128x128xbf16, #tpu.memory_space<vmem>>, %arg15: memref<1x128xf32, #tpu.memory_space<vmem>>, %arg16: memref<8x128xf32, #tpu.memory_space<vmem>>, %arg17: memref<8x128xf32, #tpu.memory_space<vmem>>) attributes {dimension_semantics = [#tpu.dimension_semantics<parallel>], iteration_bounds = array<i64: 1>, scalar_prefetch = 0 : i64, scratch_operands = 0 : i64, tpu.core_type = #tpu.core_type<tc>, window_params = [{transform_indices = @transform_0, window_bounds = array<i64: 8, 8, 128>}, {transform_indices = @transform_1, window_bounds = array<i64: 8, 128>}, {transform_indices = @transform_2, window_bounds = array<i64: 8, 128>}, {transform_indices = @transform_3, window_bounds = array<i64: 8, 8>}, {transform_indices = @transform_4, window_bounds = array<i64: 8, 8>}, {pipeline_mode = #tpu.pipeline_mode<synchronous>, transform_indices = @transform_5, window_bounds = array<i64: 128, 256>}, {pipeline_mode = #tpu.pipeline_mode<synchronous>, transform_indices = @transform_6, window_bounds = array<i64: 128, 512>}, {pipeline_mode = #tpu.pipeline_mode<synchronous>, transform_indices = @transform_7, window_bounds = array<i64: 1, 128>}, {pipeline_mode = #tpu.pipeline_mode<synchronous>, transform_indices = @transform_8, window_bounds = array<i64: 1, 128>}, {pipeline_mode = #tpu.pipeline_mode<synchronous>, transform_indices = @transform_9, window_bounds = array<i64: 128, 384>}, {pipeline_mode = #tpu.pipeline_mode<synchronous>, transform_indices = @transform_10, window_bounds = array<i64: 1, 384>}, {pipeline_mode = #tpu.pipeline_mode<synchronous>, transform_indices = @transform_11, window_bounds = array<i64: 1, 384>}, {pipeline_mode = #tpu.pipeline_mode<synchronous>, transform_indices = @transform_12, window_bounds = array<i64: 1, 128>}, {pipeline_mode = #tpu.pipeline_mode<synchronous>, transform_indices = @transform_13, window_bounds = array<i64: 128, 128>}, {pipeline_mode = #tpu.pipeline_mode<synchronous>, transform_indices = @transform_14, window_bounds = array<i64: 1, 128>}, {transform_indices = @transform_15, window_bounds = array<i64: 8, 128>}, {transform_indices = @transform_16, window_bounds = array<i64: 8, 128>}]} {
    %c0 = arith.constant 0 : index
    %c0_0 = arith.constant 0 : index
    %c0_1 = arith.constant 0 : index
    %0 = vector.load %arg1[%c0, %c0_0, %c0_1] : memref<8x8x128xf32, #tpu.memory_space<vmem>>, vector<8x8x128xf32>
    %c0_2 = arith.constant 0 : index
    %c0_3 = arith.constant 0 : index
    %1 = vector.load %arg2[%c0_2, %c0_3] : memref<8x128xf32, #tpu.memory_space<vmem>>, vector<8x128xf32>
    %2 = tpu.iota {dimensions = array<i32: 1>} : vector<8x8xi32>
    %c8_i32 = arith.constant 8 : i32
    %3 = vector.broadcast %c8_i32 : i32 to vector<8x8xi32>
    %4 = arith.cmpi slt, %2, %3 : vector<8x8xi32>
    %5 = vector.shape_cast %0 : vector<8x8x128xf32> to vector<64x128xf32>
    %6 = arith.truncf %5 : vector<64x128xf32> to vector<64x128xbf16>
    %c0_4 = arith.constant 0 : index
    %c0_5 = arith.constant 0 : index
    %7 = vector.load %arg6[%c0_4, %c0_5] : memref<128x256xbf16, #tpu.memory_space<vmem>>, vector<128x256xbf16>
    %cst = arith.constant dense<0.000000e+00> : vector<64x256xf32>
    %8 = tpu.matmul %6, %7, %cst {dimension_numbers = #tpu.dot_dimension_numbers<[1], [0], [0], [1], [0, 0, 1, 1], [], []>} : vector<64x128xbf16>, vector<128x256xbf16>, vector<64x256xf32> -> vector<64x256xf32>
    %9 = vector.extract_strided_slice %8 {offsets = [0, 0], sizes = [64, 128], strides = [1, 1]} : vector<64x256xf32> to vector<64x128xf32>
    %10 = vector.shape_cast %9 : vector<64x128xf32> to vector<8x8x128xf32>
    %11 = vector.extract_strided_slice %8 {offsets = [0, 128], sizes = [64, 128], strides = [1, 1]} : vector<64x256xf32> to vector<64x128xf32>
    %12 = vector.shape_cast %11 : vector<64x128xf32> to vector<8x8x128xf32>
    %13 = arith.truncf %1 : vector<8x128xf32> to vector<8x128xbf16>
    %c0_6 = arith.constant 0 : index
    %c0_7 = arith.constant 0 : index
    %14 = vector.load %arg7[%c0_6, %c0_7] : memref<128x512xbf16, #tpu.memory_space<vmem>>, vector<128x512xbf16>
    %cst_8 = arith.constant dense<0.000000e+00> : vector<8x512xf32>
    %15 = tpu.matmul %13, %14, %cst_8 {dimension_numbers = #tpu.dot_dimension_numbers<[1], [0], [0], [1], [0, 0, 1, 1], [], []>} : vector<8x128xbf16>, vector<128x512xbf16>, vector<8x512xf32> -> vector<8x512xf32>
    %16 = vector.extract_strided_slice %15 {offsets = [0, 0], sizes = [8, 128], strides = [1, 1]} : vector<8x512xf32> to vector<8x128xf32>
    %17 = vector.extract_strided_slice %15 {offsets = [0, 128], sizes = [8, 384], strides = [1, 1]} : vector<8x512xf32> to vector<8x384xf32>
    %c0_9 = arith.constant 0 : index
    %c0_10 = arith.constant 0 : index
    %18 = vector.load %arg12[%c0_9, %c0_10] : memref<1x384xf32, #tpu.memory_space<vmem>>, vector<1x384xf32>
    %19 = vector.broadcast %18 : vector<1x384xf32> to vector<8x384xf32>
    %20 = arith.addf %17, %19 : vector<8x384xf32>
    %21 = vector.shape_cast %16 : vector<8x128xf32> to vector<8x1x128xf32>
    %22 = vector.broadcast %21 : vector<8x1x128xf32> to vector<8x8x128xf32>
    %23 = arith.addf %22, %10 : vector<8x8x128xf32>
    %c0_11 = arith.constant 0 : index
    %c0_12 = arith.constant 0 : index
    %24 = vector.load %arg8[%c0_11, %c0_12] : memref<1x128xf32, #tpu.memory_space<vmem>>, vector<1x128xf32>
    %25 = vector.shape_cast %24 : vector<1x128xf32> to vector<1x1x128xf32>
    %26 = vector.broadcast %25 : vector<1x1x128xf32> to vector<8x8x128xf32>
    %27 = arith.addf %23, %26 : vector<8x8x128xf32>
    %28 = math.tanh %27 : vector<8x8x128xf32>
    %c0_13 = arith.constant 0 : index
    %c0_14 = arith.constant 0 : index
    %29 = vector.load %arg9[%c0_13, %c0_14] : memref<1x128xf32, #tpu.memory_space<vmem>>, vector<1x128xf32>
    %30 = vector.shape_cast %29 : vector<1x128xf32> to vector<1x1x128xf32>
    %31 = vector.broadcast %30 : vector<1x1x128xf32> to vector<8x8x128xf32>
    %32 = arith.mulf %28, %31 : vector<8x8x128xf32>
    %cst_15 = arith.constant dense<0.000000e+00> : vector<8x8xf32>
    %33 = vector.multi_reduction <add>, %32, %cst_15 [2] : vector<8x8x128xf32> to vector<8x8xf32>
    %cst_16 = arith.constant -1.000000e+30 : f32
    %34 = vector.broadcast %cst_16 : f32 to vector<8x8xf32>
    %35 = arith.select %4, %33, %34 : vector<8x8xi1>, vector<8x8xf32>
    %cst_17 = arith.constant dense<0xFF800000> : vector<8xf32>
    %36 = vector.multi_reduction <maximumf>, %35, %cst_17 [1] : vector<8x8xf32> to vector<8xf32>
    %37 = vector.shape_cast %36 : vector<8xf32> to vector<8x1xf32>
    %38 = vector.broadcast %37 : vector<8x1xf32> to vector<8x8xf32>
    %39 = arith.subf %35, %38 : vector<8x8xf32>
    %40 = math.exp %39 : vector<8x8xf32>
    %cst_18 = arith.constant dense<0.000000e+00> : vector<8xf32>
    %41 = vector.multi_reduction <add>, %40, %cst_18 [1] : vector<8x8xf32> to vector<8xf32>
    %42 = vector.shape_cast %41 : vector<8xf32> to vector<8x1xf32>
    %43 = tpu.reciprocal %42 {approx = true} : vector<8x1xf32> -> vector<8x1xf32>
    %44 = vector.broadcast %43 : vector<8x1xf32> to vector<8x8xf32>
    %45 = arith.mulf %40, %44 : vector<8x8xf32>
    %46 = vector.shape_cast %45 : vector<8x8xf32> to vector<8x8x1xf32>
    %47 = vector.broadcast %46 : vector<8x8x1xf32> to vector<8x8x128xf32>
    %48 = arith.mulf %47, %0 : vector<8x8x128xf32>
    %cst_19 = arith.constant dense<0.000000e+00> : vector<8x128xf32>
    %49 = vector.multi_reduction <add>, %48, %cst_19 [1] : vector<8x8x128xf32> to vector<8x128xf32>
    %c0_20 = arith.constant 0 : index
    %c0_21 = arith.constant 0 : index
    %50 = vector.load %arg3[%c0_20, %c0_21] : memref<8x128xf32, #tpu.memory_space<vmem>>, vector<8x128xf32>
    %51 = arith.addf %50, %49 : vector<8x128xf32>
    %52 = arith.truncf %51 : vector<8x128xf32> to vector<8x128xbf16>
    %c0_22 = arith.constant 0 : index
    %c0_23 = arith.constant 0 : index
    %53 = vector.load %arg10[%c0_22, %c0_23] : memref<128x384xbf16, #tpu.memory_space<vmem>>, vector<128x384xbf16>
    %cst_24 = arith.constant dense<0.000000e+00> : vector<8x384xf32>
    %54 = tpu.matmul %52, %53, %cst_24 {dimension_numbers = #tpu.dot_dimension_numbers<[1], [0], [0], [1], [0, 0, 1, 1], [], []>} : vector<8x128xbf16>, vector<128x384xbf16>, vector<8x384xf32> -> vector<8x384xf32>
    %c0_25 = arith.constant 0 : index
    %c0_26 = arith.constant 0 : index
    %55 = vector.load %arg11[%c0_25, %c0_26] : memref<1x384xf32, #tpu.memory_space<vmem>>, vector<1x384xf32>
    %56 = vector.broadcast %55 : vector<1x384xf32> to vector<8x384xf32>
    %57 = arith.addf %54, %56 : vector<8x384xf32>
    %58 = vector.extract_strided_slice %57 {offsets = [0, 0], sizes = [8, 128], strides = [1, 1]} : vector<8x384xf32> to vector<8x128xf32>
    %59 = vector.extract_strided_slice %20 {offsets = [0, 0], sizes = [8, 128], strides = [1, 1]} : vector<8x384xf32> to vector<8x128xf32>
    %60 = arith.addf %58, %59 : vector<8x128xf32>
    %61 = arith.negf %60 : vector<8x128xf32>
    %62 = math.exp %61 : vector<8x128xf32>
    %cst_27 = arith.constant 1.000000e+00 : f32
    %63 = vector.broadcast %cst_27 : f32 to vector<8x128xf32>
    %64 = arith.addf %63, %62 : vector<8x128xf32>
    %65 = arith.divf %63, %64 : vector<8x128xf32>
    %66 = vector.extract_strided_slice %57 {offsets = [0, 128], sizes = [8, 128], strides = [1, 1]} : vector<8x384xf32> to vector<8x128xf32>
    %67 = vector.extract_strided_slice %20 {offsets = [0, 128], sizes = [8, 128], strides = [1, 1]} : vector<8x384xf32> to vector<8x128xf32>
    %68 = arith.addf %66, %67 : vector<8x128xf32>
    %69 = arith.negf %68 : vector<8x128xf32>
    %70 = math.exp %69 : vector<8x128xf32>
    %cst_28 = arith.constant 1.000000e+00 : f32
    %71 = vector.broadcast %cst_28 : f32 to vector<8x128xf32>
    %72 = arith.addf %71, %70 : vector<8x128xf32>
    %73 = arith.divf %71, %72 : vector<8x128xf32>
    %74 = vector.extract_strided_slice %57 {offsets = [0, 256], sizes = [8, 128], strides = [1, 1]} : vector<8x384xf32> to vector<8x128xf32>
    %75 = vector.extract_strided_slice %20 {offsets = [0, 256], sizes = [8, 128], strides = [1, 1]} : vector<8x384xf32> to vector<8x128xf32>
    %76 = arith.mulf %65, %75 : vector<8x128xf32>
    %77 = arith.addf %74, %76 : vector<8x128xf32>
    %78 = math.tanh %77 : vector<8x128xf32>
    %cst_29 = arith.constant 1.000000e+00 : f32
    %79 = vector.broadcast %cst_29 : f32 to vector<8x128xf32>
    %80 = arith.subf %79, %73 : vector<8x128xf32>
    %81 = arith.mulf %80, %78 : vector<8x128xf32>
    %82 = arith.mulf %73, %1 : vector<8x128xf32>
    %83 = arith.addf %81, %82 : vector<8x128xf32>
    %84 = tpu.iota {dimensions = array<i32: 0>} : vector<128x128xi32>
    %85 = tpu.iota {dimensions = array<i32: 1>} : vector<128x128xi32>
    %c32_i32 = arith.constant 32 : i32
    %86 = vector.broadcast %c32_i32 : i32 to vector<128x128xi32>
    %87 = arith.addi %84, %86 : vector<128x128xi32>
    %88 = arith.cmpi eq, %85, %87 : vector<128x128xi32>
    %c32_i32_30 = arith.constant 32 : i32
    %89 = vector.broadcast %c32_i32_30 : i32 to vector<128x128xi32>
    %90 = arith.cmpi slt, %84, %89 : vector<128x128xi32>
    %91 = arith.andi %88, %90 : vector<128x128xi1>
    %cst_31 = arith.constant 1.000000e+00 : f32
    %cst_32 = arith.constant 0.000000e+00 : f32
    %92 = vector.broadcast %cst_31 : f32 to vector<128x128xf32>
    %93 = vector.broadcast %cst_32 : f32 to vector<128x128xf32>
    %94 = arith.select %91, %92, %93 : vector<128x128xi1>, vector<128x128xf32>
    %cst_33 = arith.constant dense<0.000000e+00> : vector<8x128xf32>
    %95 = tpu.matmul %49, %94, %cst_33 {dimension_numbers = #tpu.dot_dimension_numbers<[1], [0], [0], [1], [0, 0, 1, 1], [], []>} : vector<8x128xf32>, vector<128x128xf32>, vector<8x128xf32> -> vector<8x128xf32>
    %96 = arith.addf %83, %95 : vector<8x128xf32>
    %97 = arith.truncf %96 : vector<8x128xf32> to vector<8x128xbf16>
    %c0_34 = arith.constant 0 : index
    %c0_35 = arith.constant 0 : index
    %98 = vector.load %arg14[%c0_34, %c0_35] : memref<128x128xbf16, #tpu.memory_space<vmem>>, vector<128x128xbf16>
    %cst_36 = arith.constant dense<0.000000e+00> : vector<8x128xf32>
    %99 = tpu.matmul %97, %98, %cst_36 {dimension_numbers = #tpu.dot_dimension_numbers<[1], [0], [0], [1], [0, 0, 1, 1], [], []>} : vector<8x128xbf16>, vector<128x128xbf16>, vector<8x128xf32> -> vector<8x128xf32>
    %c0_37 = arith.constant 0 : index
    %c0_38 = arith.constant 0 : index
    %100 = vector.load %arg15[%c0_37, %c0_38] : memref<1x128xf32, #tpu.memory_space<vmem>>, vector<1x128xf32>
    %101 = vector.broadcast %100 : vector<1x128xf32> to vector<8x128xf32>
    %102 = arith.addf %99, %101 : vector<8x128xf32>
    %c0_39 = arith.constant 0 : index
    %c0_40 = arith.constant 0 : index
    %103 = vector.load %arg13[%c0_39, %c0_40] : memref<1x128xf32, #tpu.memory_space<vmem>>, vector<1x128xf32>
    %104 = vector.shape_cast %103 : vector<1x128xf32> to vector<1x1x128xf32>
    %105 = vector.broadcast %104 : vector<1x1x128xf32> to vector<8x8x128xf32>
    %106 = arith.addf %12, %105 : vector<8x8x128xf32>
    %107 = math.tanh %106 : vector<8x8x128xf32>
    %108 = vector.shape_cast %83 : vector<8x128xf32> to vector<8x1x128xf32>
    %109 = vector.broadcast %108 : vector<8x1x128xf32> to vector<8x8x128xf32>
    %110 = arith.mulf %107, %109 : vector<8x8x128xf32>
    %cst_41 = arith.constant dense<0.000000e+00> : vector<8x8xf32>
    %111 = vector.multi_reduction <add>, %110, %cst_41 [2] : vector<8x8x128xf32> to vector<8x8xf32>
    %cst_42 = arith.constant -1.000000e+30 : f32
    %112 = vector.broadcast %cst_42 : f32 to vector<8x8xf32>
    %113 = arith.select %4, %111, %112 : vector<8x8xi1>, vector<8x8xf32>
    %cst_43 = arith.constant dense<0xFF800000> : vector<8xf32>
    %114 = vector.multi_reduction <maximumf>, %113, %cst_43 [1] : vector<8x8xf32> to vector<8xf32>
    %115 = vector.shape_cast %114 : vector<8xf32> to vector<8x1xf32>
    %116 = vector.broadcast %115 : vector<8x1xf32> to vector<8x8xf32>
    %117 = arith.subf %113, %116 : vector<8x8xf32>
    %118 = math.exp %117 : vector<8x8xf32>
    %c0_44 = arith.constant 0 : index
    %c0_45 = arith.constant 0 : index
    %119 = vector.load %arg5[%c0_44, %c0_45] : memref<8x8xf32, #tpu.memory_space<vmem>>, vector<8x8xf32>
    %120 = arith.mulf %118, %119 : vector<8x8xf32>
    %c0_46 = arith.constant 0 : index
    %c0_47 = arith.constant 0 : index
    %121 = vector.load %arg4[%c0_46, %c0_47] : memref<8x8xi32, #tpu.memory_space<vmem>>, vector<8x8xi32>
    %122 = tpu.iota {dimensions = array<i32: 1>} : vector<8x128xi32>
    %cst_48 = arith.constant 0.000000e+00 : f32
    %123 = vector.broadcast %cst_48 : f32 to vector<8x128xf32>
    %124 = vector.extract_strided_slice %121 {offsets = [0, 0], sizes = [8, 1], strides = [1, 1]} : vector<8x8xi32> to vector<8x1xi32>
    %125 = vector.broadcast %124 : vector<8x1xi32> to vector<8x128xi32>
    %126 = arith.cmpi eq, %125, %122 : vector<8x128xi32>
    %127 = vector.extract_strided_slice %120 {offsets = [0, 0], sizes = [8, 1], strides = [1, 1]} : vector<8x8xf32> to vector<8x1xf32>
    %cst_49 = arith.constant 0.000000e+00 : f32
    %128 = vector.shape_cast %127 : vector<8x1xf32> to vector<8x1xf32>
    %129 = vector.broadcast %128 : vector<8x1xf32> to vector<8x128xf32>
    %130 = vector.broadcast %cst_49 : f32 to vector<8x128xf32>
    %131 = arith.select %126, %129, %130 : vector<8x128xi1>, vector<8x128xf32>
    %132 = arith.addf %123, %131 : vector<8x128xf32>
    %133 = vector.extract_strided_slice %121 {offsets = [0, 1], sizes = [8, 1], strides = [1, 1]} : vector<8x8xi32> to vector<8x1xi32>
    %134 = vector.broadcast %133 : vector<8x1xi32> to vector<8x128xi32>
    %135 = arith.cmpi eq, %134, %122 : vector<8x128xi32>
    %136 = vector.extract_strided_slice %120 {offsets = [0, 1], sizes = [8, 1], strides = [1, 1]} : vector<8x8xf32> to vector<8x1xf32>
    %cst_50 = arith.constant 0.000000e+00 : f32
    %137 = vector.shape_cast %136 : vector<8x1xf32> to vector<8x1xf32>
    %138 = vector.broadcast %137 : vector<8x1xf32> to vector<8x128xf32>
    %139 = vector.broadcast %cst_50 : f32 to vector<8x128xf32>
    %140 = arith.select %135, %138, %139 : vector<8x128xi1>, vector<8x128xf32>
    %141 = arith.addf %132, %140 : vector<8x128xf32>
    %142 = vector.extract_strided_slice %121 {offsets = [0, 2], sizes = [8, 1], strides = [1, 1]} : vector<8x8xi32> to vector<8x1xi32>
    %143 = vector.broadcast %142 : vector<8x1xi32> to vector<8x128xi32>
    %144 = arith.cmpi eq, %143, %122 : vector<8x128xi32>
    %145 = vector.extract_strided_slice %120 {offsets = [0, 2], sizes = [8, 1], strides = [1, 1]} : vector<8x8xf32> to vector<8x1xf32>
    %cst_51 = arith.constant 0.000000e+00 : f32
    %146 = vector.shape_cast %145 : vector<8x1xf32> to vector<8x1xf32>
    %147 = vector.broadcast %146 : vector<8x1xf32> to vector<8x128xf32>
    %148 = vector.broadcast %cst_51 : f32 to vector<8x128xf32>
    %149 = arith.select %144, %147, %148 : vector<8x128xi1>, vector<8x128xf32>
    %150 = arith.addf %141, %149 : vector<8x128xf32>
    %151 = vector.extract_strided_slice %121 {offsets = [0, 3], sizes = [8, 1], strides = [1, 1]} : vector<8x8xi32> to vector<8x1xi32>
    %152 = vector.broadcast %151 : vector<8x1xi32> to vector<8x128xi32>
    %153 = arith.cmpi eq, %152, %122 : vector<8x128xi32>
    %154 = vector.extract_strided_slice %120 {offsets = [0, 3], sizes = [8, 1], strides = [1, 1]} : vector<8x8xf32> to vector<8x1xf32>
    %cst_52 = arith.constant 0.000000e+00 : f32
    %155 = vector.shape_cast %154 : vector<8x1xf32> to vector<8x1xf32>
    %156 = vector.broadcast %155 : vector<8x1xf32> to vector<8x128xf32>
    %157 = vector.broadcast %cst_52 : f32 to vector<8x128xf32>
    %158 = arith.select %153, %156, %157 : vector<8x128xi1>, vector<8x128xf32>
    %159 = arith.addf %150, %158 : vector<8x128xf32>
    %160 = vector.extract_strided_slice %121 {offsets = [0, 4], sizes = [8, 1], strides = [1, 1]} : vector<8x8xi32> to vector<8x1xi32>
    %161 = vector.broadcast %160 : vector<8x1xi32> to vector<8x128xi32>
    %162 = arith.cmpi eq, %161, %122 : vector<8x128xi32>
    %163 = vector.extract_strided_slice %120 {offsets = [0, 4], sizes = [8, 1], strides = [1, 1]} : vector<8x8xf32> to vector<8x1xf32>
    %cst_53 = arith.constant 0.000000e+00 : f32
    %164 = vector.shape_cast %163 : vector<8x1xf32> to vector<8x1xf32>
    %165 = vector.broadcast %164 : vector<8x1xf32> to vector<8x128xf32>
    %166 = vector.broadcast %cst_53 : f32 to vector<8x128xf32>
    %167 = arith.select %162, %165, %166 : vector<8x128xi1>, vector<8x128xf32>
    %168 = arith.addf %159, %167 : vector<8x128xf32>
    %169 = vector.extract_strided_slice %121 {offsets = [0, 5], sizes = [8, 1], strides = [1, 1]} : vector<8x8xi32> to vector<8x1xi32>
    %170 = vector.broadcast %169 : vector<8x1xi32> to vector<8x128xi32>
    %171 = arith.cmpi eq, %170, %122 : vector<8x128xi32>
    %172 = vector.extract_strided_slice %120 {offsets = [0, 5], sizes = [8, 1], strides = [1, 1]} : vector<8x8xf32> to vector<8x1xf32>
    %cst_54 = arith.constant 0.000000e+00 : f32
    %173 = vector.shape_cast %172 : vector<8x1xf32> to vector<8x1xf32>
    %174 = vector.broadcast %173 : vector<8x1xf32> to vector<8x128xf32>
    %175 = vector.broadcast %cst_54 : f32 to vector<8x128xf32>
    %176 = arith.select %171, %174, %175 : vector<8x128xi1>, vector<8x128xf32>
    %177 = arith.addf %168, %176 : vector<8x128xf32>
    %178 = vector.extract_strided_slice %121 {offsets = [0, 6], sizes = [8, 1], strides = [1, 1]} : vector<8x8xi32> to vector<8x1xi32>
    %179 = vector.broadcast %178 : vector<8x1xi32> to vector<8x128xi32>
    %180 = arith.cmpi eq, %179, %122 : vector<8x128xi32>
    %181 = vector.extract_strided_slice %120 {offsets = [0, 6], sizes = [8, 1], strides = [1, 1]} : vector<8x8xf32> to vector<8x1xf32>
    %cst_55 = arith.constant 0.000000e+00 : f32
    %182 = vector.shape_cast %181 : vector<8x1xf32> to vector<8x1xf32>
    %183 = vector.broadcast %182 : vector<8x1xf32> to vector<8x128xf32>
    %184 = vector.broadcast %cst_55 : f32 to vector<8x128xf32>
    %185 = arith.select %180, %183, %184 : vector<8x128xi1>, vector<8x128xf32>
    %186 = arith.addf %177, %185 : vector<8x128xf32>
    %187 = vector.extract_strided_slice %121 {offsets = [0, 7], sizes = [8, 1], strides = [1, 1]} : vector<8x8xi32> to vector<8x1xi32>
    %188 = vector.broadcast %187 : vector<8x1xi32> to vector<8x128xi32>
    %189 = arith.cmpi eq, %188, %122 : vector<8x128xi32>
    %190 = vector.extract_strided_slice %120 {offsets = [0, 7], sizes = [8, 1], strides = [1, 1]} : vector<8x8xf32> to vector<8x1xf32>
    %cst_56 = arith.constant 0.000000e+00 : f32
    %191 = vector.shape_cast %190 : vector<8x1xf32> to vector<8x1xf32>
    %192 = vector.broadcast %191 : vector<8x1xf32> to vector<8x128xf32>
    %193 = vector.broadcast %cst_56 : f32 to vector<8x128xf32>
    %194 = arith.select %189, %192, %193 : vector<8x128xi1>, vector<8x128xf32>
    %195 = arith.addf %186, %194 : vector<8x128xf32>
    %cst_57 = arith.constant dense<0.000000e+00> : vector<8xf32>
    %196 = vector.multi_reduction <add>, %118, %cst_57 [1] : vector<8x8xf32> to vector<8xf32>
    %197 = vector.shape_cast %196 : vector<8xf32> to vector<8x1xf32>
    %cst_58 = arith.constant 1.000000e+00 : f32
    %198 = vector.broadcast %cst_58 : f32 to vector<8x128xf32>
    %199 = arith.mulf %195, %198 : vector<8x128xf32>
    %cst_59 = arith.constant 1.000000e-10 : f32
    %200 = vector.broadcast %cst_59 : f32 to vector<8x1xf32>
    %201 = arith.mulf %200, %197 : vector<8x1xf32>
    %202 = vector.broadcast %201 : vector<8x1xf32> to vector<8x128xf32>
    %203 = arith.addf %199, %202 : vector<8x128xf32>
    %c40_i32 = arith.constant 40 : i32
    %204 = vector.broadcast %c40_i32 : i32 to vector<8x128xi32>
    %205 = arith.cmpi slt, %122, %204 : vector<8x128xi32>
    %cst_60 = arith.constant 0.000000e+00 : f32
    %206 = vector.broadcast %cst_60 : f32 to vector<8x128xf32>
    %207 = arith.select %205, %203, %206 : vector<8x128xi1>, vector<8x128xf32>
    %cst_61 = arith.constant dense<0xFF800000> : vector<8xf32>
    %208 = vector.multi_reduction <maximumf>, %102, %cst_61 [1] : vector<8x128xf32> to vector<8xf32>
    %209 = vector.shape_cast %208 : vector<8xf32> to vector<8x1xf32>
    %cst_62 = arith.constant dense<0xFF800000> : vector<8xf32>
    %210 = vector.multi_reduction <maximumf>, %207, %cst_62 [1] : vector<8x128xf32> to vector<8xf32>
    %211 = vector.shape_cast %210 : vector<8xf32> to vector<8x1xf32>
    %212 = math.log %211 : vector<8x1xf32>
    %213 = arith.addf %115, %212 : vector<8x1xf32>
    %214 = arith.maximumf %209, %213 : vector<8x1xf32>
    %215 = vector.broadcast %214 : vector<8x1xf32> to vector<8x128xf32>
    %216 = arith.subf %102, %215 : vector<8x128xf32>
    %217 = math.exp %216 : vector<8x128xf32>
    %218 = arith.subf %115, %214 : vector<8x1xf32>
    %219 = math.exp %218 : vector<8x1xf32>
    %220 = vector.broadcast %219 : vector<8x1xf32> to vector<8x128xf32>
    %221 = arith.mulf %207, %220 : vector<8x128xf32>
    %cst_63 = arith.constant dense<0.000000e+00> : vector<8xf32>
    %222 = vector.multi_reduction <add>, %217, %cst_63 [1] : vector<8x128xf32> to vector<8xf32>
    %223 = vector.shape_cast %222 : vector<8xf32> to vector<8x1xf32>
    %cst_64 = arith.constant dense<0.000000e+00> : vector<8xf32>
    %224 = vector.multi_reduction <add>, %221, %cst_64 [1] : vector<8x128xf32> to vector<8xf32>
    %225 = vector.shape_cast %224 : vector<8xf32> to vector<8x1xf32>
    %226 = arith.addf %223, %225 : vector<8x1xf32>
    %c0_65 = arith.constant 0 : index
    %c0_66 = arith.constant 0 : index
    %227 = vector.load %arg16[%c0_65, %c0_66] : memref<8x128xf32, #tpu.memory_space<vmem>>, vector<8x128xf32>
    tpu.vector_store %arg16[%c0_65, %c0_66], %83 {strides = array<i32>} : memref<8x128xf32, #tpu.memory_space<vmem>>, vector<8x128xf32>,
    %228 = arith.addf %217, %221 : vector<8x128xf32>
    %229 = vector.broadcast %226 : vector<8x1xf32> to vector<8x128xf32>
    %230 = arith.divf %228, %229 : vector<8x128xf32>
    %c0_67 = arith.constant 0 : index
    %c0_68 = arith.constant 0 : index
    %231 = vector.load %arg17[%c0_67, %c0_68] : memref<8x128xf32, #tpu.memory_space<vmem>>, vector<8x128xf32>
    tpu.vector_store %arg17[%c0_67, %c0_68], %230 {strides = array<i32>} : memref<8x128xf32, #tpu.memory_space<vmem>>, vector<8x128xf32>,
    return
  }
  func.func @transform_0(%arg0: i32) -> (i32, i32, i32) {
    %c0_i32 = arith.constant 0 : i32
    %c0_i32_0 = arith.constant 0 : i32
    %c0_i32_1 = arith.constant 0 : i32
    return %arg0, %c0_i32, %c0_i32_0 : i32, i32, i32
  }
  func.func @transform_1(%arg0: i32) -> (i32, i32) {
    %c0_i32 = arith.constant 0 : i32
    %c0_i32_0 = arith.constant 0 : i32
    return %arg0, %c0_i32 : i32, i32
  }
  func.func @transform_2(%arg0: i32) -> (i32, i32) {
    %c0_i32 = arith.constant 0 : i32
    %c0_i32_0 = arith.constant 0 : i32
    return %arg0, %c0_i32 : i32, i32
  }
  func.func @transform_3(%arg0: i32) -> (i32, i32) {
    %c0_i32 = arith.constant 0 : i32
    %c0_i32_0 = arith.constant 0 : i32
    return %arg0, %c0_i32 : i32, i32
  }
  func.func @transform_4(%arg0: i32) -> (i32, i32) {
    %c0_i32 = arith.constant 0 : i32
    %c0_i32_0 = arith.constant 0 : i32
    return %arg0, %c0_i32 : i32, i32
  }
  func.func @transform_5(%arg0: i32) -> (i32, i32) {
    %c0_i32 = arith.constant 0 : i32
    %c0_i32_0 = arith.constant 0 : i32
    %c0_i32_1 = arith.constant 0 : i32
    return %c0_i32, %c0_i32_0 : i32, i32
  }
  func.func @transform_6(%arg0: i32) -> (i32, i32) {
    %c0_i32 = arith.constant 0 : i32
    %c0_i32_0 = arith.constant 0 : i32
    %c0_i32_1 = arith.constant 0 : i32
    return %c0_i32, %c0_i32_0 : i32, i32
  }
  func.func @transform_7(%arg0: i32) -> (i32, i32) {
    %c0_i32 = arith.constant 0 : i32
    %c0_i32_0 = arith.constant 0 : i32
    %c0_i32_1 = arith.constant 0 : i32
    return %c0_i32, %c0_i32_0 : i32, i32
  }
  func.func @transform_8(%arg0: i32) -> (i32, i32) {
    %c0_i32 = arith.constant 0 : i32
    %c0_i32_0 = arith.constant 0 : i32
    %c0_i32_1 = arith.constant 0 : i32
    return %c0_i32, %c0_i32_0 : i32, i32
  }
  func.func @transform_9(%arg0: i32) -> (i32, i32) {
    %c0_i32 = arith.constant 0 : i32
    %c0_i32_0 = arith.constant 0 : i32
    %c0_i32_1 = arith.constant 0 : i32
    return %c0_i32, %c0_i32_0 : i32, i32
  }
  func.func @transform_10(%arg0: i32) -> (i32, i32) {
    %c0_i32 = arith.constant 0 : i32
    %c0_i32_0 = arith.constant 0 : i32
    %c0_i32_1 = arith.constant 0 : i32
    return %c0_i32, %c0_i32_0 : i32, i32
  }
  func.func @transform_11(%arg0: i32) -> (i32, i32) {
    %c0_i32 = arith.constant 0 : i32
    %c0_i32_0 = arith.constant 0 : i32
    %c0_i32_1 = arith.constant 0 : i32
    return %c0_i32, %c0_i32_0 : i32, i32
  }
  func.func @transform_12(%arg0: i32) -> (i32, i32) {
    %c0_i32 = arith.constant 0 : i32
    %c0_i32_0 = arith.constant 0 : i32
    %c0_i32_1 = arith.constant 0 : i32
    return %c0_i32, %c0_i32_0 : i32, i32
  }
  func.func @transform_13(%arg0: i32) -> (i32, i32) {
    %c0_i32 = arith.constant 0 : i32
    %c0_i32_0 = arith.constant 0 : i32
    %c0_i32_1 = arith.constant 0 : i32
    return %c0_i32, %c0_i32_0 : i32, i32
  }
  func.func @transform_14(%arg0: i32) -> (i32, i32) {
    %c0_i32 = arith.constant 0 : i32
    %c0_i32_0 = arith.constant 0 : i32
    %c0_i32_1 = arith.constant 0 : i32
    return %c0_i32, %c0_i32_0 : i32, i32
  }
  func.func @transform_15(%arg0: i32) -> (i32, i32) {
    %c0_i32 = arith.constant 0 : i32
    %c0_i32_0 = arith.constant 0 : i32
    return %arg0, %c0_i32 : i32, i32
  }
  func.func @transform_16(%arg0: i32) -> (i32, i32) {
    %c0_i32 = arith.constant 0 : i32
    %c0_i32_0 = arith.constant 0 : i32
    return %arg0, %c0_i32 : i32, i32
  }
}

</mosaic_0001>

<bundles_post_ra>
// kernel: tpu_custom_call.1
= control target key start
LH: loop header
LB: loop body
LE: loop exit
PB: predicated region body
PF: predicated region fallthrough
CT: control target
= control target key end

     0   :  { %s3025_s0 = inlined_call_operand.hbm [shape: f32[8,8,128], index: 0, kind: input, shape index: {}]   ;;  %s3026_s1 = inlined_call_operand.hbm [shape: f32[8,128], index: 1, kind: input, shape index: {}]   ;;  %s3027_s2 = inlined_call_operand.hbm [shape: f32[8,128], index: 2, kind: input, shape index: {}]   ;;  %s3028_s3 = inlined_call_operand.vmem [shape: s32[8,8], index: 3, kind: input, shape index: {}]   ;;  %s3029_s4 = inlined_call_operand.hbm [shape: f32[8,8], index: 4, kind: input, shape index: {}]   ;;  %s3030_s5 = inlined_call_operand.hbm [shape: bf16[128,256], index: 5, kind: input, shape index: {}]   ;;  %s3031_s6 = inlined_call_operand.hbm [shape: bf16[128,512], index: 6, kind: input, shape index: {}]   ;;  %s3032_s7 = inlined_call_operand.vmem [shape: f32[1,128], index: 7, kind: input, shape index: {}]   ;;  %s3033_s8 = inlined_call_operand.vmem [shape: f32[1,128], index: 8, kind: input, shape index: {}]   ;;  %s3034_s9 = inlined_call_operand.hbm [shape: bf16[128,384], index: 9, kind: input, shape index: {}]   ;;  %s3035_s10 = inlined_call_operand.vmem [shape: f32[1,384], index: 10, kind: input, shape index: {}]   ;;  %s3036_s11 = inlined_call_operand.vmem [shape: f32[1,384], index: 11, kind: input, shape index: {}]   ;;  %s3037_s12 = inlined_call_operand.vmem [shape: f32[1,128], index: 12, kind: input, shape index: {}]   ;;  %s3038_s13 = inlined_call_operand.hbm [shape: bf16[128,128], index: 13, kind: input, shape index: {}]   ;;  %s3039_s14 = inlined_call_operand.vmem [shape: f32[1,128], index: 14, kind: input, shape index: {}]   ;;  %s3040_s15 = inlined_call_operand.hbm [shape: f32[8,128], index: 15, kind: output, shape index: {0}]   ;;  %s3041_s16 = inlined_call_operand.hbm [shape: f32[8,128], index: 16, kind: output, shape index: {1}]  }
   0x1   :  { %3043 = sst [smem:[#allocation26_spill]] %s3025_s0 }
   0x2   :  { %22 = vsyncpa [#allocation3], 0 }
   0x3   :  { %23 = vsyncpa [#allocation6], 0 }
   0x4   :  { %24 = vsyncpa [#allocation9], 0 }
   0x5   :  { %25 = vsyncpa [#allocation12], 0 }
   0x6   :  { %26 = vsyncpa [#allocation15], 0 }
   0x7   :  { %27 = vsyncpa [#allocation4], 0 }
   0x8   :  { %28 = vsyncpa [#allocation18], 0  ;;  %s2509_s21 = smov [#allocation5]   ;;  %s2510_s23 = smov [#allocation8]  }
   0x9   :  { %s47_s22 = sshll.u32 %s2509_s21, 4  ;;  %s69_s24 = sshll.u32 %s2510_s23, 4  ;;  %s48_s22 = int_to_ptr.vmem [resolvable:$true] %s47_s22  ;;  %s70_s24 = int_to_ptr.vmem [resolvable:$true] %s69_s24 }
   0xa   :  { %s2275_s27 = scalar_lea.hbm %s3026_s1, 128 }
   0xb   :  { %p2276_p0 = scmp.ne.s32.totalorder %s3026_s1, %s2275_s27  ;;  %p2279_p1 = scmp.lt.u32.totalorder %s2275_s27, %s3026_s1 }
   0xd   :  { %p2281_p2 = pnand %p2279_p1, %p2276_p0 }
   0xf   :  { %2284 = shalt.err (!%p2281_p2)
}
  0x10   :  { %s2285_s17 = scalar_lea.vmem %s48_s22, 128  ;;  %p2290_p4 = scmp.lt.s32.totalorder %s48_s22, %s48_s22 }
  0x11   :  { %p2286_p3 = scmp.ne.s32.totalorder %s48_s22, %s2285_s17  ;;  %p2291_p5 = scmp.lt.s32.totalorder %s2285_s17, %s2285_s17 }
  0x13   :  { %p2292_p6 = por %p2291_p5, %p2290_p4 }
  0x15   :  { %p2293_p7 = pnand %p2292_p6, %p2286_p3 }
  0x17   :  { %2296 = shalt.err (!%p2293_p7)
}
  0x18   :  { %50 = dma.hbm_to_vmem [thread:$0]  %s3026_s1, 128, %s48_s22, [#allocation6]  }
  0x19   :  { %s2297_s23 = scalar_lea.hbm %s3029_s4, 128 }
  0x1a   :  { %p2298_p8 = scmp.ne.s32.totalorder %s3029_s4, %s2297_s23  ;;  %p2301_p9 = scmp.lt.u32.totalorder %s2297_s23, %s3029_s4 }
  0x1c   :  { %p2303_p10 = pnand %p2301_p9, %p2298_p8 }
  0x1e   :  { %2306 = shalt.err (!%p2303_p10)
}
  0x1f   :  { %s2307_s29 = scalar_lea.vmem %s70_s24, 128  ;;  %p2312_p12 = scmp.lt.s32.totalorder %s70_s24, %s70_s24 }
  0x20   :  { %p2308_p11 = scmp.ne.s32.totalorder %s70_s24, %s2307_s29  ;;  %p2313_p13 = scmp.lt.s32.totalorder %s2307_s29, %s2307_s29 }
  0x22   :  { %p2314_p0 = por %p2313_p13, %p2312_p12 }
  0x24   :  { %p2315_p1 = pnand %p2314_p0, %p2308_p11 }
  0x26   :  { %2318 = shalt.err (!%p2315_p1)
}
  0x27   :  { %72 = dma.hbm_to_vmem [thread:$0]  %s3029_s4, 128, %s70_s24, [#allocation9]  }
  0x28   :  { %s2511_s30 = smov [#allocation11]   ;;  %s2319_s19 = scalar_lea.hbm %s3031_s6, 4096 }
  0x29   :  { %s90_s0 = sshll.u32 %s2511_s30, 4  ;;  %p2320_p2 = scmp.ne.s32.totalorder %s3031_s6, %s2319_s19  ;;  %s91_s0 = int_to_ptr.vmem [resolvable:$true] %s90_s0 }
  0x2a   :  { %p2323_p3 = scmp.lt.u32.totalorder %s2319_s19, %s3031_s6 }
  0x2c   :  { %p2325_p4 = pnand %p2323_p3, %p2320_p2 }
  0x2e   :  { %2328 = shalt.err (!%p2325_p4)
}
  0x2f   :  { %s2329_s26 = scalar_lea.vmem %s91_s0, 4096  ;;  %p2334_p6 = scmp.lt.s32.totalorder %s91_s0, %s91_s0 }
  0x30   :  { %p2330_p5 = scmp.ne.s32.totalorder %s91_s0, %s2329_s26  ;;  %p2335_p7 = scmp.lt.s32.totalorder %s2329_s26, %s2329_s26 }
  0x32   :  { %p2336_p8 = por %p2335_p7, %p2334_p6 }
  0x34   :  { %p2337_p9 = pnand %p2336_p8, %p2330_p5 }
  0x36   :  { %2340 = shalt.err (!%p2337_p9)
}
  0x37   :  { %s2512_s4 = smov 256   ;;  %s2513_s24 = smov 16  }
  0x38   :  { %96 = dma.hbm_to_vmem [thread:$0]  %s3031_s6, 4096, %s91_s0, [#allocation12], %s2512_s4, %s2512_s4, %s2513_s24  }
  0x39   :  { %s2514_s29 = smov [#allocation2]   ;;  %s3044_s17 = sld [smem:[#allocation26_spill]] }
  0x3a   :  { %s34_s1 = sshll.u32 %s2514_s29, 4  ;;  %s35_s1 = int_to_ptr.vmem [resolvable:$true] %s34_s1 }
  0x3f   :  { %s2341_s18 = scalar_lea.hbm %s3044_s17, 1024 }
  0x40   :  { %p2342_p10 = scmp.ne.s32.totalorder %s3044_s17, %s2341_s18  ;;  %p2345_p11 = scmp.lt.u32.totalorder %s2341_s18, %s3044_s17 }
  0x42   :  { %p2347_p12 = pnand %p2345_p11, %p2342_p10 }
  0x44   :  { %2350 = shalt.err (!%p2347_p12)
}
  0x45   :  { %s2351_s25 = scalar_lea.vmem %s35_s1, 1024  ;;  %p2356_p0 = scmp.lt.s32.totalorder %s35_s1, %s35_s1 }
  0x46   :  { %p2352_p13 = scmp.ne.s32.totalorder %s35_s1, %s2351_s25  ;;  %p2357_p1 = scmp.lt.s32.totalorder %s2351_s25, %s2351_s25 }
  0x48   :  { %p2358_p2 = por %p2357_p1, %p2356_p0 }
  0x4a   :  { %p2359_p3 = pnand %p2358_p2, %p2352_p13 }
  0x4c   :  { %2362 = shalt.err (!%p2359_p3)
}
  0x4d   :  { %s2515_s6 = smov 128   ;;  %s2516_s0 = smov 8  }
  0x4e   :  { %40 = dma.hbm_to_vmem [thread:$0]  %s3044_s17, 1024, %s35_s1, [#allocation3], %s2515_s6, %s2515_s6, %s2516_s0  }
  0x4f   :  { %s2517_s24 = smov [#allocation7]   ;;  %s2518_s28 = smov [#allocation10]  }
  0x50   :  { %s57_s27 = sshll.u32 %s2517_s24, 4  ;;  %s78_s29 = sshll.u32 %s2518_s28, 4  ;;  %s58_s27 = int_to_ptr.vmem [resolvable:$true] %s57_s27  ;;  %s2676_s29 = int_to_ptr.vmem [resolvable:$true] %s78_s29 }
  0x51   :  { %s2363_s18 = scalar_lea.hbm %s3027_s2, 128 }
  0x52   :  { %p2364_p4 = scmp.ne.s32.totalorder %s3027_s2, %s2363_s18  ;;  %p2367_p5 = scmp.lt.u32.totalorder %s2363_s18, %s3027_s2 }
  0x54   :  { %p2369_p6 = pnand %p2367_p5, %p2364_p4 }
  0x56   :  { %2372 = shalt.err (!%p2369_p6)
}
  0x57   :  { %s2373_s1 = scalar_lea.vmem %s58_s27, 128  ;;  %p2378_p8 = scmp.lt.s32.totalorder %s58_s27, %s58_s27 }
  0x58   :  { %p2374_p7 = scmp.ne.s32.totalorder %s58_s27, %s2373_s1  ;;  %p2379_p9 = scmp.lt.s32.totalorder %s2373_s1, %s2373_s1 }
  0x5a   :  { %p2380_p10 = por %p2379_p9, %p2378_p8 }
  0x5c   :  { %p2381_p11 = pnand %p2380_p10, %p2374_p7 }
  0x5e   :  { %2384 = shalt.err (!%p2381_p11)
}
  0x5f   :  { %60 = dma.hbm_to_vmem [thread:$0]  %s3027_s2, 128, %s58_s27, [#allocation6]  }
  0x60   :  { %s2385_s24 = scalar_lea.hbm %s3030_s5, 2048 }
  0x61   :  { %p2386_p12 = scmp.ne.s32.totalorder %s3030_s5, %s2385_s24  ;;  %p2389_p13 = scmp.lt.u32.totalorder %s2385_s24, %s3030_s5 }
  0x63   :  { %p2391_p0 = pnand %p2389_p13, %p2386_p12 }
  0x65   :  { %2394 = shalt.err (!%p2391_p0)
}
  0x66   :  { %s2395_s19 = scalar_lea.vmem %s2676_s29, 2048  ;;  %p2400_p2 = scmp.lt.s32.totalorder %s2676_s29, %s2676_s29 }
  0x67   :  { %p2396_p1 = scmp.ne.s32.totalorder %s2676_s29, %s2395_s19  ;;  %p2401_p3 = scmp.lt.s32.totalorder %s2395_s19, %s2395_s19 }
  0x69   :  { %p2402_p4 = por %p2401_p3, %p2400_p2 }
  0x6b   :  { %p2403_p5 = pnand %p2402_p4, %p2396_p1 }
  0x6d   :  { %2406 = shalt.err (!%p2403_p5)
}
  0x6e   :  { %84 = dma.hbm_to_vmem [thread:$0]  %s3030_s5, 2048, %s2676_s29, [#allocation9], %s2515_s6, %s2515_s6, %s2516_s0  }
  0x6f   :  { %s2519_s20 = smov [#allocation13]   ;;  %s2407_s17 = scalar_lea.hbm %s3034_s9, 3072 }
  0x70   :  { %s106_s21 = sshll.u32 %s2519_s20, 4  ;;  %p2408_p6 = scmp.ne.s32.totalorder %s3034_s9, %s2407_s17  ;;  %s107_s21 = int_to_ptr.vmem [resolvable:$true] %s106_s21 }
  0x71   :  { %p2411_p7 = scmp.lt.u32.totalorder %s2407_s17, %s3034_s9 }
  0x73   :  { %p2413_p8 = pnand %p2411_p7, %p2408_p6 }
  0x75   :  { %2416 = shalt.err (!%p2413_p8)
}
  0x76   :  { %s2417_s28 = scalar_lea.vmem %s107_s21, 3072  ;;  %p2422_p10 = scmp.lt.s32.totalorder %s107_s21, %s107_s21 }
  0x77   :  { %p2418_p9 = scmp.ne.s32.totalorder %s107_s21, %s2417_s28  ;;  %p2423_p11 = scmp.lt.s32.totalorder %s2417_s28, %s2417_s28 }
  0x79   :  { %p2424_p12 = por %p2423_p11, %p2422_p10 }
  0x7b   :  { %p2425_p13 = pnand %p2424_p12, %p2418_p9 }
  0x7d   :  { %2428 = shalt.err (!%p2425_p13)
}
  0x7e   :  { %s2520_s5 = smov 192   ;;  %s2521_s6 = smov 12  }
  0x7f   :  { %112 = dma.hbm_to_vmem [thread:$0]  %s3034_s9, 3072, %s107_s21, [#allocation12], %s2520_s5, %s2520_s5, %s2521_s6  }
  0x80   :  { %s2522_s22 = smov [#allocation14]   ;;  %s2429_s2 = scalar_lea.hbm %s3038_s13, 1024 }
  0x81   :  { %s124_s30 = sshll.u32 %s2522_s22, 4  ;;  %p2430_p0 = scmp.ne.s32.totalorder %s3038_s13, %s2429_s2  ;;  %s125_s30 = int_to_ptr.vmem [resolvable:$true] %s124_s30 }
  0x82   :  { %p2433_p1 = scmp.lt.u32.totalorder %s2429_s2, %s3038_s13 }
  0x84   :  { %p2435_p2 = pnand %p2433_p1, %p2430_p0 }
  0x86   :  { %2438 = shalt.err (!%p2435_p2)
}
  0x87   :  { %s2439_s17 = scalar_lea.vmem %s125_s30, 1024  ;;  %p2444_p4 = scmp.lt.s32.totalorder %s125_s30, %s125_s30 }
  0x88   :  { %p2440_p3 = scmp.ne.s32.totalorder %s125_s30, %s2439_s17  ;;  %p2445_p5 = scmp.lt.s32.totalorder %s2439_s17, %s2439_s17 }
  0x8a   :  { %p2446_p6 = por %p2445_p5, %p2444_p4 }
  0x8c   :  { %p2447_p7 = pnand %p2446_p6, %p2440_p3 }
  0x8e   :  { %2450 = shalt.err (!%p2447_p7)
}
  0x8f   :  { %s2523_s9 = smov 64   ;;  %s2524_s21 = smov 4  }
  0x90   :  { %130 = dma.hbm_to_vmem [thread:$0]  %s3038_s13, 1024, %s125_s30, [#allocation15], %s2523_s9, %s2523_s9, %s2524_s21  }
  0x91   :  { %2495 = dma.done.wait [#allocation3], 1024  }
  0x92   :  { %2496 = vsyncadd [#allocation3], 4294966272 }
  0x93   :  { %2497 = dma.done.wait [#allocation6], 256  }
  0x94   :  { %2498 = vsyncadd [#allocation6], 4294967040 }
  0x95   :  { %2499 = dma.done.wait [#allocation9], 2176  }
  0x96   :  { %2500 = vsyncadd [#allocation9], 4294965120 }
  0x97   :  { %2501 = dma.done.wait [#allocation12], 7168  }
  0x98   :  { %2502 = vsyncadd [#allocation12], 4294960128 }
  0x99   :  { %2503 = dma.done.wait [#allocation15], 1024  }
  0x9a   :  { %2504 = vsyncadd [#allocation15], 4294966272  ;;  %v2525_v0 = vmov 0   ;;  %v2106_v1 = vld [vmem:[#allocation10 + $0x4] ss:$8 sps:$4 sm:$0xff]   ;;  %v2739_v34 = vld [vmem:[#allocation2 + $0x8] sm:$0xff]  ;;  %v167_v47 = vlaneseq }
  0x9b   :  { %302 = vmatprep.mubr.bf16.mxu0 %v2525_v0  ;;  %568 = vmatprep.mubr.bf16.mxu1 %v2525_v0  ;;  %v2108_v2 = vld [vmem:[#allocation11 + $0x4] ss:$16 sps:$4 sm:$0xff]   ;;  %v2110_v3 = vld [vmem:[#allocation10] ss:$8 sps:$4 sm:$0xff]   ;;  %v2116_v7 = vld [vmem:[#allocation10 + $0x10] ss:$8 sps:$4 sm:$0xff]  }
  0x9c   :  { %2089 = vset.pattern.permute.xlu1 %v2525_v0  ;;  %270 = vmatprep.subr.bf16.mxu0 %v2106_v1  ;;  %v2111_v4 = vld [vmem:[#allocation11] ss:$16 sps:$4 sm:$0xff]   ;;  %v2112_v5 = vld [vmem:[#allocation10 + $0x14] ss:$8 sps:$4 sm:$0xff]   ;;  %v2118_v9 = vld [vmem:[#allocation10 + $0x24] ss:$8 sps:$4 sm:$0xff]  }
  0x9d   :  { %536 = vmatprep.subr.bf16.mxu1 %v2108_v2  ;;  %271 = vmatpush1.bf16.msra.mxu0 %v2110_v3  ;;  %v2114_v6 = vld [vmem:[#allocation11 + $0x24] ss:$16 sps:$4 sm:$0xff]   ;;  %v2117_v8 = vld [vmem:[#allocation11 + $0x20] ss:$16 sps:$4 sm:$0xff]   ;;  %v2737_v33 = vld [vmem:[#allocation2] sm:$0xff]  ;;  %v2770_v50 = vshrl.u32 %v167_v47, 7 }
  0x9e   :  { %537 = vmatpush1.bf16.msra.mxu1 %v2111_v4  ;;  %272 = vmatprep.subr.bf16.mxu0 %v2112_v5  ;;  %v2120_v10 = vld [vmem:[#allocation11 + $0x44] ss:$16 sps:$4 sm:$0xff]   ;;  %v2122_v11 = vld [vmem:[#allocation10 + $0x20] ss:$8 sps:$4 sm:$0xff]   ;;  %v2128_v15 = vld [vmem:[#allocation10 + $0x30] ss:$8 sps:$4 sm:$0xff]   ;;  %v170_v36 = vpack.c.bf16 %v2739_v34, %v2737_v33 }
  0x9f   :  { %538 = vmatprep.subr.bf16.mxu1 %v2114_v6  ;;  %v2123_v12 = vld [vmem:[#allocation11 + $0x40] ss:$16 sps:$4 sm:$0xff]   ;;  %v2124_v13 = vld [vmem:[#allocation10 + $0x34] ss:$8 sps:$4 sm:$0xff]   ;;  %v2130_v17 = vld [vmem:[#allocation10 + $0x44] ss:$8 sps:$4 sm:$0xff]  }
  0xa0   :  { %v2126_v14 = vld [vmem:[#allocation11 + $0x64] ss:$16 sps:$4 sm:$0xff]   ;;  %v2129_v16 = vld [vmem:[#allocation11 + $0x60] ss:$16 sps:$4 sm:$0xff]   ;;  %v166_v35 = vld [vmem:[#allocation5] sm:$0xff]  ;;  %v2776_v55 = vsub.s32 0, %v2770_v50 }
  0xa1   :  { %273 = vmatpush1.bf16.msra.mxu0 %v2116_v7  ;;  %v2132_v18 = vld [vmem:[#allocation11 + $0x84] ss:$16 sps:$4 sm:$0xff]   ;;  %v2134_v19 = vld [vmem:[#allocation10 + $0x40] ss:$8 sps:$4 sm:$0xff]   ;;  %v2140_v23 = vld [vmem:[#allocation10 + $0x50] ss:$8 sps:$4 sm:$0xff]   ;;  %v2743_v37 = vpack.c.bf16 %v166_v35, %v166_v35 }
  0xa2   :  { %539 = vmatpush1.bf16.msra.mxu1 %v2117_v8  ;;  %274 = vmatprep.subr.bf16.mxu0 %v2118_v9  ;;  %v2135_v20 = vld [vmem:[#allocation11 + $0x80] ss:$16 sps:$4 sm:$0xff]   ;;  %v2136_v21 = vld [vmem:[#allocation10 + $0x54] ss:$8 sps:$4 sm:$0xff]   ;;  %v2142_v25 = vld [vmem:[#allocation10 + $0x64] ss:$8 sps:$4 sm:$0xff]  }
  0xa3   :  { %540 = vmatprep.subr.bf16.mxu1 %v2120_v10  ;;  %v2138_v22 = vld [vmem:[#allocation11 + $0xa4] ss:$16 sps:$4 sm:$0xff]   ;;  %v2141_v24 = vld [vmem:[#allocation11 + $0xa0] ss:$16 sps:$4 sm:$0xff]   ;;  %v2745_v38 = vld [vmem:[#allocation2 + $0x10] sm:$0xff]  ;;  %vm830_vm0 = vcmask 1041409  }
  0xa4   :  { %v2144_v26 = vld [vmem:[#allocation11 + $0xc4] ss:$16 sps:$4 sm:$0xff]   ;;  %v2146_v27 = vld [vmem:[#allocation10 + $0x60] ss:$8 sps:$4 sm:$0xff]   ;;  %v2152_v31 = vld [vmem:[#allocation10 + $0x70] ss:$8 sps:$4 sm:$0xff]  }
  0xa5   :  { %275 = vmatpush1.bf16.msra.mxu0 %v2122_v11  ;;  %v2147_v28 = vld [vmem:[#allocation11 + $0xc0] ss:$16 sps:$4 sm:$0xff]   ;;  %v2148_v29 = vld [vmem:[#allocation10 + $0x74] ss:$8 sps:$4 sm:$0xff]   ;;  %v2754_v41 = vld [vmem:[#allocation2 + $0x20] sm:$0xff]  ;;  %vm832_vm1 = vcmask 1042434  }
  0xa6   :  { %541 = vmatpush1.bf16.msra.mxu1 %v2123_v12  ;;  %276 = vmatprep.subr.bf16.mxu0 %v2124_v13  ;;  %v2150_v30 = vld [vmem:[#allocation11 + $0xe4] ss:$16 sps:$4 sm:$0xff]   ;;  %v2153_v32 = vld [vmem:[#allocation11 + $0xe0] ss:$16 sps:$4 sm:$0xff]   ;;  %v2762_v44 = vld [vmem:[#allocation2 + $0x30] sm:$0xff]  ;;  %vm834_vm2 = vcmask 1043459  }
  0xa7   :  { %542 = vmatprep.subr.bf16.mxu1 %v2126_v14  ;;  %v2747_v39 = vld [vmem:[#allocation2 + $0x18] sm:$0xff]  ;;  %v2756_v42 = vld [vmem:[#allocation2 + $0x28] sm:$0xff]  ;;  %v2526_v48 = vmov 1966171168   ;;  %v1936_v7 = vld [vmem:[%s3032_s7] ss:$0 sm:$0xff] }
  0xa8   :  { %v171_v40 = vpack.c.bf16 %v2747_v39, %v2745_v38  ;;  %v172_v43 = vpack.c.bf16 %v2756_v42, %v2754_v41  ;;  %v2764_v45 = vld [vmem:[#allocation2 + $0x38] sm:$0xff]  ;;  %v641_v49 = vunpack.c.l.s4 %v2526_v48  ;;  %vm836_vm3 = vcmask 1044484  }
  0xa9   :  { %277 = vmatpush1.bf16.msra.mxu0 %v2128_v15  ;;  %v173_v46 = vpack.c.bf16 %v2764_v45, %v2762_v44  ;;  %vm838_vm4 = vcmask 1045509   ;;  %vm840_vm5 = vcmask 1046534   ;;  %vm842_vm6 = vcmask 1047559  }
  0xaa   :  { %543 = vmatpush1.bf16.msra.mxu1 %v2129_v16  ;;  %278 = vmatprep.subr.bf16.mxu0 %v2130_v17  ;;  %v642_v51 = vunpack.c.0.s8 %v641_v49  ;;  %vm846_vm8 = vcmask 64512   ;;  %vm2528_vm9 = vmmov 0  }
  0xab   :  { %544 = vmatprep.subr.bf16.mxu1 %v2132_v18 }
  0xac   :  { %v2773_v52 = vsub.s32 %v642_v51, %v2770_v50 }
  0xad   :  { %279 = vmatpush1.bf16.msra.mxu0 %v2134_v19 }
  0xae   :  { %545 = vmatpush1.bf16.msra.mxu1 %v2135_v20  ;;  %280 = vmatprep.subr.bf16.mxu0 %v2136_v21 }
  0xaf   :  { %546 = vmatprep.subr.bf16.mxu1 %v2138_v22 }
  0xb1   :  { %281 = vmatpush1.bf16.msra.mxu0 %v2140_v23 }
  0xb2   :  { %547 = vmatpush1.bf16.msra.mxu1 %v2141_v24  ;;  %282 = vmatprep.subr.bf16.mxu0 %v2142_v25 }
  0xb3   :  { %548 = vmatprep.subr.bf16.mxu1 %v2144_v26 }
  0xb5   :  { %283 = vmatpush1.bf16.msra.mxu0 %v2146_v27 }
  0xb6   :  { %549 = vmatpush1.bf16.msra.mxu1 %v2147_v28  ;;  %284 = vmatprep.subr.bf16.mxu0 %v2148_v29 }
  0xb7   :  { %550 = vmatprep.subr.bf16.mxu1 %v2150_v30 }
  0xb9   :  { %285 = vmatpush1.bf16.msra.mxu0 %v2152_v31 }
  0xba   :  { %551 = vmatpush1.bf16.msra.mxu1 %v2153_v32 }
  0xbc   :  { %303 = vmatmul.mubr.bf16.vlgmr.msra.gmra.mrb[0].mxu0 %v170_v36 }
  0xbd   :  { %569 = vmatmul.mubr.bf16.vlgmr.msra.gmra.mrb[0].mxu1 %v2743_v37  ;;  %312 = vmatprep.mubr.bf16.mxu0 %v2525_v0 }
  0xbe   :  { %1198 = vmatprep.mubr.bf16.mxu1 %v2525_v0 }
  0xc4   :  { %313 = vmatmul.mubr.bf16.gmra.mrb[4].mxu0 %v171_v40 }
  0xc5   :  { %322 = vmatprep.mubr.bf16.mxu0 %v2525_v0 }
  0xcc   :  { %323 = vmatmul.mubr.bf16.gmra.mrb[8].mxu0 %v172_v43  ;;  %v1937_v43 = vld [vmem:[%s3033_s8] ss:$0 sm:$0xff] }
  0xcd   :  { %332 = vmatprep.mubr.bf16.mxu0 %v2525_v0 }
  0xd4   :  { %333 = vmatmul.mubr.bf16.gmra.mrb[12].mxu0 %v173_v46 }
  0xd5   :  { %609 = vmatprep.mubr.bf16.mxu0 %v2525_v0 }
 0x18f   :  { %v304_v53 = vpop.f32.mrb[0].mxu0 }
 0x190   :  { %v570_v54 = vpop.f32.mrb[0].mxu1  ;;  %v2779_v58 = vpop.f32.mrb[1].mxu0 }
 0x191   :  { %v639_v56 = vcombine.high %v570_v54, %v570_v54  ;;  %v646_v57 = vrot.slane %v570_v54, %v2773_v52  ;;  %v2781_v59 = vpop.f32.mrb[1].mxu1  ;;  %v308_v60 = vpop.f32.mrb[2].mxu0 }
 0x192   :  { %v574_v61 = vpop.f32.mrb[2].mxu1  ;;  %v2784_v1 = vpop.f32.mrb[3].mxu0 }
 0x193   :  { %v654_v62 = vcombine.high %v646_v57, %v646_v57  ;;  %v662_v63 = vrot.slane %v646_v57, %v2773_v52  ;;  %v575_v2 = vpop.f32.mrb[3].mxu1  ;;  %v653_v3 = vrot.slane %v639_v56, %v2773_v52 }
 0x195   :  { %v691_v4 = vrot.slane %v662_v63, %v2776_v55  ;;  %v676_v5 = vrot.slane %v654_v62, %v2773_v52  ;;  %v684_v6 = vcombine.high %v662_v63, %v662_v63  ;;  %v655_v12 = vcombine.high %v653_v3, %v653_v3 }
 0x196   :  { %v669_v20 = vrot.slane %v653_v3, %v2773_v52 }
 0x197   :  { %v728_v8 = vadd.f32 %v691_v4, %v304_v53  ;;  %v695_v9 = vrot.slane %v676_v5, %v2776_v55  ;;  %v699_v10 = vrot.slane %v684_v6, %v2776_v55  ;;  %v686_v11 = vcombine.high %v676_v5, %v676_v5  ;;  %v314_v13 = vpop.f32.mrb[4].mxu0 }
 0x198   :  { %v2794_v17 = vpop.f32.mrb[5].mxu0  ;;  %v683_v26 = vrot.slane %v655_v12, %v2773_v52  ;;  %v707_v27 = vrot.slane %v669_v20, %v2776_v55  ;;  %v685_v46 = vcombine.high %v669_v20, %v669_v20 }
 0x199   :  { %v743_v14 = vadd.f32 %v1936_v7, %v728_v8  ;;  %v729_v15 = vadd.f32 %v695_v9, %v308_v60  ;;  %v730_v16 = vadd.f32 %v699_v10, %v314_v13  ;;  %v703_v18 = vrot.slane %v686_v11, %v2776_v55  ;;  %v318_v19 = vpop.f32.mrb[6].mxu0 }
 0x19a   :  { %v2798_v24 = vpop.f32.mrb[7].mxu0  ;;  %v711_v31 = vrot.slane %v683_v26, %v2776_v55  ;;  %v687_v51 = vcombine.high %v683_v26, %v683_v26  ;;  %v715_v56 = vrot.slane %v685_v46, %v2776_v55 }
 0x19b   :  { %2218 = vtanh.f32 %v743_v14  ;;  %v744_v21 = vadd.f32 %v1936_v7, %v729_v15  ;;  %v745_v22 = vadd.f32 %v1936_v7, %v730_v16  ;;  %v731_v23 = vadd.f32 %v703_v18, %v318_v19 }
 0x19c   :  { %v719_v2 = vrot.slane %v687_v51, %v2776_v55 }
 0x19d   :  { %2220 = vtanh.f32 %v744_v21  ;;  %v746_v25 = vadd.f32 %v1936_v7, %v731_v23  ;;  %v2817_v21 = vand.u32 127, %v167_v47 }
 0x19e   :  { %2222 = vtanh.f32 %v745_v22 }
 0x19f   :  { %2224 = vtanh.f32 %v746_v25  ;;  %v324_v28 = vpop.f32.mrb[8].mxu0  ;;  %v2821_v23 = vsub.s32 %v2817_v21, %v2770_v50  ;;  %vm169_vm7 = vcmp.lt.s32.totalorder %v2817_v21, 8 }
 0x1a0   :  { %v732_v29 = vadd.f32 %v707_v27, %v324_v28  ;;  %v2802_v30 = vpop.f32.mrb[9].mxu0 }
 0x1a1   :  { %v328_v32 = vpop.f32.mrb[10].mxu0 }
 0x1a2   :  { %v747_v35 = vadd.f32 %v1936_v7, %v732_v29  ;;  %v733_v36 = vadd.f32 %v711_v31, %v328_v32  ;;  %v2805_v40 = vpop.f32.mrb[11].mxu0 }
 0x1a4   :  { %2226 = vtanh.f32 %v747_v35  ;;  %v748_v49 = vadd.f32 %v1936_v7, %v733_v36 }
 0x1a5   :  { %v2219_v48 = vpop.eup %2218 }
 0x1a6   :  { %v766_v53 = vmul.f32 %v2219_v48, %v1937_v43  ;;  %2228 = vtanh.f32 %v748_v49 }
 0x1a7   :  { %v2221_v54 = vpop.eup %2220  ;;  %v334_v60 = vpop.f32.mrb[12].mxu0 }
 0x1a8   :  { %v2223_v57 = vpop.eup %2222  ;;  %774 = vadd.xlane.f32.xlu0 %v766_v53  ;;  %v734_v61 = vadd.f32 %v715_v56, %v334_v60  ;;  %v2811_v62 = vpop.f32.mrb[13].mxu0  ;;  %v767_v5 = vmul.f32 %v2221_v54, %v1937_v43 }
 0x1a9   :  { %v768_v63 = vmul.f32 %v2223_v57, %v1937_v43  ;;  %v2225_v3 = vpop.eup %2224  ;;  %v338_v4 = vpop.f32.mrb[14].mxu0 }
 0x1aa   :  { %v749_v6 = vadd.f32 %v1936_v7, %v734_v61  ;;  %v735_v8 = vadd.f32 %v719_v2, %v338_v4  ;;  %v2814_v9 = vpop.f32.mrb[15].mxu0  ;;  %v769_v11 = vmul.f32 %v2225_v3, %v1937_v43 }
 0x1ab   :  { %778 = vadd.xlane.f32.xlu1 %v768_v63 }
 0x1ac   :  { %776 = vadd.xlane.f32.xlu0 %v767_v5  ;;  %2230 = vtanh.f32 %v749_v6  ;;  %v750_v10 = vadd.f32 %v1936_v7, %v735_v8 }
 0x1ae   :  { %v2227_v12 = vpop.eup %2226  ;;  %2232 = vtanh.f32 %v750_v10  ;;  %v2154_v10 = vld [vmem:[#allocation11 + $0x8] ss:$16 sps:$4 sm:$0xff]  }
 0x1af   :  { %780 = vadd.xlane.f32.xlu1 %v769_v11  ;;  %v770_v13 = vmul.f32 %v2227_v12, %v1937_v43  ;;  %v2156_v11 = vld [vmem:[#allocation11 + $0xc] ss:$16 sps:$4 sm:$0xff]  }
 0x1b0   :  { %v2229_v14 = vpop.eup %2228  ;;  %v2159_v12 = vld [vmem:[#allocation11 + $0x2c] ss:$16 sps:$4 sm:$0xff]   ;;  %577 = vmatprep.subr.bf16.mxu0 %v2156_v11 }
 0x1b1   :  { %782 = vadd.xlane.f32.xlu0 %v770_v13  ;;  %v771_v15 = vmul.f32 %v2229_v14, %v1937_v43  ;;  %578 = vmatpush1.bf16.msra.mxu0 %v2154_v10  ;;  %v2157_v13 = vld [vmem:[#allocation11 + $0x28] ss:$16 sps:$4 sm:$0xff]   ;;  %v2162_v14 = vld [vmem:[#allocation11 + $0x4c] ss:$16 sps:$4 sm:$0xff]  }
 0x1b2   :  { %579 = vmatprep.subr.bf16.mxu0 %v2159_v12  ;;  %v895_v12 = vsub.s32 5, %v2770_v50 }
 0x1b3   :  { %784 = vadd.xlane.f32.xlu1 %v771_v15  ;;  %v2160_v15 = vld [vmem:[#allocation11 + $0x48] ss:$16 sps:$4 sm:$0xff]  }
 0x1b5   :  { %580 = vmatpush1.bf16.msra.mxu0 %v2157_v13  ;;  %v2196_v13 = vld [vmem:[#allocation13 + $0x64] ss:$12 sps:$4 sm:$0xff]  }
 0x1b6   :  { %v2231_v16 = vpop.eup %2230  ;;  %581 = vmatprep.subr.bf16.mxu0 %v2162_v14  ;;  %v2194_v14 = vld [vmem:[#allocation13 + $0x60] ss:$12 sps:$4 sm:$0xff]  }
 0x1b7   :  { %v772_v18 = vmul.f32 %v2231_v16, %v1937_v43  ;;  %v2165_v16 = vld [vmem:[#allocation11 + $0x6c] ss:$16 sps:$4 sm:$0xff]  }
 0x1b8   :  { %v2233_v19 = vpop.eup %2232 }
 0x1b9   :  { %786 = vadd.xlane.f32.xlu0 %v772_v18  ;;  %v773_v20 = vmul.f32 %v2233_v19, %v1937_v43  ;;  %582 = vmatpush1.bf16.msra.mxu0 %v2160_v15  ;;  %v2163_v18 = vld [vmem:[#allocation11 + $0x68] ss:$16 sps:$4 sm:$0xff]   ;;  %v2168_v19 = vld [vmem:[#allocation11 + $0x8c] ss:$16 sps:$4 sm:$0xff]  }
 0x1ba   :  { %583 = vmatprep.subr.bf16.mxu0 %v2165_v16  ;;  %v2197_v15 = vld [vmem:[#allocation13 + $0x68] ss:$12 sps:$4 sm:$0xff]  }
 0x1bb   :  { %788 = vadd.xlane.f32.xlu1 %v773_v20  ;;  %v2166_v20 = vld [vmem:[#allocation11 + $0x88] ss:$16 sps:$4 sm:$0xff]  }
 0x1bd   :  { %584 = vmatpush1.bf16.msra.mxu0 %v2163_v18  ;;  %v909_v18 = vsub.s32 7, %v2770_v50 }
 0x1be   :  { %585 = vmatprep.subr.bf16.mxu0 %v2168_v19  ;;  %v2200_v19 = vld [vmem:[#allocation13 + $0x7c] ss:$12 sps:$4 sm:$0xff]  }
 0x1c1   :  { %586 = vmatpush1.bf16.msra.mxu0 %v2166_v20  ;;  %v2198_v20 = vld [vmem:[#allocation13 + $0x78] ss:$12 sps:$4 sm:$0xff]  }
 0x235   :  { %v775_v22 = vpop.xlane.xlu0 %774 }
 0x236   :  { %v801_v27 = vrot.slane %v775_v22, %v2821_v23  ;;  %v2171_v22 = vld [vmem:[#allocation11 + $0xac] ss:$16 sps:$4 sm:$0xff]  }
 0x237   :  { %587 = vmatprep.subr.bf16.mxu0 %v2171_v22  ;;  %v2201_v22 = vld [vmem:[#allocation13 + $0x80] ss:$12 sps:$4 sm:$0xff]  }
 0x238   :  { %v779_v7 = vpop.xlane.xlu1 %778 }
 0x239   :  { %v777_v25 = vpop.xlane.xlu0 %776  ;;  %v809_v47 = vrot.slane %v779_v7, %v2821_v23  ;;  %v2169_v7 = vld [vmem:[#allocation11 + $0xa8] ss:$16 sps:$4 sm:$0xff]  }
 0x23a   :  { %v805_v26 = vrot.slane %v777_v25, %v2821_v23  ;;  %v2174_v25 = vld [vmem:[#allocation11 + $0xcc] ss:$16 sps:$4 sm:$0xff]   ;;  %588 = vmatpush1.bf16.msra.mxu0 %v2169_v7 }
 0x23b   :  { %589 = vmatprep.subr.bf16.mxu0 %v2174_v25  ;;  %v2204_v25 = vld [vmem:[#allocation13 + $0x94] ss:$12 sps:$4 sm:$0xff]  }
 0x23c   :  { %v781_v28 = vpop.xlane.xlu1 %780  ;;  %v831_v29 = vsel %vm830_vm0, %v805_v26, %v801_v27  ;;  %v2172_v26 = vld [vmem:[#allocation11 + $0xc8] ss:$16 sps:$4 sm:$0xff]   ;;  %v2177_v27 = vld [vmem:[#allocation11 + $0xec] ss:$16 sps:$4 sm:$0xff]  }
 0x23d   :  { %v813_v32 = vrot.slane %v781_v28, %v2821_v23  ;;  %v833_v35 = vsel %vm832_vm1, %v809_v47, %v831_v29  ;;  %v2175_v28 = vld [vmem:[#allocation11 + $0xe8] ss:$16 sps:$4 sm:$0xff]   ;;  %v2178_v47 = vld [vmem:[#allocation13] ss:$12 sps:$4 sm:$0xff]  }
 0x23e   :  { %v783_v31 = vpop.xlane.xlu0 %782  ;;  %590 = vmatpush1.bf16.msra.mxu0 %v2172_v26  ;;  %v2202_v26 = vld [vmem:[#allocation13 + $0x90] ss:$12 sps:$4 sm:$0xff]  }
 0x23f   :  { %v817_v36 = vrot.slane %v783_v31, %v2821_v23  ;;  %v835_v46 = vsel %vm834_vm2, %v813_v32, %v833_v35  ;;  %591 = vmatprep.subr.bf16.mxu0 %v2177_v27  ;;  %v2180_v31 = vld [vmem:[#allocation13 + $0x4] ss:$12 sps:$4 sm:$0xff]   ;;  %v2181_v32 = vld [vmem:[#allocation13 + $0x8] ss:$12 sps:$4 sm:$0xff]   ;;  %v2527_v35 = vmov 0.0  }
 0x240   :  { %v785_v43 = vpop.xlane.xlu1 %784  ;;  %1166 = vmatprep.subr.bf16.mxu1 %v2180_v31  ;;  %v2205_v27 = vld [vmem:[#allocation13 + $0x98] ss:$12 sps:$4 sm:$0xff]   ;;  %v2206_v31 = vld [vmem:[#allocation13 + $0xa8] ss:$12 sps:$4 sm:$0xff]  }
 0x241   :  { %v821_v48 = vrot.slane %v785_v43, %v2821_v23  ;;  %v837_v49 = vsel %vm836_vm3, %v817_v36, %v835_v46  ;;  %1167 = vmatpush1.bf16.msra.mxu1 %v2178_v47  ;;  %v2846_v36 = vsub.s32 1, %v2770_v50  ;;  %v2184_v43 = vld [vmem:[#allocation13 + $0x1c] ss:$12 sps:$4 sm:$0xff]   ;;  %v2529_v47 = vmov 0.0|0.0  }
 0x242   :  { %592 = vmatpush1.bf16.msra.mxu0 %v2175_v28  ;;  %1168 = vmatprep.subr.bf16.mxu1 %v2184_v43  ;;  %v2208_v28 = vld [vmem:[#allocation13 + $0xac] ss:$12 sps:$4 sm:$0xff]  }
 0x243   :  { %v839_v54 = vsel %vm838_vm4, %v821_v48, %v837_v49  ;;  %2001 = vmatprep.subr.bf16.mxu0 %v2527_v35  ;;  %v2182_v48 = vld [vmem:[#allocation13 + $0x18] ss:$12 sps:$4 sm:$0xff]  }
 0x245   :  { %610 = vmatmul.mubr.bf16.vlgmr.msra.gmra.mrb[16].mxu0 %v2743_v37  ;;  %v2185_v37 = vld [vmem:[#allocation13 + $0x20] ss:$12 sps:$4 sm:$0xff]   ;;  %1169 = vmatpush1.bf16.msra.mxu1 %v2182_v48 }
 0x246   :  { %v787_v51 = vpop.xlane.xlu0 %786  ;;  %2002 = vmatpush3.bf16.msra.mxu0 %v2181_v32  ;;  %2017 = vmatprep.mubr.msk.bf16.mxu0 %vm2528_vm9, %v2527_v35 }
 0x247   :  { %v825_v53 = vrot.slane %v787_v51, %v2821_v23  ;;  %2003 = vmatprep.subr.bf16.mxu0 %v2527_v35 }
 0x248   :  { %v789_v56 = vpop.xlane.xlu1 %788 }
 0x249   :  { %v829_v57 = vrot.slane %v789_v56, %v2821_v23  ;;  %v841_v60 = vsel %vm840_vm5, %v825_v53, %v839_v54  ;;  %v2852_v54 = vsub.s32 2, %v2770_v50  ;;  %v888_v56 = vsub.s32 4, %v2770_v50 }
 0x24a   :  { %2004 = vmatpush3.bf16.msra.mxu0 %v2185_v37 }
 0x24b   :  { %v843_v61 = vsel %vm842_vm6, %v829_v57, %v841_v60  ;;  %v2188_v57 = vld [vmem:[#allocation13 + $0x34] ss:$12 sps:$4 sm:$0xff]   ;;  %2005 = vmatprep.subr.bf16.mxu0 %v2527_v35  ;;  %v2186_v60 = vld [vmem:[#allocation13 + $0x30] ss:$12 sps:$4 sm:$0xff]  }
 0x24c   :  { %v845_v63 = vsel %vm169_vm7, %v843_v61, -1e+30  ;;  %v2189_v61 = vld [vmem:[#allocation13 + $0x38] ss:$12 sps:$4 sm:$0xff]   ;;  %1170 = vmatprep.subr.bf16.mxu1 %v2188_v57 }
 0x24d   :  { %v847_v2 = vsel %vm846_vm8, %v845_v63, -inf  ;;  %1171 = vmatpush1.bf16.msra.mxu1 %v2186_v60 }
 0x24e   :  { %848 = vmax.xlane.f32.xlu0 %v847_v2  ;;  %2006 = vmatpush3.bf16.msra.mxu0 %v2189_v61 }
 0x24f   :  { %2007 = vmatprep.subr.bf16.mxu0 %v2527_v35 }
 0x2db   :  { %v849_v3 = vpop.xlane.xlu0 %848 }
 0x2dc   :  { %v850_v4 = vsub.f32 %v845_v63, %v849_v3  ;;  %v881_v3 = vsub.s32 3, %v2770_v50 }
 0x2de   :  { %v851_v5 = vmul.f32 1.442695, %v850_v4  ;;  %v902_v4 = vsub.s32 6, %v2770_v50 }
 0x2e0   :  { %2234 = vpow2.f32 %v851_v5  ;;  %v2192_v5 = vld [vmem:[#allocation13 + $0x4c] ss:$12 sps:$4 sm:$0xff]  }
 0x2e1   :  { %1172 = vmatprep.subr.bf16.mxu1 %v2192_v5 }
 0x2ea   :  { %v2235_v6 = vpop.eup %2234 }
 0x2eb   :  { %v853_v8 = vsel %vm846_vm8, %v2235_v6, 0.0 }
 0x2ec   :  { %854 = vadd.xlane.f32.xlu1 %v853_v8  ;;  %v2193_v8 = vld [vmem:[#allocation13 + $0x50] ss:$12 sps:$4 sm:$0xff]  }
 0x2ed   :  { %2008 = vmatpush3.bf16.msra.mxu0 %v2193_v8 }
 0x2ee   :  { %2009 = vmatprep.subr.bf16.mxu0 %v2527_v35 }
 0x2f1   :  { %2010 = vmatpush3.bf16.msra.mxu0 %v2197_v15 }
 0x2f2   :  { %2011 = vmatprep.subr.bf16.mxu0 %v2527_v35 }
 0x2f5   :  { %2012 = vmatpush3.bf16.msra.mxu0 %v2201_v22 }
 0x2f6   :  { %2013 = vmatprep.subr.bf16.mxu0 %v2527_v35 }
 0x2f9   :  { %2014 = vmatpush3.bf16.msra.mxu0 %v2205_v27 }
 0x2fa   :  { %2015 = vmatprep.subr.bf16.mxu0 %v2527_v35 }
 0x379   :  { %v855_v29 = vpop.xlane.xlu1 %854 }
 0x37a   :  { %2236 = vrcp.f32 %v855_v29  ;;  %v2209_v29 = vld [vmem:[#allocation13 + $0xb0] ss:$12 sps:$4 sm:$0xff]  }
 0x37b   :  { %2016 = vmatpush3.bf16.msra.mxu0 %v2209_v29 }
 0x37c   :  { %2052 = vmatprep.subr.bf16.mxu0 %v2529_v47 }
 0x384   :  { %v2237_v46 = vpop.eup %2236 }
 0x385   :  { %v857_v49 = vmul.f32 %v2237_v46, %v2235_v6  ;;  %v2190_v6 = vld [vmem:[#allocation13 + $0x48] ss:$12 sps:$4 sm:$0xff]  }
 0x386   :  { %1173 = vmatpush1.bf16.msra.mxu1 %v2190_v6 }
 0x387   :  { %v868_v51 = vrot.slane %v857_v49, %v2846_v36  ;;  %v861_v53 = vrot.slane %v857_v49, %v2776_v55  ;;  %v875_v63 = vrot.slane %v857_v49, %v2852_v54  ;;  %v889_v2 = vrot.slane %v857_v49, %v888_v56  ;;  %1174 = vmatprep.subr.bf16.mxu1 %v2196_v13 }
 0x388   :  { %v882_v10 = vrot.slane %v857_v49, %v881_v3  ;;  %v903_v11 = vrot.slane %v857_v49, %v902_v4  ;;  %v896_v16 = vrot.slane %v857_v49, %v895_v12  ;;  %v910_v7 = vrot.slane %v857_v49, %v909_v18 }
 0x389   :  { %870 = vbcast.lane.b32.xlu1 %v868_v51, 256  ;;  %863 = vbcast.lane.b32.xlu0 %v861_v53, 256 }
 0x38a   :  { %1175 = vmatpush1.bf16.msra.mxu1 %v2194_v14 }
 0x38b   :  { %1176 = vmatprep.subr.bf16.mxu1 %v2200_v19 }
 0x38d   :  { %877 = vbcast.lane.b32.xlu1 %v875_v63, 256  ;;  %891 = vbcast.lane.b32.xlu0 %v889_v2, 256 }
 0x38e   :  { %1177 = vmatpush1.bf16.msra.mxu1 %v2198_v20 }
 0x38f   :  { %1178 = vmatprep.subr.bf16.mxu1 %v2204_v25 }
 0x391   :  { %884 = vbcast.lane.b32.xlu1 %v882_v10, 256  ;;  %905 = vbcast.lane.b32.xlu0 %v903_v11, 256 }
 0x392   :  { %1179 = vmatpush1.bf16.msra.mxu1 %v2202_v26 }
 0x393   :  { %1180 = vmatprep.subr.bf16.mxu1 %v2208_v28 }
 0x395   :  { %898 = vbcast.lane.b32.xlu1 %v896_v16, 256 }
 0x396   :  { %1181 = vmatpush1.bf16.msra.mxu1 %v2206_v31 }
 0x397   :  { %2032 = vmatprep.subr.bf16.mxu1 %v2527_v35 }
 0x399   :  { %912 = vbcast.lane.b32.xlu1 %v910_v7, 256 }
 0x3fb   :  { %v871_v32 = vpop.permute.xlu1 %870  ;;  %v864_v43 = vpop.permute.xlu0 %863 }
 0x3fc   :  { %v915_v46 = vmul.f32 %v871_v32, %v2739_v34  ;;  %v914_v48 = vmul.f32 %v864_v43, %v2737_v33 }
 0x3fe   :  { %v928_v37 = vrot.slane %v915_v46, 4  ;;  %v922_v49 = vrot.slane %v914_v48, 4 }
 0x3ff   :  { %v878_v51 = vpop.permute.xlu1 %877  ;;  %v892_v53 = vpop.permute.xlu0 %891 }
 0x400   :  { %v929_v56 = vadd.f32 %v928_v37, %v915_v46  ;;  %v923_v57 = vadd.f32 %v922_v49, %v914_v48  ;;  %v916_v60 = vmul.f32 %v878_v51, %v2745_v38  ;;  %v918_v61 = vmul.f32 %v892_v53, %v2754_v41  ;;  %v2878_v49 = vpop.f32.mrb[16].mxu0 }
 0x402   :  { %v930_v63 = vrot.slane %v929_v56, 2  ;;  %v924_v2 = vrot.slane %v923_v57, 2  ;;  %v934_v3 = vrot.slane %v916_v60, 4  ;;  %v946_v4 = vrot.slane %v918_v61, 4 }
 0x403   :  { %v885_v5 = vpop.permute.xlu1 %884  ;;  %v906_v6 = vpop.permute.xlu0 %905 }
 0x404   :  { %v931_v8 = vadd.f32 %v930_v63, %v929_v56  ;;  %v935_v34 = vadd.f32 %v934_v3, %v916_v60  ;;  %v947_v10 = vadd.f32 %v946_v4, %v918_v61  ;;  %v925_v33 = vadd.f32 %v924_v2, %v923_v57 }
 0x405   :  { %v917_v11 = vmul.f32 %v885_v5, %v2747_v39  ;;  %v920_v12 = vmul.f32 %v906_v6, %v2762_v44  ;;  %v1270_v3 = vadd.s32 8, %v2770_v50 }
 0x406   :  { %v936_v13 = vrot.slane %v935_v34, 2  ;;  %v932_v16 = vrot.slane %v931_v8, 1  ;;  %v948_v18 = vrot.slane %v947_v10, 2  ;;  %v926_v19 = vrot.slane %v925_v33, 1 }
 0x407   :  { %v940_v14 = vrot.slane %v917_v11, 4  ;;  %v958_v15 = vrot.slane %v920_v12, 4  ;;  %v899_v38 = vpop.permute.xlu1 %898 }
 0x408   :  { %v937_v41 = vadd.f32 %v936_v13, %v935_v34  ;;  %v919_v7 = vmul.f32 %v899_v38, %v2756_v42  ;;  %v949_v39 = vadd.f32 %v948_v18, %v947_v10  ;;  %v933_v31 = vadd.f32 %v932_v16, %v931_v8  ;;  %v2880_v42 = vpop.f32.mrb[17].mxu0 }
 0x409   :  { %v941_v20 = vadd.f32 %v940_v14, %v917_v11  ;;  %v959_v22 = vadd.f32 %v958_v15, %v920_v12  ;;  %v927_v32 = vadd.f32 %v926_v19, %v925_v33  ;;  %v615_v61 = vpop.f32.mrb[18].mxu0  ;;  %v1273_v13 = vadd.s32 32, %v2770_v50 }
 0x40a   :  { %v938_v25 = vrot.slane %v937_v41, 1  ;;  %v952_v28 = vrot.slane %v919_v7, 4  ;;  %v950_v57 = vrot.slane %v949_v39, 1  ;;  %v616_v4 = vpop.f32.mrb[19].mxu0  ;;  %v1285_v14 = vadd.s32 32, %v1270_v3 }
 0x40b   :  { %v942_v26 = vrot.slane %v941_v20, 2  ;;  %v960_v27 = vrot.slane %v959_v22, 2  ;;  %v913_v29 = vpop.permute.xlu1 %912  ;;  %v979_v63 = vsel %vm830_vm0, %v933_v31, %v927_v32  ;;  %v1271_v16 = vadd.s32 16, %v2770_v50  ;;  %v2212_v31 = vld [vmem:[#allocation14 + $0x10] sm:$0xff]   ;;  %v2213_v32 = vld [vmem:[#allocation14 + $0x18] sm:$0xff]  }
 0x40c   :  { %v921_v44 = vmul.f32 %v913_v29, %v2764_v45  ;;  %v953_v46 = vadd.f32 %v952_v28, %v919_v7  ;;  %v939_v48 = vadd.f32 %v938_v25, %v937_v41  ;;  %v951_v33 = vadd.f32 %v950_v57, %v949_v39  ;;  %v2210_v39 = vld [vmem:[#allocation14] sm:$0xff]  }
 0x40d   :  { %v943_v43 = vadd.f32 %v942_v26, %v941_v20  ;;  %v961_v53 = vadd.f32 %v960_v27, %v959_v22  ;;  %v1272_v41 = vadd.s32 24, %v2770_v50  ;;  %v970_v22 = vld [vmem:[#allocation7] sm:$0xff]  ;;  %vm1300_vm10 = vcmp.eq.s32.totalorder %v2817_v21, %v1273_v13 }
 0x40e   :  { %v964_v37 = vrot.slane %v921_v44, 4  ;;  %v954_v56 = vrot.slane %v953_v46, 2  ;;  %v980_v5 = vsel %vm832_vm1, %v939_v48, %v979_v63  ;;  %vm1301_vm11 = vcmp.eq.s32.totalorder %v2817_v21, %v1285_v14  ;;  %v2217_v48 = vld [vmem:[#allocation14 + $0x38] sm:$0xff]  }
 0x40f   :  { %v944_v51 = vrot.slane %v943_v43, 1  ;;  %v962_v34 = vrot.slane %v961_v53, 1  ;;  %v1286_v26 = vadd.s32 32, %v1271_v16  ;;  %v1287_v27 = vadd.s32 32, %v1272_v41  ;;  %vm2053_vm12 = vmpackc.low %vm1301_vm11, %vm1300_vm10 }
 0x410   :  { %v965_v60 = vadd.f32 %v964_v37, %v921_v44  ;;  %v955_v45 = vadd.f32 %v954_v56, %v953_v46  ;;  %v2530_v50 = vmov 1.0|1.0   ;;  %v2211_v44 = vld [vmem:[#allocation14 + $0x8] sm:$0xff]   ;;  %v2216_v46 = vld [vmem:[#allocation14 + $0x30] sm:$0xff]  }
 0x411   :  { %v945_v2 = vadd.f32 %v944_v51, %v943_v43  ;;  %v963_v18 = vadd.f32 %v962_v34, %v961_v53  ;;  %vm1302_vm13 = vcmp.eq.s32.totalorder %v2817_v21, %v1286_v26  ;;  %vm1303_vm14 = vcmp.eq.s32.totalorder %v2817_v21, %v1287_v27  ;;  %v2215_v43 = vld [vmem:[#allocation14 + $0x28] sm:$0xff]  }
 0x412   :  { %v966_v6 = vrot.slane %v965_v60, 2  ;;  %v956_v10 = vrot.slane %v955_v45, 1  ;;  %vm2056_vm15 = vmpackc.low %vm1303_vm14, %vm1302_vm13  ;;  %v618_v37 = vld [vmem:[%s3036_s11] sm:$0x7] }
 0x413   :  { %v981_v8 = vsel %vm834_vm2, %v945_v2, %v980_v5  ;;  %v1021_v51 = vld [vmem:[%s3035_s10] sm:$0x7]  ;;  %v623_v53 = vrot.slane %v618_v37, %v2776_v55  ;;  %v627_v57 = vrot.slane %v618_v37, %v2846_v36  ;;  %v631_v16 = vrot.slane %v618_v37, %v2852_v54 }
 0x414   :  { %v967_v11 = vadd.f32 %v966_v6, %v965_v60  ;;  %v957_v12 = vadd.f32 %v956_v10, %v955_v45  ;;  %v982_v15 = vsel %vm836_vm3, %v951_v33, %v981_v8  ;;  %v1026_v56 = vrot.slane %v1021_v51, %v2776_v55 }
 0x415   :  { %v1030_v60 = vrot.slane %v1021_v51, %v2846_v36  ;;  %v635_v63 = vadd.f32 %v623_v53, %v2781_v59  ;;  %v636_v4 = vadd.f32 %v627_v57, %v2878_v49  ;;  %v1034_v49 = vrot.slane %v1021_v51, %v2852_v54 }
 0x416   :  { %v968_v38 = vrot.slane %v967_v11, 1  ;;  %v983_v19 = vsel %vm838_vm4, %v957_v12, %v982_v15 }
 0x417   :  { %v984_v7 = vsel %vm840_vm5, %v963_v18, %v983_v19  ;;  %v637_v18 = vadd.f32 %v631_v16, %v2880_v42 }
 0x418   :  { %v969_v20 = vadd.f32 %v968_v38, %v967_v11 }
 0x41a   :  { %v985_v25 = vsel %vm842_vm6, %v969_v20, %v984_v7 }
 0x41b   :  { %v987_v28 = vadd.f32 %v985_v25, %v970_v22 }
 0x41d   :  { %v988_v29 = vpack.c.bf16 %v987_v28, %v987_v28 }
 0x41f   :  { %1199 = vmatmul.mubr.bf16.vlgmr.msra.gmra.mrb[4].mxu1 %v988_v29  ;;  %2018 = vmatmul.mubr.bf16.vlgmr.msra.gmra.mrb[20].mxu0 %v988_v29 }
 0x420   :  { %2054 = vmatpush3.bf16.msk.msra.mxu0 %vm2053_vm12, %v2530_v50  ;;  %2029 = vmatprep.mubr.msk.f32.mxu0 %vm2528_vm9, %v2527_v35 }
 0x421   :  { %2055 = vmatprep.subr.bf16.mxu0 %v2529_v47  ;;  %2048 = vmatprep.mubr.msk.bf16.mxu1 %vm2528_vm9, %v2527_v35  ;;  %v2214_v47 = vld [vmem:[#allocation14 + $0x20] sm:$0xff]  }
 0x422   :  { %2033 = vmatpush3.bf16.msra.mxu1 %v2210_v39 }
 0x423   :  { %2034 = vmatprep.subr.bf16.mxu1 %v2527_v35 }
 0x424   :  { %2057 = vmatpush3.bf16.msk.msra.mxu0 %vm2056_vm15, %v2530_v50 }
 0x426   :  { %2035 = vmatpush3.bf16.msra.mxu1 %v2211_v44 }
 0x427   :  { %2030 = vmatmul.mubr.f32.vlgmr.msra.gmra.mrb[24].mxu0 %v985_v25  ;;  %2036 = vmatprep.subr.bf16.mxu1 %v2527_v35  ;;  %v1977_v25 = vld [vmem:[%s3037_s12] ss:$0 sm:$0xff] }
 0x428   :  { %v1554_v26 = vadd.f32 %v1977_v25, %v2779_v58  ;;  %v1555_v28 = vadd.f32 %v1977_v25, %v2784_v1  ;;  %v1556_v54 = vadd.f32 %v1977_v25, %v2794_v17  ;;  %v1557_v29 = vadd.f32 %v1977_v25, %v2798_v24  ;;  %v2274_v58 = vld [vmem:[#allocation5] sm:$0xff] }
 0x429   :  { %v1558_v42 = vadd.f32 %v1977_v25, %v2802_v30  ;;  %v1559_v44 = vadd.f32 %v1977_v25, %v2805_v40  ;;  %v1561_v1 = vadd.f32 %v1977_v25, %v2814_v9 }
 0x42a   :  { %2037 = vmatpush3.bf16.msra.mxu1 %v2212_v31  ;;  %v1560_v31 = vadd.f32 %v1977_v25, %v2811_v62 }
 0x42b   :  { %2038 = vmatprep.subr.bf16.mxu1 %v2527_v35 }
 0x42e   :  { %2039 = vmatpush3.bf16.msra.mxu1 %v2213_v32 }
 0x42f   :  { %2040 = vmatprep.subr.bf16.mxu1 %v2527_v35 }
 0x432   :  { %2041 = vmatpush3.bf16.msra.mxu1 %v2214_v47 }
 0x433   :  { %2042 = vmatprep.subr.bf16.mxu1 %v2527_v35 }
 0x436   :  { %2043 = vmatpush3.bf16.msra.mxu1 %v2215_v43 }
 0x437   :  { %2044 = vmatprep.subr.bf16.mxu1 %v2527_v35 }
 0x43a   :  { %2045 = vmatpush3.bf16.msra.mxu1 %v2216_v46 }
 0x43b   :  { %2046 = vmatprep.subr.bf16.mxu1 %v2527_v35 }
 0x43e   :  { %2047 = vmatpush3.bf16.msra.mxu1 %v2217_v48 }
 0x4f2   :  { %v1200_v61 = vpop.f32.mrb[4].mxu1  ;;  %v1241_v35 = vpop.f32.mrb[20].mxu0 }
 0x4f3   :  { %v1201_v2 = vadd.f32 %v1200_v61, %v1026_v56  ;;  %v1202_v45 = vpop.f32.mrb[5].mxu1  ;;  %v2019_v3 = vpop.f32.mrb[21].mxu0  ;;  %v1242_v20 = vadd.f32 %v1241_v35, %v1034_v49 }
 0x4f4   :  { %v1203_v5 = vadd.f32 %v1202_v45, %v1030_v60  ;;  %v1204_v6 = vpop.f32.mrb[6].mxu1  ;;  %v1244_v8 = vpop.f32.mrb[22].mxu0 }
 0x4f5   :  { %v1247_v34 = vadd.f32 %v1201_v2, %v635_v63  ;;  %v1205_v10 = vpop.f32.mrb[7].mxu1  ;;  %v2020_v33 = vpop.f32.mrb[23].mxu0 }
 0x4f6   :  { %v1254_v11 = vadd.f32 %v1203_v5, %v636_v4 }
 0x4f7   :  { %v1962_v12 = vmul.f32 -1.442695, %v1247_v34 }
 0x4f8   :  { %v1963_v14 = vmul.f32 -1.442695, %v1254_v11 }
 0x4f9   :  { %2238 = vpow2.f32 %v1962_v12 }
 0x4fa   :  { %v1430_v13 = vpop.f32.mrb[24].mxu0  ;;  %2240 = vpow2.f32 %v1963_v14 }
 0x4fb   :  { %v2031_v36 = vpop.f32.mrb[25].mxu0 }
 0x503   :  { %v2239_v15 = vpop.eup %2238 }
 0x504   :  { %v1251_v59 = vadd.f32 1.0, %v2239_v15  ;;  %v2241_v38 = vpop.eup %2240 }
 0x505   :  { %v1258_v41 = vadd.f32 1.0, %v2241_v38 }
 0x506   :  { %2242 = vrcp.f32 %v1251_v59 }
 0x507   :  { %2244 = vrcp.f32 %v1258_v41 }
 0x510   :  { %v2243_v19 = vpop.eup %2242 }
 0x511   :  { %v1261_v22 = vmul.f32 %v2243_v19, %v637_v18  ;;  %v2245_v27 = vpop.eup %2244  ;;  %v1741_v18 = vld [vmem:[%s3028_s3] sm:$0xff]  ;;  %v2531_v19 = vmov 1  }
 0x512   :  { %v1264_v50 = vsub.f32 1.0, %v2245_v27  ;;  %v1266_v47 = vmul.f32 %v2274_v58, %v2245_v27  ;;  %2090 = vset.pattern.permute.xlu0 %v2531_v19 }
 0x513   :  { %v1262_v7 = vadd.f32 %v1261_v22, %v1242_v20  ;;  %v2532_v20 = vmov 2   ;;  %v2534_v22 = vmov 4  }
 0x515   :  { %2246 = vtanh.f32 %v1262_v7 }
 0x516   :  { %2248 = vtanh.f32 %v1554_v26 }
 0x517   :  { %2250 = vtanh.f32 %v1555_v28 }
 0x518   :  { %2252 = vtanh.f32 %v1556_v54 }
 0x519   :  { %2254 = vtanh.f32 %v1557_v29 }
 0x51a   :  { %2256 = vtanh.f32 %v1558_v42 }
 0x51b   :  { %2258 = vtanh.f32 %v1559_v44 }
 0x51c   :  { %2260 = vtanh.f32 %v1560_v31 }
 0x51d   :  { %2262 = vtanh.f32 %v1561_v1 }
 0x51f   :  { %v2247_v39 = vpop.eup %2246 }
 0x520   :  { %v1265_v32 = vmul.f32 %v2247_v39, %v1264_v50  ;;  %v2249_v37 = vpop.eup %2248 }
 0x521   :  { %v2251_v57 = vpop.eup %2250 }
 0x522   :  { %v1267_v17 = vadd.f32 %v1266_v47, %v1265_v32  ;;  %v2253_v61 = vpop.eup %2252 }
 0x523   :  { %v2255_v3 = vpop.eup %2254 }
 0x524   :  { %v1434_v24 = vadd.f32 %v1430_v13, %v1267_v17  ;;  %1850 = vst [vmem:[#allocation16] sm:$0xff] %v1267_v17  ;;  %v1578_v30 = vrot.slane %v1267_v17, %v2773_v52  ;;  %v1571_v43 = vcombine.high %v1267_v17, %v1267_v17  ;;  %v2257_v8 = vpop.eup %2256 }
 0x525   :  { %v2259_v12 = vpop.eup %2258 }
 0x526   :  { %v1435_v40 = vpack.c.bf16 %v1434_v24, %v1434_v24  ;;  %v1594_v46 = vrot.slane %v1578_v30, %v2773_v52  ;;  %v1586_v62 = vcombine.high %v1578_v30, %v1578_v30  ;;  %v1585_v48 = vrot.slane %v1571_v43, %v2773_v52  ;;  %v2261_v15 = vpop.eup %2260 }
 0x527   :  { %v2263_v38 = vpop.eup %2262 }
 0x528   :  { %2049 = vmatmul.mubr.bf16.vlgmr.msra.gmra.mrb[8].mxu1 %v1435_v40  ;;  %v1623_v9 = vrot.slane %v1594_v46, %v2776_v55  ;;  %v1608_v51 = vrot.slane %v1586_v62, %v2773_v52  ;;  %v1616_v53 = vcombine.high %v1594_v46, %v1594_v46  ;;  %v1587_v56 = vcombine.high %v1585_v48, %v1585_v48 }
 0x529   :  { %v1601_v60 = vrot.slane %v1585_v48, %v2773_v52 }
 0x52a   :  { %v1660_v35 = vmul.f32 %v2249_v37, %v1623_v9  ;;  %v1627_v63 = vrot.slane %v1608_v51, %v2776_v55  ;;  %v1631_v2 = vrot.slane %v1616_v53, %v2776_v55  ;;  %v1615_v45 = vrot.slane %v1587_v56, %v2773_v52 }
 0x52b   :  { %v1639_v4 = vrot.slane %v1601_v60, %v2776_v55  ;;  %v1618_v5 = vcombine.high %v1608_v51, %v1608_v51  ;;  %v1617_v6 = vcombine.high %v1601_v60, %v1601_v60  ;;  %v2535_v9 = vmov 5  }
 0x52c   :  { %1668 = vadd.xlane.f32.xlu0 %v1660_v35  ;;  %v1661_v34 = vmul.f32 %v2251_v57, %v1627_v63  ;;  %v1662_v10 = vmul.f32 %v2253_v61, %v1631_v2  ;;  %v1643_v33 = vrot.slane %v1615_v45, %v2776_v55  ;;  %v1619_v11 = vcombine.high %v1615_v45, %v1615_v45  ;;  %v1739_v2 = vld [vmem:[#allocation8] sm:$0xff] }
 0x52d   :  { %v1664_v13 = vmul.f32 %v2257_v8, %v1639_v4  ;;  %v1635_v36 = vrot.slane %v1618_v5, %v2776_v55  ;;  %v1647_v14 = vrot.slane %v1617_v6, %v2776_v55  ;;  %v2536_v51 = vmov 6  }
 0x52e   :  { %1670 = vadd.xlane.f32.xlu1 %v1661_v34  ;;  %v1665_v52 = vmul.f32 %v2259_v12, %v1643_v33  ;;  %v1651_v59 = vrot.slane %v1619_v11, %v2776_v55  ;;  %v2533_v55 = vmov 3   ;;  %v2537_v53 = vmov 7  }
 0x52f   :  { %v1663_v16 = vmul.f32 %v2255_v3, %v1635_v36  ;;  %v1666_v49 = vmul.f32 %v2261_v15, %v1647_v14  ;;  %v1968_v3 = vld [vmem:[%s3039_s14] ss:$0 sm:$0xff]  ;;  %s2538_s14 = smov [#allocation16]  }
 0x530   :  { %1672 = vadd.xlane.f32.xlu0 %v1662_v10  ;;  %v1667_v41 = vmul.f32 %v2263_v38, %v1651_v59  ;;  %s1861_s22 = sshll.u32 %s2538_s14, 4  ;;  %s1862_s22 = int_to_ptr.vmem [resolvable:$true] %s1861_s22 }
 0x531   :  { %s2451_s30 = scalar_lea.vmem %s1862_s22, 128  ;;  %p2456_p9 = scmp.lt.s32.totalorder %s1862_s22, %s1862_s22 }
 0x532   :  { %1678 = vadd.xlane.f32.xlu1 %v1665_v52  ;;  %p2452_p8 = scmp.ne.s32.totalorder %s1862_s22, %s2451_s30  ;;  %p2457_p10 = scmp.lt.s32.totalorder %s2451_s30, %s2451_s30 }
 0x534   :  { %1676 = vadd.xlane.f32.xlu0 %v1664_v13  ;;  %p2458_p11 = por %p2457_p10, %p2456_p9 }
 0x536   :  { %1682 = vadd.xlane.f32.xlu1 %v1667_v41  ;;  %p2459_p12 = pnand %p2458_p11, %p2452_p8 }
 0x538   :  { %1674 = vadd.xlane.f32.xlu0 %v1663_v16 }
 0x53c   :  { %1680 = vadd.xlane.f32.xlu0 %v1666_v49 }
 0x547   :  { %1743 = vperm.xlu1 %2089, %v1741_v18  }
 0x54b   :  { %2091 = vset.pattern.permute.xlu1 %v2532_v20 }
 0x54c   :  { %1764 = vperm.xlu1 %2091, %v1741_v18  }
 0x550   :  { %2092 = vset.pattern.permute.xlu1 %v2533_v55 }
 0x551   :  { %1774 = vperm.xlu1 %2092, %v1741_v18  }
 0x555   :  { %2093 = vset.pattern.permute.xlu1 %v2534_v22 }
 0x556   :  { %1784 = vperm.xlu1 %2093, %v1741_v18  }
 0x55a   :  { %2094 = vset.pattern.permute.xlu1 %v2535_v9 }
 0x55b   :  { %1794 = vperm.xlu1 %2094, %v1741_v18  }
 0x55f   :  { %2095 = vset.pattern.permute.xlu1 %v2536_v51 }
 0x560   :  { %1804 = vperm.xlu1 %2095, %v1741_v18  }
 0x564   :  { %2096 = vset.pattern.permute.xlu1 %v2537_v53 }
 0x565   :  { %1814 = vperm.xlu1 %2096, %v1741_v18  }
 0x569   :  { %2097 = vset.pattern.permute.xlu1 %v2525_v0 }
 0x5b9   :  { %v1669_v7 = vpop.xlane.xlu0 %1668 }
 0x5ba   :  { %v1695_v54 = vrot.slane %v1669_v7, %v2821_v23 }
 0x5bb   :  { %v1671_v25 = vpop.xlane.xlu1 %1670 }
 0x5bc   :  { %v1699_v27 = vrot.slane %v1671_v25, %v2821_v23 }
 0x5bd   :  { %v1673_v26 = vpop.xlane.xlu0 %1672 }
 0x5be   :  { %v1703_v42 = vrot.slane %v1673_v26, %v2821_v23  ;;  %v1724_v50 = vsel %vm830_vm0, %v1699_v27, %v1695_v54 }
 0x5bf   :  { %v1679_v29 = vpop.xlane.xlu1 %1678 }
 0x5c0   :  { %v1725_v31 = vsel %vm832_vm1, %v1703_v42, %v1724_v50  ;;  %v1715_v58 = vrot.slane %v1679_v29, %v2821_v23 }
 0x5c1   :  { %v1677_v28 = vpop.xlane.xlu0 %1676 }
 0x5c2   :  { %v1711_v32 = vrot.slane %v1677_v28, %v2821_v23 }
 0x5c3   :  { %v1683_v47 = vpop.xlane.xlu1 %1682 }
 0x5c4   :  { %v1723_v40 = vrot.slane %v1683_v47, %v2821_v23 }
 0x5c5   :  { %v1675_v39 = vpop.xlane.xlu0 %1674 }
 0x5c6   :  { %v1707_v44 = vrot.slane %v1675_v39, %v2821_v23 }
 0x5c7   :  { %v1744_v6 = vpop.permute.xlu1 %1743 }
 0x5c8   :  { %v1726_v1 = vsel %vm834_vm2, %v1707_v44, %v1725_v31  ;;  %vm1745_vm1 = vcmp.eq.s32.totalorder %v1744_v6, %v2817_v21 }
 0x5c9   :  { %v1727_v17 = vsel %vm836_vm3, %v1711_v32, %v1726_v1  ;;  %v1681_v24 = vpop.xlane.xlu0 %1680 }
 0x5ca   :  { %v1719_v30 = vrot.slane %v1681_v24, %v2821_v23  ;;  %v1728_v43 = vsel %vm838_vm4, %v1715_v58, %v1727_v17 }
 0x5cb   :  { %v1765_v8 = vpop.permute.xlu1 %1764 }
 0x5cc   :  { %v1729_v46 = vsel %vm840_vm5, %v1719_v30, %v1728_v43  ;;  %vm1766_vm2 = vcmp.eq.s32.totalorder %v1765_v8, %v2817_v21 }
 0x5cd   :  { %v1730_v62 = vsel %vm842_vm6, %v1723_v40, %v1729_v46 }
 0x5ce   :  { %v1732_v48 = vsel %vm169_vm7, %v1730_v62, -1e+30 }
 0x5cf   :  { %v1733_v37 = vsel %vm846_vm8, %v1732_v48, -inf }
 0x5d0   :  { %1734 = vmax.xlane.f32.xlu0 %v1733_v37  ;;  %v1775_v34 = vpop.permute.xlu1 %1774 }
 0x5d1   :  { %vm1776_vm3 = vcmp.eq.s32.totalorder %v1775_v34, %v2817_v21 }
 0x5d5   :  { %v1785_v10 = vpop.permute.xlu1 %1784 }
 0x5d6   :  { %vm1786_vm4 = vcmp.eq.s32.totalorder %v1785_v10, %v2817_v21 }
 0x5da   :  { %v1795_v33 = vpop.permute.xlu1 %1794 }
 0x5db   :  { %vm1796_vm5 = vcmp.eq.s32.totalorder %v1795_v33, %v2817_v21 }
 0x5df   :  { %v1805_v11 = vpop.permute.xlu1 %1804 }
 0x5e0   :  { %vm1806_vm6 = vcmp.eq.s32.totalorder %v1805_v11, %v2817_v21 }
 0x5e4   :  { %v1815_v12 = vpop.permute.xlu1 %1814 }
 0x5e5   :  { %vm1816_vm7 = vcmp.eq.s32.totalorder %v1815_v12, %v2817_v21 }
 0x5e6   :  { %1754 = vperm.xlu0 %2090, %v1741_v18  }
 0x5ea   :  { %2105 = vset.pattern.permute.xlu0 %v2537_v53 }
 0x5fb   :  { %v1541_v23 = vpop.f32.mrb[8].mxu1 }
 0x5fc   :  { %v2050_v56 = vpop.f32.mrb[9].mxu1  ;;  %v2982_v0 = vadd.f32 %v1968_v3, %v1541_v23 }
 0x5fd   :  { %v1544_v57 = vpop.f32.mrb[10].mxu1 }
 0x5fe   :  { %v2051_v60 = vpop.f32.mrb[11].mxu1 }
 0x65d   :  { %v2975_v61 = vpop.xlane.xlu0 %1734 }
 0x65e   :  { %v1736_v35 = vsub.f32 %v1732_v48, %v2975_v61 }
 0x660   :  { %v1737_v63 = vmul.f32 1.442695, %v1736_v35 }
 0x662   :  { %2264 = vpow2.f32 %v1737_v63 }
 0x665   :  { %v1755_v52 = vpop.permute.xlu0 %1754 }
 0x666   :  { %vm1756_vm0 = vcmp.eq.s32.totalorder %v1755_v52, %v2817_v21 }
 0x66c   :  { %v2265_v45 = vpop.eup %2264 }
 0x66d   :  { %v1740_v4 = vmul.f32 %v2265_v45, %v1739_v2  ;;  %v1823_v5 = vsel %vm846_vm8, %v2265_v45, 0.0  ;;  %vm1828_vm8 = vcmp.lt.s32.totalorder %v2817_v21, 40 }
 0x66e   :  { %1824 = vadd.xlane.f32.xlu0 %v1823_v5 }
 0x66f   :  { %1748 = vperm.xlu1 %2097, %v1740_v4  }
 0x672   :  { %1830 = vmax.xlane.f32.xlu0 %v2982_v0 }
 0x673   :  { %2098 = vset.pattern.permute.xlu1 %v2531_v19 }
 0x674   :  { %1758 = vperm.xlu1 %2098, %v1740_v4  }
 0x678   :  { %2099 = vset.pattern.permute.xlu1 %v2532_v20 }
 0x679   :  { %1768 = vperm.xlu1 %2099, %v1740_v4  }
 0x67d   :  { %2100 = vset.pattern.permute.xlu1 %v2533_v55 }
 0x67e   :  { %1778 = vperm.xlu1 %2100, %v1740_v4  }
 0x682   :  { %2101 = vset.pattern.permute.xlu1 %v2534_v22 }
 0x683   :  { %1788 = vperm.xlu1 %2101, %v1740_v4  }
 0x687   :  { %2102 = vset.pattern.permute.xlu1 %v2535_v9 }
 0x688   :  { %1798 = vperm.xlu1 %2102, %v1740_v4  }
 0x68c   :  { %2103 = vset.pattern.permute.xlu1 %v2536_v51 }
 0x68d   :  { %1808 = vperm.xlu1 %2103, %v1740_v4  }
 0x691   :  { %2104 = vset.pattern.permute.xlu1 %v2537_v53 }
 0x692   :  { %1818 = vperm.xlu1 %2104, %v1740_v4  }
 0x6ee   :  { %v1749_v13 = vpop.permute.xlu1 %1748 }
 0x6ef   :  { %v1751_v16 = vsel %vm1745_vm1, %v1749_v13, 0.0 }
 0x6f3   :  { %v1759_v36 = vpop.permute.xlu1 %1758 }
 0x6f4   :  { %v1761_v38 = vsel %vm1756_vm0, %v1759_v36, 0.0 }
 0x6f5   :  { %v1762_v41 = vadd.f32 %v1761_v38, %v1751_v16 }
 0x6f8   :  { %v1769_v14 = vpop.permute.xlu1 %1768 }
 0x6f9   :  { %v1771_v49 = vsel %vm1766_vm2, %v1769_v14, 0.0 }
 0x6fa   :  { %v1772_v20 = vadd.f32 %v1771_v49, %v1762_v41 }
 0x6fb   :  { %v1825_v54 = vpop.xlane.xlu0 %1824 }
 0x6fc   :  { %v1826_v39 = vmul.f32 1e-10, %v1825_v54 }
 0x6fd   :  { %v1779_v15 = vpop.permute.xlu1 %1778 }
 0x6fe   :  { %v1781_v19 = vsel %vm1776_vm3, %v1779_v15, 0.0 }
 0x6ff   :  { %v1782_v22 = vadd.f32 %v1781_v19, %v1772_v20  ;;  %v1831_v24 = vpop.xlane.xlu0 %1830 }
 0x702   :  { %v1789_v59 = vpop.permute.xlu1 %1788 }
 0x703   :  { %v1791_v55 = vsel %vm1786_vm4, %v1789_v59, 0.0 }
 0x704   :  { %v1792_v26 = vadd.f32 %v1791_v55, %v1782_v22 }
 0x707   :  { %v1799_v18 = vpop.permute.xlu1 %1798 }
 0x708   :  { %v1801_v7 = vsel %vm1796_vm5, %v1799_v18, 0.0 }
 0x709   :  { %v1802_v28 = vadd.f32 %v1801_v7, %v1792_v26 }
 0x70c   :  { %v1809_v25 = vpop.permute.xlu1 %1808 }
 0x70d   :  { %v1811_v27 = vsel %vm1806_vm6, %v1809_v25, 0.0 }
 0x70e   :  { %v1812_v29 = vadd.f32 %v1811_v27, %v1802_v28 }
 0x711   :  { %v1819_v42 = vpop.permute.xlu1 %1818 }
 0x712   :  { %v1821_v50 = vsel %vm1816_vm7, %v1819_v42, 0.0 }
 0x713   :  { %v1822_v44 = vadd.f32 %v1821_v50, %v1812_v29 }
 0x715   :  { %v1827_v31 = vadd.f32 %v1826_v39, %v1822_v44 }
 0x717   :  { %v1829_v32 = vsel %vm1828_vm8, %v1827_v31, 0.0 }
 0x718   :  { %1832 = vmax.xlane.f32.xlu1 %v1829_v32 }
 0x7a5   :  { %v1833_v58 = vpop.xlane.xlu1 %1832 }
 0x7a6   :  { %2266 = vlog2.f32 %v1833_v58 }
 0x7b0   :  { %v2267_v47 = vpop.eup %2266 }
 0x7b1   :  { %v1835_v1 = vmul.f32 0.6931472, %v2267_v47 }
 0x7b3   :  { %v1836_v17 = vadd.f32 %v1835_v1, %v2975_v61 }
 0x7b5   :  { %v1837_v30 = vmax.f32 %v1831_v24, %v1836_v17 }
 0x7b7   :  { %v1838_v43 = vsub.f32 %v2982_v0, %v1837_v30  ;;  %v1841_v40 = vsub.f32 %v2975_v61, %v1837_v30 }
 0x7b9   :  { %v1839_v46 = vmul.f32 1.442695, %v1838_v43  ;;  %v1842_v62 = vmul.f32 1.442695, %v1841_v40 }
 0x7bb   :  { %2268 = vpow2.f32 %v1839_v46 }
 0x7bc   :  { %2270 = vpow2.f32 %v1842_v62 }
 0x7c5   :  { %v2269_v21 = vpop.eup %2268 }
 0x7c6   :  { %v2271_v48 = vpop.eup %2270  ;;  %1845 = vadd.xlane.f32.xlu0 %v2269_v21 }
 0x7c7   :  { %v1844_v37 = vmul.f32 %v2271_v48, %v1829_v32 }
 0x7c9   :  { %v1851_v9 = vadd.f32 %v2269_v21, %v1844_v37 }
 0x7ca   :  { %1847 = vadd.xlane.f32.xlu0 %v1844_v37 }
 0x7cb   :  { %2462 = shalt.err (!%p2459_p12)
}
 0x7cc   :  { %s2463_s2 = scalar_lea.hbm %s3040_s15, 128 }
 0x7cd   :  { %p2464_p13 = scmp.ne.s32.totalorder %s3040_s15, %s2463_s2  ;;  %p2467_p0 = scmp.lt.u32.totalorder %s2463_s2, %s3040_s15 }
 0x7cf   :  { %p2469_p1 = pnand %p2467_p0, %p2464_p13 }
 0x7d1   :  { %2472 = shalt.err (!%p2469_p1)
}
 0x7d2   :  { %1864 = dma.vmem_to_hbm [thread:$0]  %s1862_s22, 128, %s3040_s15, [#allocation4]  }
 0x7d3   :  { %s2539_s21 = smov [#allocation17]  }
 0x7d4   :  { %s1871_s25 = sshll.u32 %s2539_s21, 4  ;;  %s1872_s25 = int_to_ptr.vmem [resolvable:$true] %s1871_s25 }
 0x7d5   :  { %s2473_s26 = scalar_lea.vmem %s1872_s25, 128  ;;  %p2478_p3 = scmp.lt.s32.totalorder %s1872_s25, %s1872_s25 }
 0x7d6   :  { %p2474_p2 = scmp.ne.s32.totalorder %s1872_s25, %s2473_s26  ;;  %p2479_p4 = scmp.lt.s32.totalorder %s2473_s26, %s2473_s26 }
 0x7d8   :  { %p2480_p5 = por %p2479_p4, %p2478_p3 }
 0x7da   :  { %p2481_p6 = pnand %p2480_p5, %p2474_p2 }
 0x853   :  { %v1846_v51 = vpop.xlane.xlu0 %1845 }
 0x857   :  { %v1848_v53 = vpop.xlane.xlu0 %1847 }
 0x858   :  { %v1849_v23 = vadd.f32 %v1848_v53, %v1846_v51 }
 0x85a   :  { %2272 = vrcp.f32 %v1849_v23 }
 0x864   :  { %v2273_v56 = vpop.eup %2272 }
 0x865   :  { %v1853_v57 = vmul.f32 %v2273_v56, %v1851_v9 }
 0x867   :  { %1854 = vst [vmem:[#allocation17] sm:$0xff] %v1853_v57 }
 0x868   :  { %2484 = shalt.err (!%p2481_p6)
}
 0x869   :  { %s2485_s15 = scalar_lea.hbm %s3041_s16, 128 }
 0x86a   :  { %p2486_p7 = scmp.ne.s32.totalorder %s3041_s16, %s2485_s15  ;;  %p2489_p8 = scmp.lt.u32.totalorder %s2485_s15, %s3041_s16 }
 0x86c   :  { %p2491_p9 = pnand %p2489_p8, %p2486_p7 }
 0x86e   :  { %2494 = shalt.err (!%p2491_p9)
}
 0x86f   :  { %1874 = dma.vmem_to_hbm [thread:$0]  %s1872_s25, 128, %s3041_s16, [#allocation18]  }
 0x870   :  { %2505 = dma.done.wait [#allocation4], 128  }
 0x871   :  { %2506 = vsyncadd [#allocation4], 4294967168 }
 0x872   :  { %2507 = dma.done.wait [#allocation18], 128  }
 0x873   :  { %2508 = vsyncadd [#allocation18], 4294967168 }
 0x874   :  { %1881 = vsyncpa [#allocation3], 1 }
 0x875   :  { %1882 = vsyncpa [#allocation6], 1 }
 0x876   :  { %1883 = vsyncpa [#allocation9], 1 }
 0x877   :  { %1884 = vsyncpa [#allocation12], 1 }
 0x878   :  { %1885 = vsyncpa [#allocation15], 1 }
 0x879   :  { %1886 = vsyncpa [#allocation4], 1 }
 0x87a   :  { %1887 = vsyncpa [#allocation18], 1 }

// kernel: tpu_custom_call.1
= control target key start
LH: loop header
LB: loop body
LE: loop exit
PB: predicated region body
PF: predicated region fallthrough
CT: control target
= control target key end

     0   :  { %s3025_s0 = inlined_call_operand.hbm [shape: f32[8,8,128], index: 0, kind: input, shape index: {}]   ;;  %s3026_s1 = inlined_call_operand.hbm [shape: f32[8,128], index: 1, kind: input, shape index: {}]   ;;  %s3027_s2 = inlined_call_operand.hbm [shape: f32[8,128], index: 2, kind: input, shape index: {}]   ;;  %s3028_s3 = inlined_call_operand.vmem [shape: s32[8,8], index: 3, kind: input, shape index: {}]   ;;  %s3029_s4 = inlined_call_operand.hbm [shape: f32[8,8], index: 4, kind: input, shape index: {}]   ;;  %s3030_s5 = inlined_call_operand.hbm [shape: bf16[128,256], index: 5, kind: input, shape index: {}]   ;;  %s3031_s6 = inlined_call_operand.hbm [shape: bf16[128,512], index: 6, kind: input, shape index: {}]   ;;  %s3032_s7 = inlined_call_operand.vmem [shape: f32[1,128], index: 7, kind: input, shape index: {}]   ;;  %s3033_s8 = inlined_call_operand.vmem [shape: f32[1,128], index: 8, kind: input, shape index: {}]   ;;  %s3034_s9 = inlined_call_operand.hbm [shape: bf16[128,384], index: 9, kind: input, shape index: {}]   ;;  %s3035_s10 = inlined_call_operand.vmem [shape: f32[1,384], index: 10, kind: input, shape index: {}]   ;;  %s3036_s11 = inlined_call_operand.vmem [shape: f32[1,384], index: 11, kind: input, shape index: {}]   ;;  %s3037_s12 = inlined_call_operand.vmem [shape: f32[1,128], index: 12, kind: input, shape index: {}]   ;;  %s3038_s13 = inlined_call_operand.hbm [shape: bf16[128,128], index: 13, kind: input, shape index: {}]   ;;  %s3039_s14 = inlined_call_operand.vmem [shape: f32[1,128], index: 14, kind: input, shape index: {}]   ;;  %s3040_s15 = inlined_call_operand.hbm [shape: f32[8,128], index: 15, kind: output, shape index: {0}]   ;;  %s3041_s16 = inlined_call_operand.hbm [shape: f32[8,128], index: 16, kind: output, shape index: {1}]  }
   0x1   :  { %3043 = sst [smem:[#allocation26_spill]] %s3025_s0 }
   0x2   :  { %22 = vsyncpa [#allocation3], 0 }
   0x3   :  { %23 = vsyncpa [#allocation6], 0 }
   0x4   :  { %24 = vsyncpa [#allocation9], 0 }
   0x5   :  { %25 = vsyncpa [#allocation12], 0 }
   0x6   :  { %26 = vsyncpa [#allocation15], 0 }
   0x7   :  { %27 = vsyncpa [#allocation4], 0 }
   0x8   :  { %28 = vsyncpa [#allocation18], 0  ;;  %s2509_s21 = smov [#allocation5]   ;;  %s2510_s23 = smov [#allocation8]  }
   0x9   :  { %s47_s22 = sshll.u32 %s2509_s21, 4  ;;  %s69_s24 = sshll.u32 %s2510_s23, 4  ;;  %s48_s22 = int_to_ptr.vmem [resolvable:$true] %s47_s22  ;;  %s70_s24 = int_to_ptr.vmem [resolvable:$true] %s69_s24 }
   0xa   :  { %s2275_s27 = scalar_lea.hbm %s3026_s1, 128 }
   0xb   :  { %p2276_p0 = scmp.ne.s32.totalorder %s3026_s1, %s2275_s27  ;;  %p2279_p1 = scmp.lt.u32.totalorder %s2275_s27, %s3026_s1 }
   0xd   :  { %p2281_p2 = pnand %p2279_p1, %p2276_p0 }
   0xf   :  { %2284 = shalt.err (!%p2281_p2)
}
  0x10   :  { %s2285_s17 = scalar_lea.vmem %s48_s22, 128  ;;  %p2290_p4 = scmp.lt.s32.totalorder %s48_s22, %s48_s22 }
  0x11   :  { %p2286_p3 = scmp.ne.s32.totalorder %s48_s22, %s2285_s17  ;;  %p2291_p5 = scmp.lt.s32.totalorder %s2285_s17, %s2285_s17 }
  0x13   :  { %p2292_p6 = por %p2291_p5, %p2290_p4 }
  0x15   :  { %p2293_p7 = pnand %p2292_p6, %p2286_p3 }
  0x17   :  { %2296 = shalt.err (!%p2293_p7)
}
  0x18   :  { %50 = dma.hbm_to_vmem [thread:$0]  %s3026_s1, 128, %s48_s22, [#allocation6]  }
  0x19   :  { %s2297_s23 = scalar_lea.hbm %s3029_s4, 128 }
  0x1a   :  { %p2298_p8 = scmp.ne.s32.totalorder %s3029_s4, %s2297_s23  ;;  %p2301_p9 = scmp.lt.u32.totalorder %s2297_s23, %s3029_s4 }
  0x1c   :  { %p2303_p10 = pnand %p2301_p9, %p2298_p8 }
  0x1e   :  { %2306 = shalt.err (!%p2303_p10)
}
  0x1f   :  { %s2307_s29 = scalar_lea.vmem %s70_s24, 128  ;;  %p2312_p12 = scmp.lt.s32.totalorder %s70_s24, %s70_s24 }
  0x20   :  { %p2308_p11 = scmp.ne.s32.totalorder %s70_s24, %s2307_s29  ;;  %p2313_p13 = scmp.lt.s32.totalorder %s2307_s29, %s2307_s29 }
  0x22   :  { %p2314_p0 = por %p2313_p13, %p2312_p12 }
  0x24   :  { %p2315_p1 = pnand %p2314_p0, %p2308_p11 }
  0x26   :  { %2318 = shalt.err (!%p2315_p1)
}
  0x27   :  { %72 = dma.hbm_to_vmem [thread:$0]  %s3029_s4, 128, %s70_s24, [#allocation9]  }
  0x28   :  { %s2511_s30 = smov [#allocation11]   ;;  %s2319_s19 = scalar_lea.hbm %s3031_s6, 4096 }
  0x29   :  { %s90_s0 = sshll.u32 %s2511_s30, 4  ;;  %p2320_p2 = scmp.ne.s32.totalorder %s3031_s6, %s2319_s19  ;;  %s91_s0 = int_to_ptr.vmem [resolvable:$true] %s90_s0 }
  0x2a   :  { %p2323_p3 = scmp.lt.u32.totalorder %s2319_s19, %s3031_s6 }
  0x2c   :  { %p2325_p4 = pnand %p2323_p3, %p2320_p2 }
  0x2e   :  { %2328 = shalt.err (!%p2325_p4)
}
  0x2f   :  { %s2329_s26 = scalar_lea.vmem %s91_s0, 4096  ;;  %p2334_p6 = scmp.lt.s32.totalorder %s91_s0, %s91_s0 }
  0x30   :  { %p2330_p5 = scmp.ne.s32.totalorder %s91_s0, %s2329_s26  ;;  %p2335_p7 = scmp.lt.s32.totalorder %s2329_s26, %s2329_s26 }
  0x32   :  { %p2336_p8 = por %p2335_p7, %p2334_p6 }
  0x34   :  { %p2337_p9 = pnand %p2336_p8, %p2330_p5 }
  0x36   :  { %2340 = shalt.err (!%p2337_p9)
}
  0x37   :  { %s2512_s4 = smov 256   ;;  %s2513_s24 = smov 16  }
  0x38   :  { %96 = dma.hbm_to_vmem [thread:$0]  %s3031_s6, 4096, %s91_s0, [#allocation12], %s2512_s4, %s2512_s4, %s2513_s24  }
  0x39   :  { %s2514_s29 = smov [#allocation2]   ;;  %s3044_s17 = sld [smem:[#allocation26_spill]] }
  0x3a   :  { %s34_s1 = sshll.u32 %s2514_s29, 4  ;;  %s35_s1 = int_to_ptr.vmem [resolvable:$true] %s34_s1 }
  0x3f   :  { %s2341_s18 = scalar_lea.hbm %s3044_s17, 1024 }
  0x40   :  { %p2342_p10 = scmp.ne.s32.totalorder %s3044_s17, %s2341_s18  ;;  %p2345_p11 = scmp.lt.u32.totalorder %s2341_s18, %s3044_s17 }
  0x42   :  { %p2347_p12 = pnand %p2345_p11, %p2342_p10 }
  0x44   :  { %2350 = shalt.err (!%p2347_p12)
}
  0x45   :  { %s2351_s25 = scalar_lea.vmem %s35_s1, 1024  ;;  %p2356_p0 = scmp.lt.s32.totalorder %s35_s1, %s35_s1 }
  0x46   :  { %p2352_p13 = scmp.ne.s32.totalorder %s35_s1, %s2351_s25  ;;  %p2357_p1 = scmp.lt.s32.totalorder %s2351_s25, %s2351_s25 }
  0x48   :  { %p2358_p2 = por %p2357_p1, %p2356_p0 }
  0x4a   :  { %p2359_p3 = pnand %p2358_p2, %p2352_p13 }
  0x4c   :  { %2362 = shalt.err (!%p2359_p3)
}
  0x4d   :  { %s2515_s6 = smov 128   ;;  %s2516_s0 = smov 8  }
  0x4e   :  { %40 = dma.hbm_to_vmem [thread:$0]  %s3044_s17, 1024, %s35_s1, [#allocation3], %s2515_s6, %s2515_s6, %s2516_s0  }
  0x4f   :  { %s2517_s24 = smov [#allocation7]   ;;  %s2518_s28 = smov [#allocation10]  }
  0x50   :  { %s57_s27 = sshll.u32 %s2517_s24, 4  ;;  %s78_s29 = sshll.u32 %s2518_s28, 4  ;;  %s58_s27 = int_to_ptr.vmem [resolvable:$true] %s57_s27  ;;  %s2676_s29 = int_to_ptr.vmem [resolvable:$true] %s78_s29 }
  0x51   :  { %s2363_s18 = scalar_lea.hbm %s3027_s2, 128 }
  0x52   :  { %p2364_p4 = scmp.ne.s32.totalorder %s3027_s2, %s2363_s18  ;;  %p2367_p5 = scmp.lt.u32.totalorder %s2363_s18, %s3027_s2 }
  0x54   :  { %p2369_p6 = pnand %p2367_p5, %p2364_p4 }
  0x56   :  { %2372 = shalt.err (!%p2369_p6)
}
  0x57   :  { %s2373_s1 = scalar_lea.vmem %s58_s27, 128  ;;  %p2378_p8 = scmp.lt.s32.totalorder %s58_s27, %s58_s27 }
  0x58   :  { %p2374_p7 = scmp.ne.s32.totalorder %s58_s27, %s2373_s1  ;;  %p2379_p9 = scmp.lt.s32.totalorder %s2373_s1, %s2373_s1 }
  0x5a   :  { %p2380_p10 = por %p2379_p9, %p2378_p8 }
  0x5c   :  { %p2381_p11 = pnand %p2380_p10, %p2374_p7 }
  0x5e   :  { %2384 = shalt.err (!%p2381_p11)
}
  0x5f   :  { %60 = dma.hbm_to_vmem [thread:$0]  %s3027_s2, 128, %s58_s27, [#allocation6]  }
  0x60   :  { %s2385_s24 = scalar_lea.hbm %s3030_s5, 2048 }
  0x61   :  { %p2386_p12 = scmp.ne.s32.totalorder %s3030_s5, %s2385_s24  ;;  %p2389_p13 = scmp.lt.u32.totalorder %s2385_s24, %s3030_s5 }
  0x63   :  { %p2391_p0 = pnand %p2389_p13, %p2386_p12 }
  0x65   :  { %2394 = shalt.err (!%p2391_p0)
}
  0x66   :  { %s2395_s19 = scalar_lea.vmem %s2676_s29, 2048  ;;  %p2400_p2 = scmp.lt.s32.totalorder %s2676_s29, %s2676_s29 }
  0x67   :  { %p2396_p1 = scmp.ne.s32.totalorder %s2676_s29, %s2395_s19  ;;  %p2401_p3 = scmp.lt.s32.totalorder %s2395_s19, %s2395_s19 }
  0x69   :  { %p2402_p4 = por %p2401_p3, %p2400_p2 }
  0x6b   :  { %p2403_p5 = pnand %p2402_p4, %p2396_p1 }
  0x6d   :  { %2406 = shalt.err (!%p2403_p5)
}
  0x6e   :  { %84 = dma.hbm_to_vmem [thread:$0]  %s3030_s5, 2048, %s2676_s29, [#allocation9], %s2515_s6, %s2515_s6, %s2516_s0  }
  0x6f   :  { %s2519_s20 = smov [#allocation13]   ;;  %s2407_s17 = scalar_lea.hbm %s3034_s9, 3072 }
  0x70   :  { %s106_s21 = sshll.u32 %s2519_s20, 4  ;;  %p2408_p6 = scmp.ne.s32.totalorder %s3034_s9, %s2407_s17  ;;  %s107_s21 = int_to_ptr.vmem [resolvable:$true] %s106_s21 }
  0x71   :  { %p2411_p7 = scmp.lt.u32.totalorder %s2407_s17, %s3034_s9 }
  0x73   :  { %p2413_p8 = pnand %p2411_p7, %p2408_p6 }
  0x75   :  { %2416 = shalt.err (!%p2413_p8)
}
  0x76   :  { %s2417_s28 = scalar_lea.vmem %s107_s21, 3072  ;;  %p2422_p10 = scmp.lt.s32.totalorder %s107_s21, %s107_s21 }
  0x77   :  { %p2418_p9 = scmp.ne.s32.totalorder %s107_s21, %s2417_s28  ;;  %p2423_p11 = scmp.lt.s32.totalorder %s2417_s28, %s2417_s28 }
  0x79   :  { %p2424_p12 = por %p2423_p11, %p2422_p10 }
  0x7b   :  { %p2425_p13 = pnand %p2424_p12, %p2418_p9 }
  0x7d   :  { %2428 = shalt.err (!%p2425_p13)
}
  0x7e   :  { %s2520_s5 = smov 192   ;;  %s2521_s6 = smov 12  }
  0x7f   :  { %112 = dma.hbm_to_vmem [thread:$0]  %s3034_s9, 3072, %s107_s21, [#allocation12], %s2520_s5, %s2520_s5, %s2521_s6  }
  0x80   :  { %s2522_s22 = smov [#allocation14]   ;;  %s2429_s2 = scalar_lea.hbm %s3038_s13, 1024 }
  0x81   :  { %s124_s30 = sshll.u32 %s2522_s22, 4  ;;  %p2430_p0 = scmp.ne.s32.totalorder %s3038_s13, %s2429_s2  ;;  %s125_s30 = int_to_ptr.vmem [resolvable:$true] %s124_s30 }
  0x82   :  { %p2433_p1 = scmp.lt.u32.totalorder %s2429_s2, %s3038_s13 }
  0x84   :  { %p2435_p2 = pnand %p2433_p1, %p2430_p0 }
  0x86   :  { %2438 = shalt.err (!%p2435_p2)
}
  0x87   :  { %s2439_s17 = scalar_lea.vmem %s125_s30, 1024  ;;  %p2444_p4 = scmp.lt.s32.totalorder %s125_s30, %s125_s30 }
  0x88   :  { %p2440_p3 = scmp.ne.s32.totalorder %s125_s30, %s2439_s17  ;;  %p2445_p5 = scmp.lt.s32.totalorder %s2439_s17, %s2439_s17 }
  0x8a   :  { %p2446_p6 = por %p2445_p5, %p2444_p4 }
  0x8c   :  { %p2447_p7 = pnand %p2446_p6, %p2440_p3 }
  0x8e   :  { %2450 = shalt.err (!%p2447_p7)
}
  0x8f   :  { %s2523_s9 = smov 64   ;;  %s2524_s21 = smov 4  }
  0x90   :  { %130 = dma.hbm_to_vmem [thread:$0]  %s3038_s13, 1024, %s125_s30, [#allocation15], %s2523_s9, %s2523_s9, %s2524_s21  }
  0x91   :  { %2495 = dma.done.wait [#allocation3], 1024  }
  0x92   :  { %2496 = vsyncadd [#allocation3], 4294966272 }
  0x93   :  { %2497 = dma.done.wait [#allocation6], 256  }
  0x94   :  { %2498 = vsyncadd [#allocation6], 4294967040 }
  0x95   :  { %2499 = dma.done.wait [#allocation9], 2176  }
  0x96   :  { %2500 = vsyncadd [#allocation9], 4294965120 }
  0x97   :  { %2501 = dma.done.wait [#allocation12], 7168  }
  0x98   :  { %2502 = vsyncadd [#allocation12], 4294960128 }
  0x99   :  { %2503 = dma.done.wait [#allocation15], 1024  }
  0x9a   :  { %2504 = vsyncadd [#allocation15], 4294966272  ;;  %v2525_v0 = vmov 0   ;;  %v2106_v1 = vld [vmem:[#allocation10 + $0x4] ss:$8 sps:$4 sm:$0xff]   ;;  %v2739_v34 = vld [vmem:[#allocation2 + $0x8] sm:$0xff]  ;;  %v167_v47 = vlaneseq }
  0x9b   :  { %302 = vmatprep.mubr.bf16.mxu0 %v2525_v0  ;;  %568 = vmatprep.mubr.bf16.mxu1 %v2525_v0  ;;  %v2108_v2 = vld [vmem:[#allocation11 + $0x4] ss:$16 sps:$4 sm:$0xff]   ;;  %v2110_v3 = vld [vmem:[#allocation10] ss:$8 sps:$4 sm:$0xff]   ;;  %v2116_v7 = vld [vmem:[#allocation10 + $0x10] ss:$8 sps:$4 sm:$0xff]  }
  0x9c   :  { %2089 = vset.pattern.permute.xlu1 %v2525_v0  ;;  %270 = vmatprep.subr.bf16.mxu0 %v2106_v1  ;;  %v2111_v4 = vld [vmem:[#allocation11] ss:$16 sps:$4 sm:$0xff]   ;;  %v2112_v5 = vld [vmem:[#allocation10 + $0x14] ss:$8 sps:$4 sm:$0xff]   ;;  %v2118_v9 = vld [vmem:[#allocation10 + $0x24] ss:$8 sps:$4 sm:$0xff]  }
  0x9d   :  { %536 = vmatprep.subr.bf16.mxu1 %v2108_v2  ;;  %271 = vmatpush1.bf16.msra.mxu0 %v2110_v3  ;;  %v2114_v6 = vld [vmem:[#allocation11 + $0x24] ss:$16 sps:$4 sm:$0xff]   ;;  %v2117_v8 = vld [vmem:[#allocation11 + $0x20] ss:$16 sps:$4 sm:$0xff]   ;;  %v2737_v33 = vld [vmem:[#allocation2] sm:$0xff]  ;;  %v2770_v50 = vshrl.u32 %v167_v47, 7 }
  0x9e   :  { %537 = vmatpush1.bf16.msra.mxu1 %v2111_v4  ;;  %272 = vmatprep.subr.bf16.mxu0 %v2112_v5  ;;  %v2120_v10 = vld [vmem:[#allocation11 + $0x44] ss:$16 sps:$4 sm:$0xff]   ;;  %v2122_v11 = vld [vmem:[#allocation10 + $0x20] ss:$8 sps:$4 sm:$0xff]   ;;  %v2128_v15 = vld [vmem:[#allocation10 + $0x30] ss:$8 sps:$4 sm:$0xff]   ;;  %v170_v36 = vpack.c.bf16 %v2739_v34, %v2737_v33 }
  0x9f   :  { %538 = vmatprep.subr.bf16.mxu1 %v2114_v6  ;;  %v2123_v12 = vld [vmem:[#allocation11 + $0x40] ss:$16 sps:$4 sm:$0xff]   ;;  %v2124_v13 = vld [vmem:[#allocation10 + $0x34] ss:$8 sps:$4 sm:$0xff]   ;;  %v2130_v17 = vld [vmem:[#allocation10 + $0x44] ss:$8 sps:$4 sm:$0xff]  }
  0xa0   :  { %v2126_v14 = vld [vmem:[#allocation11 + $0x64] ss:$16 sps:$4 sm:$0xff]   ;;  %v2129_v16 = vld [vmem:[#allocation11 + $0x60] ss:$16 sps:$4 sm:$0xff]   ;;  %v166_v35 = vld [vmem:[#allocation5] sm:$0xff]  ;;  %v2776_v55 = vsub.s32 0, %v2770_v50 }
  0xa1   :  { %273 = vmatpush1.bf16.msra.mxu0 %v2116_v7  ;;  %v2132_v18 = vld [vmem:[#allocation11 + $0x84] ss:$16 sps:$4 sm:$0xff]   ;;  %v2134_v19 = vld [vmem:[#allocation10 + $0x40] ss:$8 sps:$4 sm:$0xff]   ;;  %v2140_v23 = vld [vmem:[#allocation10 + $0x50] ss:$8 sps:$4 sm:$0xff]   ;;  %v2743_v37 = vpack.c.bf16 %v166_v35, %v166_v35 }
  0xa2   :  { %539 = vmatpush1.bf16.msra.mxu1 %v2117_v8  ;;  %274 = vmatprep.subr.bf16.mxu0 %v2118_v9  ;;  %v2135_v20 = vld [vmem:[#allocation11 + $0x80] ss:$16 sps:$4 sm:$0xff]   ;;  %v2136_v21 = vld [vmem:[#allocation10 + $0x54] ss:$8 sps:$4 sm:$0xff]   ;;  %v2142_v25 = vld [vmem:[#allocation10 + $0x64] ss:$8 sps:$4 sm:$0xff]  }
  0xa3   :  { %540 = vmatprep.subr.bf16.mxu1 %v2120_v10  ;;  %v2138_v22 = vld [vmem:[#allocation11 + $0xa4] ss:$16 sps:$4 sm:$0xff]   ;;  %v2141_v24 = vld [vmem:[#allocation11 + $0xa0] ss:$16 sps:$4 sm:$0xff]   ;;  %v2745_v38 = vld [vmem:[#allocation2 + $0x10] sm:$0xff]  ;;  %vm830_vm0 = vcmask 1041409  }
  0xa4   :  { %v2144_v26 = vld [vmem:[#allocation11 + $0xc4] ss:$16 sps:$4 sm:$0xff]   ;;  %v2146_v27 = vld [vmem:[#allocation10 + $0x60] ss:$8 sps:$4 sm:$0xff]   ;;  %v2152_v31 = vld [vmem:[#allocation10 + $0x70] ss:$8 sps:$4 sm:$0xff]  }
  0xa5   :  { %275 = vmatpush1.bf16.msra.mxu0 %v2122_v11  ;;  %v2147_v28 = vld [vmem:[#allocation11 + $0xc0] ss:$16 sps:$4 sm:$0xff]   ;;  %v2148_v29 = vld [vmem:[#allocation10 + $0x74] ss:$8 sps:$4 sm:$0xff]   ;;  %v2754_v41 = vld [vmem:[#allocation2 + $0x20] sm:$0xff]  ;;  %vm832_vm1 = vcmask 1042434  }
  0xa6   :  { %541 = vmatpush1.bf16.msra.mxu1 %v2123_v12  ;;  %276 = vmatprep.subr.bf16.mxu0 %v2124_v13  ;;  %v2150_v30 = vld [vmem:[#allocation11 + $0xe4] ss:$16 sps:$4 sm:$0xff]   ;;  %v2153_v32 = vld [vmem:[#allocation11 + $0xe0] ss:$16 sps:$4 sm:$0xff]   ;;  %v2762_v44 = vld [vmem:[#allocation2 + $0x30] sm:$0xff]  ;;  %vm834_vm2 = vcmask 1043459  }
  0xa7   :  { %542 = vmatprep.subr.bf16.mxu1 %v2126_v14  ;;  %v2747_v39 = vld [vmem:[#allocation2 + $0x18] sm:$0xff]  ;;  %v2756_v42 = vld [vmem:[#allocation2 + $0x28] sm:$0xff]  ;;  %v2526_v48 = vmov 1966171168   ;;  %v1936_v7 = vld [vmem:[%s3032_s7] ss:$0 sm:$0xff] }
  0xa8   :  { %v171_v40 = vpack.c.bf16 %v2747_v39, %v2745_v38  ;;  %v172_v43 = vpack.c.bf16 %v2756_v42, %v2754_v41  ;;  %v2764_v45 = vld [vmem:[#allocation2 + $0x38] sm:$0xff]  ;;  %v641_v49 = vunpack.c.l.s4 %v2526_v48  ;;  %vm836_vm3 = vcmask 1044484  }
  0xa9   :  { %277 = vmatpush1.bf16.msra.mxu0 %v2128_v15  ;;  %v173_v46 = vpack.c.bf16 %v2764_v45, %v2762_v44  ;;  %vm838_vm4 = vcmask 1045509   ;;  %vm840_vm5 = vcmask 1046534   ;;  %vm842_vm6 = vcmask 1047559  }
  0xaa   :  { %543 = vmatpush1.bf16.msra.mxu1 %v2129_v16  ;;  %278 = vmatprep.subr.bf16.mxu0 %v2130_v17  ;;  %v642_v51 = vunpack.c.0.s8 %v641_v49  ;;  %vm846_vm8 = vcmask 64512   ;;  %vm2528_vm9 = vmmov 0  }
  0xab   :  { %544 = vmatprep.subr.bf16.mxu1 %v2132_v18 }
  0xac   :  { %v2773_v52 = vsub.s32 %v642_v51, %v2770_v50 }
  0xad   :  { %279 = vmatpush1.bf16.msra.mxu0 %v2134_v19 }
  0xae   :  { %545 = vmatpush1.bf16.msra.mxu1 %v2135_v20  ;;  %280 = vmatprep.subr.bf16.mxu0 %v2136_v21 }
  0xaf   :  { %546 = vmatprep.subr.bf16.mxu1 %v2138_v22 }
  0xb1   :  { %281 = vmatpush1.bf16.msra.mxu0 %v2140_v23 }
  0xb2   :  { %547 = vmatpush1.bf16.msra.mxu1 %v2141_v24  ;;  %282 = vmatprep.subr.bf16.mxu0 %v2142_v25 }
  0xb3   :  { %548 = vmatprep.subr.bf16.mxu1 %v2144_v26 }
  0xb5   :  { %283 = vmatpush1.bf16.msra.mxu0 %v2146_v27 }
  0xb6   :  { %549 = vmatpush1.bf16.msra.mxu1 %v2147_v28  ;;  %284 = vmatprep.subr.bf16.mxu0 %v2148_v29 }
  0xb7   :  { %550 = vmatprep.subr.bf16.mxu1 %v2150_v30 }
  0xb9   :  { %285 = vmatpush1.bf16.msra.mxu0 %v2152_v31 }
  0xba   :  { %551 = vmatpush1.bf16.msra.mxu1 %v2153_v32 }
  0xbc   :  { %303 = vmatmul.mubr.bf16.vlgmr.msra.gmra.mrb[0].mxu0 %v170_v36 }
  0xbd   :  { %569 = vmatmul.mubr.bf16.vlgmr.msra.gmra.mrb[0].mxu1 %v2743_v37  ;;  %312 = vmatprep.mubr.bf16.mxu0 %v2525_v0 }
  0xbe   :  { %1198 = vmatprep.mubr.bf16.mxu1 %v2525_v0 }
  0xc4   :  { %313 = vmatmul.mubr.bf16.gmra.mrb[4].mxu0 %v171_v40 }
  0xc5   :  { %322 = vmatprep.mubr.bf16.mxu0 %v2525_v0 }
  0xcc   :  { %323 = vmatmul.mubr.bf16.gmra.mrb[8].mxu0 %v172_v43  ;;  %v1937_v43 = vld [vmem:[%s3033_s8] ss:$0 sm:$0xff] }
  0xcd   :  { %332 = vmatprep.mubr.bf16.mxu0 %v2525_v0 }
  0xd4   :  { %333 = vmatmul.mubr.bf16.gmra.mrb[12].mxu0 %v173_v46 }
  0xd5   :  { %609 = vmatprep.mubr.bf16.mxu0 %v2525_v0 }
 0x18f   :  { %v304_v53 = vpop.f32.mrb[0].mxu0 }
 0x190   :  { %v570_v54 = vpop.f32.mrb[0].mxu1  ;;  %v2779_v58 = vpop.f32.mrb[1].mxu0 }
 0x191   :  { %v639_v56 = vcombine.high %v570_v54, %v570_v54  ;;  %v646_v57 = vrot.slane %v570_v54, %v2773_v52  ;;  %v2781_v59 = vpop.f32.mrb[1].mxu1  ;;  %v308_v60 = vpop.f32.mrb[2].mxu0 }
 0x192   :  { %v574_v61 = vpop.f32.mrb[2].mxu1  ;;  %v2784_v1 = vpop.f32.mrb[3].mxu0 }
 0x193   :  { %v654_v62 = vcombine.high %v646_v57, %v646_v57  ;;  %v662_v63 = vrot.slane %v646_v57, %v2773_v52  ;;  %v575_v2 = vpop.f32.mrb[3].mxu1  ;;  %v653_v3 = vrot.slane %v639_v56, %v2773_v52 }
 0x195   :  { %v691_v4 = vrot.slane %v662_v63, %v2776_v55  ;;  %v676_v5 = vrot.slane %v654_v62, %v2773_v52  ;;  %v684_v6 = vcombine.high %v662_v63, %v662_v63  ;;  %v655_v12 = vcombine.high %v653_v3, %v653_v3 }
 0x196   :  { %v669_v20 = vrot.slane %v653_v3, %v2773_v52 }
 0x197   :  { %v728_v8 = vadd.f32 %v691_v4, %v304_v53  ;;  %v695_v9 = vrot.slane %v676_v5, %v2776_v55  ;;  %v699_v10 = vrot.slane %v684_v6, %v2776_v55  ;;  %v686_v11 = vcombine.high %v676_v5, %v676_v5  ;;  %v314_v13 = vpop.f32.mrb[4].mxu0 }
 0x198   :  { %v2794_v17 = vpop.f32.mrb[5].mxu0  ;;  %v683_v26 = vrot.slane %v655_v12, %v2773_v52  ;;  %v707_v27 = vrot.slane %v669_v20, %v2776_v55  ;;  %v685_v46 = vcombine.high %v669_v20, %v669_v20 }
 0x199   :  { %v743_v14 = vadd.f32 %v1936_v7, %v728_v8  ;;  %v729_v15 = vadd.f32 %v695_v9, %v308_v60  ;;  %v730_v16 = vadd.f32 %v699_v10, %v314_v13  ;;  %v703_v18 = vrot.slane %v686_v11, %v2776_v55  ;;  %v318_v19 = vpop.f32.mrb[6].mxu0 }
 0x19a   :  { %v2798_v24 = vpop.f32.mrb[7].mxu0  ;;  %v711_v31 = vrot.slane %v683_v26, %v2776_v55  ;;  %v687_v51 = vcombine.high %v683_v26, %v683_v26  ;;  %v715_v56 = vrot.slane %v685_v46, %v2776_v55 }
 0x19b   :  { %2218 = vtanh.f32 %v743_v14  ;;  %v744_v21 = vadd.f32 %v1936_v7, %v729_v15  ;;  %v745_v22 = vadd.f32 %v1936_v7, %v730_v16  ;;  %v731_v23 = vadd.f32 %v703_v18, %v318_v19 }
 0x19c   :  { %v719_v2 = vrot.slane %v687_v51, %v2776_v55 }
 0x19d   :  { %2220 = vtanh.f32 %v744_v21  ;;  %v746_v25 = vadd.f32 %v1936_v7, %v731_v23  ;;  %v2817_v21 = vand.u32 127, %v167_v47 }
 0x19e   :  { %2222 = vtanh.f32 %v745_v22 }
 0x19f   :  { %2224 = vtanh.f32 %v746_v25  ;;  %v324_v28 = vpop.f32.mrb[8].mxu0  ;;  %v2821_v23 = vsub.s32 %v2817_v21, %v2770_v50  ;;  %vm169_vm7 = vcmp.lt.s32.totalorder %v2817_v21, 8 }
 0x1a0   :  { %v732_v29 = vadd.f32 %v707_v27, %v324_v28  ;;  %v2802_v30 = vpop.f32.mrb[9].mxu0 }
 0x1a1   :  { %v328_v32 = vpop.f32.mrb[10].mxu0 }
 0x1a2   :  { %v747_v35 = vadd.f32 %v1936_v7, %v732_v29  ;;  %v733_v36 = vadd.f32 %v711_v31, %v328_v32  ;;  %v2805_v40 = vpop.f32.mrb[11].mxu0 }
 0x1a4   :  { %2226 = vtanh.f32 %v747_v35  ;;  %v748_v49 = vadd.f32 %v1936_v7, %v733_v36 }
 0x1a5   :  { %v2219_v48 = vpop.eup %2218 }
 0x1a6   :  { %v766_v53 = vmul.f32 %v2219_v48, %v1937_v43  ;;  %2228 = vtanh.f32 %v748_v49 }
 0x1a7   :  { %v2221_v54 = vpop.eup %2220  ;;  %v334_v60 = vpop.f32.mrb[12].mxu0 }
 0x1a8   :  { %v2223_v57 = vpop.eup %2222  ;;  %774 = vadd.xlane.f32.xlu0 %v766_v53  ;;  %v734_v61 = vadd.f32 %v715_v56, %v334_v60  ;;  %v2811_v62 = vpop.f32.mrb[13].mxu0  ;;  %v767_v5 = vmul.f32 %v2221_v54, %v1937_v43 }
 0x1a9   :  { %v768_v63 = vmul.f32 %v2223_v57, %v1937_v43  ;;  %v2225_v3 = vpop.eup %2224  ;;  %v338_v4 = vpop.f32.mrb[14].mxu0 }
 0x1aa   :  { %v749_v6 = vadd.f32 %v1936_v7, %v734_v61  ;;  %v735_v8 = vadd.f32 %v719_v2, %v338_v4  ;;  %v2814_v9 = vpop.f32.mrb[15].mxu0  ;;  %v769_v11 = vmul.f32 %v2225_v3, %v1937_v43 }
 0x1ab   :  { %778 = vadd.xlane.f32.xlu1 %v768_v63 }
 0x1ac   :  { %776 = vadd.xlane.f32.xlu0 %v767_v5  ;;  %2230 = vtanh.f32 %v749_v6  ;;  %v750_v10 = vadd.f32 %v1936_v7, %v735_v8 }
 0x1ae   :  { %v2227_v12 = vpop.eup %2226  ;;  %2232 = vtanh.f32 %v750_v10  ;;  %v2154_v10 = vld [vmem:[#allocation11 + $0x8] ss:$16 sps:$4 sm:$0xff]  }
 0x1af   :  { %780 = vadd.xlane.f32.xlu1 %v769_v11  ;;  %v770_v13 = vmul.f32 %v2227_v12, %v1937_v43  ;;  %v2156_v11 = vld [vmem:[#allocation11 + $0xc] ss:$16 sps:$4 sm:$0xff]  }
 0x1b0   :  { %v2229_v14 = vpop.eup %2228  ;;  %v2159_v12 = vld [vmem:[#allocation11 + $0x2c] ss:$16 sps:$4 sm:$0xff]   ;;  %577 = vmatprep.subr.bf16.mxu0 %v2156_v11 }
 0x1b1   :  { %782 = vadd.xlane.f32.xlu0 %v770_v13  ;;  %v771_v15 = vmul.f32 %v2229_v14, %v1937_v43  ;;  %578 = vmatpush1.bf16.msra.mxu0 %v2154_v10  ;;  %v2157_v13 = vld [vmem:[#allocation11 + $0x28] ss:$16 sps:$4 sm:$0xff]   ;;  %v2162_v14 = vld [vmem:[#allocation11 + $0x4c] ss:$16 sps:$4 sm:$0xff]  }
 0x1b2   :  { %579 = vmatprep.subr.bf16.mxu0 %v2159_v12  ;;  %v895_v12 = vsub.s32 5, %v2770_v50 }
 0x1b3   :  { %784 = vadd.xlane.f32.xlu1 %v771_v15  ;;  %v2160_v15 = vld [vmem:[#allocation11 + $0x48] ss:$16 sps:$4 sm:$0xff]  }
 0x1b5   :  { %580 = vmatpush1.bf16.msra.mxu0 %v2157_v13  ;;  %v2196_v13 = vld [vmem:[#allocation13 + $0x64] ss:$12 sps:$4 sm:$0xff]  }
 0x1b6   :  { %v2231_v16 = vpop.eup %2230  ;;  %581 = vmatprep.subr.bf16.mxu0 %v2162_v14  ;;  %v2194_v14 = vld [vmem:[#allocation13 + $0x60] ss:$12 sps:$4 sm:$0xff]  }
 0x1b7   :  { %v772_v18 = vmul.f32 %v2231_v16, %v1937_v43  ;;  %v2165_v16 = vld [vmem:[#allocation11 + $0x6c] ss:$16 sps:$4 sm:$0xff]  }
 0x1b8   :  { %v2233_v19 = vpop.eup %2232 }
 0x1b9   :  { %786 = vadd.xlane.f32.xlu0 %v772_v18  ;;  %v773_v20 = vmul.f32 %v2233_v19, %v1937_v43  ;;  %582 = vmatpush1.bf16.msra.mxu0 %v2160_v15  ;;  %v2163_v18 = vld [vmem:[#allocation11 + $0x68] ss:$16 sps:$4 sm:$0xff]   ;;  %v2168_v19 = vld [vmem:[#allocation11 + $0x8c] ss:$16 sps:$4 sm:$0xff]  }
 0x1ba   :  { %583 = vmatprep.subr.bf16.mxu0 %v2165_v16  ;;  %v2197_v15 = vld [vmem:[#allocation13 + $0x68] ss:$12 sps:$4 sm:$0xff]  }
 0x1bb   :  { %788 = vadd.xlane.f32.xlu1 %v773_v20  ;;  %v2166_v20 = vld [vmem:[#allocation11 + $0x88] ss:$16 sps:$4 sm:$0xff]  }
 0x1bd   :  { %584 = vmatpush1.bf16.msra.mxu0 %v2163_v18  ;;  %v909_v18 = vsub.s32 7, %v2770_v50 }
 0x1be   :  { %585 = vmatprep.subr.bf16.mxu0 %v2168_v19  ;;  %v2200_v19 = vld [vmem:[#allocation13 + $0x7c] ss:$12 sps:$4 sm:$0xff]  }
 0x1c1   :  { %586 = vmatpush1.bf16.msra.mxu0 %v2166_v20  ;;  %v2198_v20 = vld [vmem:[#allocation13 + $0x78] ss:$12 sps:$4 sm:$0xff]  }
 0x235   :  { %v775_v22 = vpop.xlane.xlu0 %774 }
 0x236   :  { %v801_v27 = vrot.slane %v775_v22, %v2821_v23  ;;  %v2171_v22 = vld [vmem:[#allocation11 + $0xac] ss:$16 sps:$4 sm:$0xff]  }
 0x237   :  { %587 = vmatprep.subr.bf16.mxu0 %v2171_v22  ;;  %v2201_v22 = vld [vmem:[#allocation13 + $0x80] ss:$12 sps:$4 sm:$0xff]  }
 0x238   :  { %v779_v7 = vpop.xlane.xlu1 %778 }
 0x239   :  { %v777_v25 = vpop.xlane.xlu0 %776  ;;  %v809_v47 = vrot.slane %v779_v7, %v2821_v23  ;;  %v2169_v7 = vld [vmem:[#allocation11 + $0xa8] ss:$16 sps:$4 sm:$0xff]  }
 0x23a   :  { %v805_v26 = vrot.slane %v777_v25, %v2821_v23  ;;  %v2174_v25 = vld [vmem:[#allocation11 + $0xcc] ss:$16 sps:$4 sm:$0xff]   ;;  %588 = vmatpush1.bf16.msra.mxu0 %v2169_v7 }
 0x23b   :  { %589 = vmatprep.subr.bf16.mxu0 %v2174_v25  ;;  %v2204_v25 = vld [vmem:[#allocation13 + $0x94] ss:$12 sps:$4 sm:$0xff]  }
 0x23c   :  { %v781_v28 = vpop.xlane.xlu1 %780  ;;  %v831_v29 = vsel %vm830_vm0, %v805_v26, %v801_v27  ;;  %v2172_v26 = vld [vmem:[#allocation11 + $0xc8] ss:$16 sps:$4 sm:$0xff]   ;;  %v2177_v27 = vld [vmem:[#allocation11 + $0xec] ss:$16 sps:$4 sm:$0xff]  }
 0x23d   :  { %v813_v32 = vrot.slane %v781_v28, %v2821_v23  ;;  %v833_v35 = vsel %vm832_vm1, %v809_v47, %v831_v29  ;;  %v2175_v28 = vld [vmem:[#allocation11 + $0xe8] ss:$16 sps:$4 sm:$0xff]   ;;  %v2178_v47 = vld [vmem:[#allocation13] ss:$12 sps:$4 sm:$0xff]  }
 0x23e   :  { %v783_v31 = vpop.xlane.xlu0 %782  ;;  %590 = vmatpush1.bf16.msra.mxu0 %v2172_v26  ;;  %v2202_v26 = vld [vmem:[#allocation13 + $0x90] ss:$12 sps:$4 sm:$0xff]  }
 0x23f   :  { %v817_v36 = vrot.slane %v783_v31, %v2821_v23  ;;  %v835_v46 = vsel %vm834_vm2, %v813_v32, %v833_v35  ;;  %591 = vmatprep.subr.bf16.mxu0 %v2177_v27  ;;  %v2180_v31 = vld [vmem:[#allocation13 + $0x4] ss:$12 sps:$4 sm:$0xff]   ;;  %v2181_v32 = vld [vmem:[#allocation13 + $0x8] ss:$12 sps:$4 sm:$0xff]   ;;  %v2527_v35 = vmov 0.0  }
 0x240   :  { %v785_v43 = vpop.xlane.xlu1 %784  ;;  %1166 = vmatprep.subr.bf16.mxu1 %v2180_v31  ;;  %v2205_v27 = vld [vmem:[#allocation13 + $0x98] ss:$12 sps:$4 sm:$0xff]   ;;  %v2206_v31 = vld [vmem:[#allocation13 + $0xa8] ss:$12 sps:$4 sm:$0xff]  }
 0x241   :  { %v821_v48 = vrot.slane %v785_v43, %v2821_v23  ;;  %v837_v49 = vsel %vm836_vm3, %v817_v36, %v835_v46  ;;  %1167 = vmatpush1.bf16.msra.mxu1 %v2178_v47  ;;  %v2846_v36 = vsub.s32 1, %v2770_v50  ;;  %v2184_v43 = vld [vmem:[#allocation13 + $0x1c] ss:$12 sps:$4 sm:$0xff]   ;;  %v2529_v47 = vmov 0.0|0.0  }
 0x242   :  { %592 = vmatpush1.bf16.msra.mxu0 %v2175_v28  ;;  %1168 = vmatprep.subr.bf16.mxu1 %v2184_v43  ;;  %v2208_v28 = vld [vmem:[#allocation13 + $0xac] ss:$12 sps:$4 sm:$0xff]  }
 0x243   :  { %v839_v54 = vsel %vm838_vm4, %v821_v48, %v837_v49  ;;  %2001 = vmatprep.subr.bf16.mxu0 %v2527_v35  ;;  %v2182_v48 = vld [vmem:[#allocation13 + $0x18] ss:$12 sps:$4 sm:$0xff]  }
 0x245   :  { %610 = vmatmul.mubr.bf16.vlgmr.msra.gmra.mrb[16].mxu0 %v2743_v37  ;;  %v2185_v37 = vld [vmem:[#allocation13 + $0x20] ss:$12 sps:$4 sm:$0xff]   ;;  %1169 = vmatpush1.bf16.msra.mxu1 %v2182_v48 }
 0x246   :  { %v787_v51 = vpop.xlane.xlu0 %786  ;;  %2002 = vmatpush3.bf16.msra.mxu0 %v2181_v32  ;;  %2017 = vmatprep.mubr.msk.bf16.mxu0 %vm2528_vm9, %v2527_v35 }
 0x247   :  { %v825_v53 = vrot.slane %v787_v51, %v2821_v23  ;;  %2003 = vmatprep.subr.bf16.mxu0 %v2527_v35 }
 0x248   :  { %v789_v56 = vpop.xlane.xlu1 %788 }
 0x249   :  { %v829_v57 = vrot.slane %v789_v56, %v2821_v23  ;;  %v841_v60 = vsel %vm840_vm5, %v825_v53, %v839_v54  ;;  %v2852_v54 = vsub.s32 2, %v2770_v50  ;;  %v888_v56 = vsub.s32 4, %v2770_v50 }
 0x24a   :  { %2004 = vmatpush3.bf16.msra.mxu0 %v2185_v37 }
 0x24b   :  { %v843_v61 = vsel %vm842_vm6, %v829_v57, %v841_v60  ;;  %v2188_v57 = vld [vmem:[#allocation13 + $0x34] ss:$12 sps:$4 sm:$0xff]   ;;  %2005 = vmatprep.subr.bf16.mxu0 %v2527_v35  ;;  %v2186_v60 = vld [vmem:[#allocation13 + $0x30] ss:$12 sps:$4 sm:$0xff]  }
 0x24c   :  { %v845_v63 = vsel %vm169_vm7, %v843_v61, -1e+30  ;;  %v2189_v61 = vld [vmem:[#allocation13 + $0x38] ss:$12 sps:$4 sm:$0xff]   ;;  %1170 = vmatprep.subr.bf16.mxu1 %v2188_v57 }
 0x24d   :  { %v847_v2 = vsel %vm846_vm8, %v845_v63, -inf  ;;  %1171 = vmatpush1.bf16.msra.mxu1 %v2186_v60 }
 0x24e   :  { %848 = vmax.xlane.f32.xlu0 %v847_v2  ;;  %2006 = vmatpush3.bf16.msra.mxu0 %v2189_v61 }
 0x24f   :  { %2007 = vmatprep.subr.bf16.mxu0 %v2527_v35 }
 0x2db   :  { %v849_v3 = vpop.xlane.xlu0 %848 }
 0x2dc   :  { %v850_v4 = vsub.f32 %v845_v63, %v849_v3  ;;  %v881_v3 = vsub.s32 3, %v2770_v50 }
 0x2de   :  { %v851_v5 = vmul.f32 1.442695, %v850_v4  ;;  %v902_v4 = vsub.s32 6, %v2770_v50 }
 0x2e0   :  { %2234 = vpow2.f32 %v851_v5  ;;  %v2192_v5 = vld [vmem:[#allocation13 + $0x4c] ss:$12 sps:$4 sm:$0xff]  }
 0x2e1   :  { %1172 = vmatprep.subr.bf16.mxu1 %v2192_v5 }
 0x2ea   :  { %v2235_v6 = vpop.eup %2234 }
 0x2eb   :  { %v853_v8 = vsel %vm846_vm8, %v2235_v6, 0.0 }
 0x2ec   :  { %854 = vadd.xlane.f32.xlu1 %v853_v8  ;;  %v2193_v8 = vld [vmem:[#allocation13 + $0x50] ss:$12 sps:$4 sm:$0xff]  }
 0x2ed   :  { %2008 = vmatpush3.bf16.msra.mxu0 %v2193_v8 }
 0x2ee   :  { %2009 = vmatprep.subr.bf16.mxu0 %v2527_v35 }
 0x2f1   :  { %2010 = vmatpush3.bf16.msra.mxu0 %v2197_v15 }
 0x2f2   :  { %2011 = vmatprep.subr.bf16.mxu0 %v2527_v35 }
 0x2f5   :  { %2012 = vmatpush3.bf16.msra.mxu0 %v2201_v22 }
 0x2f6   :  { %2013 = vmatprep.subr.bf16.mxu0 %v2527_v35 }
 0x2f9   :  { %2014 = vmatpush3.bf16.msra.mxu0 %v2205_v27 }
 0x2fa   :  { %2015 = vmatprep.subr.bf16.mxu0 %v2527_v35 }
 0x379   :  { %v855_v29 = vpop.xlane.xlu1 %854 }
 0x37a   :  { %2236 = vrcp.f32 %v855_v29  ;;  %v2209_v29 = vld [vmem:[#allocation13 + $0xb0] ss:$12 sps:$4 sm:$0xff]  }
 0x37b   :  { %2016 = vmatpush3.bf16.msra.mxu0 %v2209_v29 }
 0x37c   :  { %2052 = vmatprep.subr.bf16.mxu0 %v2529_v47 }
 0x384   :  { %v2237_v46 = vpop.eup %2236 }
 0x385   :  { %v857_v49 = vmul.f32 %v2237_v46, %v2235_v6  ;;  %v2190_v6 = vld [vmem:[#allocation13 + $0x48] ss:$12 sps:$4 sm:$0xff]  }
 0x386   :  { %1173 = vmatpush1.bf16.msra.mxu1 %v2190_v6 }
 0x387   :  { %v868_v51 = vrot.slane %v857_v49, %v2846_v36  ;;  %v861_v53 = vrot.slane %v857_v49, %v2776_v55  ;;  %v875_v63 = vrot.slane %v857_v49, %v2852_v54  ;;  %v889_v2 = vrot.slane %v857_v49, %v888_v56  ;;  %1174 = vmatprep.subr.bf16.mxu1 %v2196_v13 }
 0x388   :  { %v882_v10 = vrot.slane %v857_v49, %v881_v3  ;;  %v903_v11 = vrot.slane %v857_v49, %v902_v4  ;;  %v896_v16 = vrot.slane %v857_v49, %v895_v12  ;;  %v910_v7 = vrot.slane %v857_v49, %v909_v18 }
 0x389   :  { %870 = vbcast.lane.b32.xlu1 %v868_v51, 256  ;;  %863 = vbcast.lane.b32.xlu0 %v861_v53, 256 }
 0x38a   :  { %1175 = vmatpush1.bf16.msra.mxu1 %v2194_v14 }
 0x38b   :  { %1176 = vmatprep.subr.bf16.mxu1 %v2200_v19 }
 0x38d   :  { %877 = vbcast.lane.b32.xlu1 %v875_v63, 256  ;;  %891 = vbcast.lane.b32.xlu0 %v889_v2, 256 }
 0x38e   :  { %1177 = vmatpush1.bf16.msra.mxu1 %v2198_v20 }
 0x38f   :  { %1178 = vmatprep.subr.bf16.mxu1 %v2204_v25 }
 0x391   :  { %884 = vbcast.lane.b32.xlu1 %v882_v10, 256  ;;  %905 = vbcast.lane.b32.xlu0 %v903_v11, 256 }
 0x392   :  { %1179 = vmatpush1.bf16.msra.mxu1 %v2202_v26 }
 0x393   :  { %1180 = vmatprep.subr.bf16.mxu1 %v2208_v28 }
 0x395   :  { %898 = vbcast.lane.b32.xlu1 %v896_v16, 256 }
 0x396   :  { %1181 = vmatpush1.bf16.msra.mxu1 %v2206_v31 }
 0x397   :  { %2032 = vmatprep.subr.bf16.mxu1 %v2527_v35 }
 0x399   :  { %912 = vbcast.lane.b32.xlu1 %v910_v7, 256 }
 0x3fb   :  { %v871_v32 = vpop.permute.xlu1 %870  ;;  %v864_v43 = vpop.permute.xlu0 %863 }
 0x3fc   :  { %v915_v46 = vmul.f32 %v871_v32, %v2739_v34  ;;  %v914_v48 = vmul.f32 %v864_v43, %v2737_v33 }
 0x3fe   :  { %v928_v37 = vrot.slane %v915_v46, 4  ;;  %v922_v49 = vrot.slane %v914_v48, 4 }
 0x3ff   :  { %v878_v51 = vpop.permute.xlu1 %877  ;;  %v892_v53 = vpop.permute.xlu0 %891 }
 0x400   :  { %v929_v56 = vadd.f32 %v928_v37, %v915_v46  ;;  %v923_v57 = vadd.f32 %v922_v49, %v914_v48  ;;  %v916_v60 = vmul.f32 %v878_v51, %v2745_v38  ;;  %v918_v61 = vmul.f32 %v892_v53, %v2754_v41  ;;  %v2878_v49 = vpop.f32.mrb[16].mxu0 }
 0x402   :  { %v930_v63 = vrot.slane %v929_v56, 2  ;;  %v924_v2 = vrot.slane %v923_v57, 2  ;;  %v934_v3 = vrot.slane %v916_v60, 4  ;;  %v946_v4 = vrot.slane %v918_v61, 4 }
 0x403   :  { %v885_v5 = vpop.permute.xlu1 %884  ;;  %v906_v6 = vpop.permute.xlu0 %905 }
 0x404   :  { %v931_v8 = vadd.f32 %v930_v63, %v929_v56  ;;  %v935_v34 = vadd.f32 %v934_v3, %v916_v60  ;;  %v947_v10 = vadd.f32 %v946_v4, %v918_v61  ;;  %v925_v33 = vadd.f32 %v924_v2, %v923_v57 }
 0x405   :  { %v917_v11 = vmul.f32 %v885_v5, %v2747_v39  ;;  %v920_v12 = vmul.f32 %v906_v6, %v2762_v44  ;;  %v1270_v3 = vadd.s32 8, %v2770_v50 }
 0x406   :  { %v936_v13 = vrot.slane %v935_v34, 2  ;;  %v932_v16 = vrot.slane %v931_v8, 1  ;;  %v948_v18 = vrot.slane %v947_v10, 2  ;;  %v926_v19 = vrot.slane %v925_v33, 1 }
 0x407   :  { %v940_v14 = vrot.slane %v917_v11, 4  ;;  %v958_v15 = vrot.slane %v920_v12, 4  ;;  %v899_v38 = vpop.permute.xlu1 %898 }
 0x408   :  { %v937_v41 = vadd.f32 %v936_v13, %v935_v34  ;;  %v919_v7 = vmul.f32 %v899_v38, %v2756_v42  ;;  %v949_v39 = vadd.f32 %v948_v18, %v947_v10  ;;  %v933_v31 = vadd.f32 %v932_v16, %v931_v8  ;;  %v2880_v42 = vpop.f32.mrb[17].mxu0 }
 0x409   :  { %v941_v20 = vadd.f32 %v940_v14, %v917_v11  ;;  %v959_v22 = vadd.f32 %v958_v15, %v920_v12  ;;  %v927_v32 = vadd.f32 %v926_v19, %v925_v33  ;;  %v615_v61 = vpop.f32.mrb[18].mxu0  ;;  %v1273_v13 = vadd.s32 32, %v2770_v50 }
 0x40a   :  { %v938_v25 = vrot.slane %v937_v41, 1  ;;  %v952_v28 = vrot.slane %v919_v7, 4  ;;  %v950_v57 = vrot.slane %v949_v39, 1  ;;  %v616_v4 = vpop.f32.mrb[19].mxu0  ;;  %v1285_v14 = vadd.s32 32, %v1270_v3 }
 0x40b   :  { %v942_v26 = vrot.slane %v941_v20, 2  ;;  %v960_v27 = vrot.slane %v959_v22, 2  ;;  %v913_v29 = vpop.permute.xlu1 %912  ;;  %v979_v63 = vsel %vm830_vm0, %v933_v31, %v927_v32  ;;  %v1271_v16 = vadd.s32 16, %v2770_v50  ;;  %v2212_v31 = vld [vmem:[#allocation14 + $0x10] sm:$0xff]   ;;  %v2213_v32 = vld [vmem:[#allocation14 + $0x18] sm:$0xff]  }
 0x40c   :  { %v921_v44 = vmul.f32 %v913_v29, %v2764_v45  ;;  %v953_v46 = vadd.f32 %v952_v28, %v919_v7  ;;  %v939_v48 = vadd.f32 %v938_v25, %v937_v41  ;;  %v951_v33 = vadd.f32 %v950_v57, %v949_v39  ;;  %v2210_v39 = vld [vmem:[#allocation14] sm:$0xff]  }
 0x40d   :  { %v943_v43 = vadd.f32 %v942_v26, %v941_v20  ;;  %v961_v53 = vadd.f32 %v960_v27, %v959_v22  ;;  %v1272_v41 = vadd.s32 24, %v2770_v50  ;;  %v970_v22 = vld [vmem:[#allocation7] sm:$0xff]  ;;  %vm1300_vm10 = vcmp.eq.s32.totalorder %v2817_v21, %v1273_v13 }
 0x40e   :  { %v964_v37 = vrot.slane %v921_v44, 4  ;;  %v954_v56 = vrot.slane %v953_v46, 2  ;;  %v980_v5 = vsel %vm832_vm1, %v939_v48, %v979_v63  ;;  %vm1301_vm11 = vcmp.eq.s32.totalorder %v2817_v21, %v1285_v14  ;;  %v2217_v48 = vld [vmem:[#allocation14 + $0x38] sm:$0xff]  }
 0x40f   :  { %v944_v51 = vrot.slane %v943_v43, 1  ;;  %v962_v34 = vrot.slane %v961_v53, 1  ;;  %v1286_v26 = vadd.s32 32, %v1271_v16  ;;  %v1287_v27 = vadd.s32 32, %v1272_v41  ;;  %vm2053_vm12 = vmpackc.low %vm1301_vm11, %vm1300_vm10 }
 0x410   :  { %v965_v60 = vadd.f32 %v964_v37, %v921_v44  ;;  %v955_v45 = vadd.f32 %v954_v56, %v953_v46  ;;  %v2530_v50 = vmov 1.0|1.0   ;;  %v2211_v44 = vld [vmem:[#allocation14 + $0x8] sm:$0xff]   ;;  %v2216_v46 = vld [vmem:[#allocation14 + $0x30] sm:$0xff]  }
 0x411   :  { %v945_v2 = vadd.f32 %v944_v51, %v943_v43  ;;  %v963_v18 = vadd.f32 %v962_v34, %v961_v53  ;;  %vm1302_vm13 = vcmp.eq.s32.totalorder %v2817_v21, %v1286_v26  ;;  %vm1303_vm14 = vcmp.eq.s32.totalorder %v2817_v21, %v1287_v27  ;;  %v2215_v43 = vld [vmem:[#allocation14 + $0x28] sm:$0xff]  }
 0x412   :  { %v966_v6 = vrot.slane %v965_v60, 2  ;;  %v956_v10 = vrot.slane %v955_v45, 1  ;;  %vm2056_vm15 = vmpackc.low %vm1303_vm14, %vm1302_vm13  ;;  %v618_v37 = vld [vmem:[%s3036_s11] sm:$0x7] }
 0x413   :  { %v981_v8 = vsel %vm834_vm2, %v945_v2, %v980_v5  ;;  %v1021_v51 = vld [vmem:[%s3035_s10] sm:$0x7]  ;;  %v623_v53 = vrot.slane %v618_v37, %v2776_v55  ;;  %v627_v57 = vrot.slane %v618_v37, %v2846_v36  ;;  %v631_v16 = vrot.slane %v618_v37, %v2852_v54 }
 0x414   :  { %v967_v11 = vadd.f32 %v966_v6, %v965_v60  ;;  %v957_v12 = vadd.f32 %v956_v10, %v955_v45  ;;  %v982_v15 = vsel %vm836_vm3, %v951_v33, %v981_v8  ;;  %v1026_v56 = vrot.slane %v1021_v51, %v2776_v55 }
 0x415   :  { %v1030_v60 = vrot.slane %v1021_v51, %v2846_v36  ;;  %v635_v63 = vadd.f32 %v623_v53, %v2781_v59  ;;  %v636_v4 = vadd.f32 %v627_v57, %v2878_v49  ;;  %v1034_v49 = vrot.slane %v1021_v51, %v2852_v54 }
 0x416   :  { %v968_v38 = vrot.slane %v967_v11, 1  ;;  %v983_v19 = vsel %vm838_vm4, %v957_v12, %v982_v15 }
 0x417   :  { %v984_v7 = vsel %vm840_vm5, %v963_v18, %v983_v19  ;;  %v637_v18 = vadd.f32 %v631_v16, %v2880_v42 }
 0x418   :  { %v969_v20 = vadd.f32 %v968_v38, %v967_v11 }
 0x41a   :  { %v985_v25 = vsel %vm842_vm6, %v969_v20, %v984_v7 }
 0x41b   :  { %v987_v28 = vadd.f32 %v985_v25, %v970_v22 }
 0x41d   :  { %v988_v29 = vpack.c.bf16 %v987_v28, %v987_v28 }
 0x41f   :  { %1199 = vmatmul.mubr.bf16.vlgmr.msra.gmra.mrb[4].mxu1 %v988_v29  ;;  %2018 = vmatmul.mubr.bf16.vlgmr.msra.gmra.mrb[20].mxu0 %v988_v29 }
 0x420   :  { %2054 = vmatpush3.bf16.msk.msra.mxu0 %vm2053_vm12, %v2530_v50  ;;  %2029 = vmatprep.mubr.msk.f32.mxu0 %vm2528_vm9, %v2527_v35 }
 0x421   :  { %2055 = vmatprep.subr.bf16.mxu0 %v2529_v47  ;;  %2048 = vmatprep.mubr.msk.bf16.mxu1 %vm2528_vm9, %v2527_v35  ;;  %v2214_v47 = vld [vmem:[#allocation14 + $0x20] sm:$0xff]  }
 0x422   :  { %2033 = vmatpush3.bf16.msra.mxu1 %v2210_v39 }
 0x423   :  { %2034 = vmatprep.subr.bf16.mxu1 %v2527_v35 }
 0x424   :  { %2057 = vmatpush3.bf16.msk.msra.mxu0 %vm2056_vm15, %v2530_v50 }
 0x426   :  { %2035 = vmatpush3.bf16.msra.mxu1 %v2211_v44 }
 0x427   :  { %2030 = vmatmul.mubr.f32.vlgmr.msra.gmra.mrb[24].mxu0 %v985_v25  ;;  %2036 = vmatprep.subr.bf16.mxu1 %v2527_v35  ;;  %v1977_v25 = vld [vmem:[%s3037_s12] ss:$0 sm:$0xff] }
 0x428   :  { %v1554_v26 = vadd.f32 %v1977_v25, %v2779_v58  ;;  %v1555_v28 = vadd.f32 %v1977_v25, %v2784_v1  ;;  %v1556_v54 = vadd.f32 %v1977_v25, %v2794_v17  ;;  %v1557_v29 = vadd.f32 %v1977_v25, %v2798_v24  ;;  %v2274_v58 = vld [vmem:[#allocation5] sm:$0xff] }
 0x429   :  { %v1558_v42 = vadd.f32 %v1977_v25, %v2802_v30  ;;  %v1559_v44 = vadd.f32 %v1977_v25, %v2805_v40  ;;  %v1561_v1 = vadd.f32 %v1977_v25, %v2814_v9 }
 0x42a   :  { %2037 = vmatpush3.bf16.msra.mxu1 %v2212_v31  ;;  %v1560_v31 = vadd.f32 %v1977_v25, %v2811_v62 }
 0x42b   :  { %2038 = vmatprep.subr.bf16.mxu1 %v2527_v35 }
 0x42e   :  { %2039 = vmatpush3.bf16.msra.mxu1 %v2213_v32 }
 0x42f   :  { %2040 = vmatprep.subr.bf16.mxu1 %v2527_v35 }
 0x432   :  { %2041 = vmatpush3.bf16.msra.mxu1 %v2214_v47 }
 0x433   :  { %2042 = vmatprep.subr.bf16.mxu1 %v2527_v35 }
 0x436   :  { %2043 = vmatpush3.bf16.msra.mxu1 %v2215_v43 }
 0x437   :  { %2044 = vmatprep.subr.bf16.mxu1 %v2527_v35 }
 0x43a   :  { %2045 = vmatpush3.bf16.msra.mxu1 %v2216_v46 }
 0x43b   :  { %2046 = vmatprep.subr.bf16.mxu1 %v2527_v35 }
 0x43e   :  { %2047 = vmatpush3.bf16.msra.mxu1 %v2217_v48 }
 0x4f2   :  { %v1200_v61 = vpop.f32.mrb[4].mxu1  ;;  %v1241_v35 = vpop.f32.mrb[20].mxu0 }
 0x4f3   :  { %v1201_v2 = vadd.f32 %v1200_v61, %v1026_v56  ;;  %v1202_v45 = vpop.f32.mrb[5].mxu1  ;;  %v2019_v3 = vpop.f32.mrb[21].mxu0  ;;  %v1242_v20 = vadd.f32 %v1241_v35, %v1034_v49 }
 0x4f4   :  { %v1203_v5 = vadd.f32 %v1202_v45, %v1030_v60  ;;  %v1204_v6 = vpop.f32.mrb[6].mxu1  ;;  %v1244_v8 = vpop.f32.mrb[22].mxu0 }
 0x4f5   :  { %v1247_v34 = vadd.f32 %v1201_v2, %v635_v63  ;;  %v1205_v10 = vpop.f32.mrb[7].mxu1  ;;  %v2020_v33 = vpop.f32.mrb[23].mxu0 }
 0x4f6   :  { %v1254_v11 = vadd.f32 %v1203_v5, %v636_v4 }
 0x4f7   :  { %v1962_v12 = vmul.f32 -1.442695, %v1247_v34 }
 0x4f8   :  { %v1963_v14 = vmul.f32 -1.442695, %v1254_v11 }
 0x4f9   :  { %2238 = vpow2.f32 %v1962_v12 }
 0x4fa   :  { %v1430_v13 = vpop.f32.mrb[24].mxu0  ;;  %2240 = vpow2.f32 %v1963_v14 }
 0x4fb   :  { %v2031_v36 = vpop.f32.mrb[25].mxu0 }
 0x503   :  { %v2239_v15 = vpop.eup %2238 }
 0x504   :  { %v1251_v59 = vadd.f32 1.0, %v2239_v15  ;;  %v2241_v38 = vpop.eup %2240 }
 0x505   :  { %v1258_v41 = vadd.f32 1.0, %v2241_v38 }
 0x506   :  { %2242 = vrcp.f32 %v1251_v59 }
 0x507   :  { %2244 = vrcp.f32 %v1258_v41 }
 0x510   :  { %v2243_v19 = vpop.eup %2242 }
 0x511   :  { %v1261_v22 = vmul.f32 %v2243_v19, %v637_v18  ;;  %v2245_v27 = vpop.eup %2244  ;;  %v1741_v18 = vld [vmem:[%s3028_s3] sm:$0xff]  ;;  %v2531_v19 = vmov 1  }
 0x512   :  { %v1264_v50 = vsub.f32 1.0, %v2245_v27  ;;  %v1266_v47 = vmul.f32 %v2274_v58, %v2245_v27  ;;  %2090 = vset.pattern.permute.xlu0 %v2531_v19 }
 0x513   :  { %v1262_v7 = vadd.f32 %v1261_v22, %v1242_v20  ;;  %v2532_v20 = vmov 2   ;;  %v2534_v22 = vmov 4  }
 0x515   :  { %2246 = vtanh.f32 %v1262_v7 }
 0x516   :  { %2248 = vtanh.f32 %v1554_v26 }
 0x517   :  { %2250 = vtanh.f32 %v1555_v28 }
 0x518   :  { %2252 = vtanh.f32 %v1556_v54 }
 0x519   :  { %2254 = vtanh.f32 %v1557_v29 }
 0x51a   :  { %2256 = vtanh.f32 %v1558_v42 }
 0x51b   :  { %2258 = vtanh.f32 %v1559_v44 }
 0x51c   :  { %2260 = vtanh.f32 %v1560_v31 }
 0x51d   :  { %2262 = vtanh.f32 %v1561_v1 }
 0x51f   :  { %v2247_v39 = vpop.eup %2246 }
 0x520   :  { %v1265_v32 = vmul.f32 %v2247_v39, %v1264_v50  ;;  %v2249_v37 = vpop.eup %2248 }
 0x521   :  { %v2251_v57 = vpop.eup %2250 }
 0x522   :  { %v1267_v17 = vadd.f32 %v1266_v47, %v1265_v32  ;;  %v2253_v61 = vpop.eup %2252 }
 0x523   :  { %v2255_v3 = vpop.eup %2254 }
 0x524   :  { %v1434_v24 = vadd.f32 %v1430_v13, %v1267_v17  ;;  %1850 = vst [vmem:[#allocation16] sm:$0xff] %v1267_v17  ;;  %v1578_v30 = vrot.slane %v1267_v17, %v2773_v52  ;;  %v1571_v43 = vcombine.high %v1267_v17, %v1267_v17  ;;  %v2257_v8 = vpop.eup %2256 }
 0x525   :  { %v2259_v12 = vpop.eup %2258 }
 0x526   :  { %v1435_v40 = vpack.c.bf16 %v1434_v24, %v1434_v24  ;;  %v1594_v46 = vrot.slane %v1578_v30, %v2773_v52  ;;  %v1586_v62 = vcombine.high %v1578_v30, %v1578_v30  ;;  %v1585_v48 = vrot.slane %v1571_v43, %v2773_v52  ;;  %v2261_v15 = vpop.eup %2260 }
 0x527   :  { %v2263_v38 = vpop.eup %2262 }
 0x528   :  { %2049 = vmatmul.mubr.bf16.vlgmr.msra.gmra.mrb[8].mxu1 %v1435_v40  ;;  %v1623_v9 = vrot.slane %v1594_v46, %v2776_v55  ;;  %v1608_v51 = vrot.slane %v1586_v62, %v2773_v52  ;;  %v1616_v53 = vcombine.high %v1594_v46, %v1594_v46  ;;  %v1587_v56 = vcombine.high %v1585_v48, %v1585_v48 }
 0x529   :  { %v1601_v60 = vrot.slane %v1585_v48, %v2773_v52 }
 0x52a   :  { %v1660_v35 = vmul.f32 %v2249_v37, %v1623_v9  ;;  %v1627_v63 = vrot.slane %v1608_v51, %v2776_v55  ;;  %v1631_v2 = vrot.slane %v1616_v53, %v2776_v55  ;;  %v1615_v45 = vrot.slane %v1587_v56, %v2773_v52 }
 0x52b   :  { %v1639_v4 = vrot.slane %v1601_v60, %v2776_v55  ;;  %v1618_v5 = vcombine.high %v1608_v51, %v1608_v51  ;;  %v1617_v6 = vcombine.high %v1601_v60, %v1601_v60  ;;  %v2535_v9 = vmov 5  }
 0x52c   :  { %1668 = vadd.xlane.f32.xlu0 %v1660_v35  ;;  %v1661_v34 = vmul.f32 %v2251_v57, %v1627_v63  ;;  %v1662_v10 = vmul.f32 %v2253_v61, %v1631_v2  ;;  %v1643_v33 = vrot.slane %v1615_v45, %v2776_v55  ;;  %v1619_v11 = vcombine.high %v1615_v45, %v1615_v45  ;;  %v1739_v2 = vld [vmem:[#allocation8] sm:$0xff] }
 0x52d   :  { %v1664_v13 = vmul.f32 %v2257_v8, %v1639_v4  ;;  %v1635_v36 = vrot.slane %v1618_v5, %v2776_v55  ;;  %v1647_v14 = vrot.slane %v1617_v6, %v2776_v55  ;;  %v2536_v51 = vmov 6  }
 0x52e   :  { %1670 = vadd.xlane.f32.xlu1 %v1661_v34  ;;  %v1665_v52 = vmul.f32 %v2259_v12, %v1643_v33  ;;  %v1651_v59 = vrot.slane %v1619_v11, %v2776_v55  ;;  %v2533_v55 = vmov 3   ;;  %v2537_v53 = vmov 7  }
 0x52f   :  { %v1663_v16 = vmul.f32 %v2255_v3, %v1635_v36  ;;  %v1666_v49 = vmul.f32 %v2261_v15, %v1647_v14  ;;  %v1968_v3 = vld [vmem:[%s3039_s14] ss:$0 sm:$0xff]  ;;  %s2538_s14 = smov [#allocation16]  }
 0x530   :  { %1672 = vadd.xlane.f32.xlu0 %v1662_v10  ;;  %v1667_v41 = vmul.f32 %v2263_v38, %v1651_v59  ;;  %s1861_s22 = sshll.u32 %s2538_s14, 4  ;;  %s1862_s22 = int_to_ptr.vmem [resolvable:$true] %s1861_s22 }
 0x531   :  { %s2451_s30 = scalar_lea.vmem %s1862_s22, 128  ;;  %p2456_p9 = scmp.lt.s32.totalorder %s1862_s22, %s1862_s22 }
 0x532   :  { %1678 = vadd.xlane.f32.xlu1 %v1665_v52  ;;  %p2452_p8 = scmp.ne.s32.totalorder %s1862_s22, %s2451_s30  ;;  %p2457_p10 = scmp.lt.s32.totalorder %s2451_s30, %s2451_s30 }
 0x534   :  { %1676 = vadd.xlane.f32.xlu0 %v1664_v13  ;;  %p2458_p11 = por %p2457_p10, %p2456_p9 }
 0x536   :  { %1682 = vadd.xlane.f32.xlu1 %v1667_v41  ;;  %p2459_p12 = pnand %p2458_p11, %p2452_p8 }
 0x538   :  { %1674 = vadd.xlane.f32.xlu0 %v1663_v16 }
 0x53c   :  { %1680 = vadd.xlane.f32.xlu0 %v1666_v49 }
 0x547   :  { %1743 = vperm.xlu1 %2089, %v1741_v18  }
 0x54b   :  { %2091 = vset.pattern.permute.xlu1 %v2532_v20 }
 0x54c   :  { %1764 = vperm.xlu1 %2091, %v1741_v18  }
 0x550   :  { %2092 = vset.pattern.permute.xlu1 %v2533_v55 }
 0x551   :  { %1774 = vperm.xlu1 %2092, %v1741_v18  }
 0x555   :  { %2093 = vset.pattern.permute.xlu1 %v2534_v22 }
 0x556   :  { %1784 = vperm.xlu1 %2093, %v1741_v18  }
 0x55a   :  { %2094 = vset.pattern.permute.xlu1 %v2535_v9 }
 0x55b   :  { %1794 = vperm.xlu1 %2094, %v1741_v18  }
 0x55f   :  { %2095 = vset.pattern.permute.xlu1 %v2536_v51 }
 0x560   :  { %1804 = vperm.xlu1 %2095, %v1741_v18  }
 0x564   :  { %2096 = vset.pattern.permute.xlu1 %v2537_v53 }
 0x565   :  { %1814 = vperm.xlu1 %2096, %v1741_v18  }
 0x569   :  { %2097 = vset.pattern.permute.xlu1 %v2525_v0 }
 0x5b9   :  { %v1669_v7 = vpop.xlane.xlu0 %1668 }
 0x5ba   :  { %v1695_v54 = vrot.slane %v1669_v7, %v2821_v23 }
 0x5bb   :  { %v1671_v25 = vpop.xlane.xlu1 %1670 }
 0x5bc   :  { %v1699_v27 = vrot.slane %v1671_v25, %v2821_v23 }
 0x5bd   :  { %v1673_v26 = vpop.xlane.xlu0 %1672 }
 0x5be   :  { %v1703_v42 = vrot.slane %v1673_v26, %v2821_v23  ;;  %v1724_v50 = vsel %vm830_vm0, %v1699_v27, %v1695_v54 }
 0x5bf   :  { %v1679_v29 = vpop.xlane.xlu1 %1678 }
 0x5c0   :  { %v1725_v31 = vsel %vm832_vm1, %v1703_v42, %v1724_v50  ;;  %v1715_v58 = vrot.slane %v1679_v29, %v2821_v23 }
 0x5c1   :  { %v1677_v28 = vpop.xlane.xlu0 %1676 }
 0x5c2   :  { %v1711_v32 = vrot.slane %v1677_v28, %v2821_v23 }
 0x5c3   :  { %v1683_v47 = vpop.xlane.xlu1 %1682 }
 0x5c4   :  { %v1723_v40 = vrot.slane %v1683_v47, %v2821_v23 }
 0x5c5   :  { %v1675_v39 = vpop.xlane.xlu0 %1674 }
 0x5c6   :  { %v1707_v44 = vrot.slane %v1675_v39, %v2821_v23 }
 0x5c7   :  { %v1744_v6 = vpop.permute.xlu1 %1743 }
 0x5c8   :  { %v1726_v1 = vsel %vm834_vm2, %v1707_v44, %v1725_v31  ;;  %vm1745_vm1 = vcmp.eq.s32.totalorder %v1744_v6, %v2817_v21 }
 0x5c9   :  { %v1727_v17 = vsel %vm836_vm3, %v1711_v32, %v1726_v1  ;;  %v1681_v24 = vpop.xlane.xlu0 %1680 }
 0x5ca   :  { %v1719_v30 = vrot.slane %v1681_v24, %v2821_v23  ;;  %v1728_v43 = vsel %vm838_vm4, %v1715_v58, %v1727_v17 }
 0x5cb   :  { %v1765_v8 = vpop.permute.xlu1 %1764 }
 0x5cc   :  { %v1729_v46 = vsel %vm840_vm5, %v1719_v30, %v1728_v43  ;;  %vm1766_vm2 = vcmp.eq.s32.totalorder %v1765_v8, %v2817_v21 }
 0x5cd   :  { %v1730_v62 = vsel %vm842_vm6, %v1723_v40, %v1729_v46 }
 0x5ce   :  { %v1732_v48 = vsel %vm169_vm7, %v1730_v62, -1e+30 }
 0x5cf   :  { %v1733_v37 = vsel %vm846_vm8, %v1732_v48, -inf }
 0x5d0   :  { %1734 = vmax.xlane.f32.xlu0 %v1733_v37  ;;  %v1775_v34 = vpop.permute.xlu1 %1774 }
 0x5d1   :  { %vm1776_vm3 = vcmp.eq.s32.totalorder %v1775_v34, %v2817_v21 }
 0x5d5   :  { %v1785_v10 = vpop.permute.xlu1 %1784 }
 0x5d6   :  { %vm1786_vm4 = vcmp.eq.s32.totalorder %v1785_v10, %v2817_v21 }
 0x5da   :  { %v1795_v33 = vpop.permute.xlu1 %1794 }
 0x5db   :  { %vm1796_vm5 = vcmp.eq.s32.totalorder %v1795_v33, %v2817_v21 }
 0x5df   :  { %v1805_v11 = vpop.permute.xlu1 %1804 }
 0x5e0   :  { %vm1806_vm6 = vcmp.eq.s32.totalorder %v1805_v11, %v2817_v21 }
 0x5e4   :  { %v1815_v12 = vpop.permute.xlu1 %1814 }
 0x5e5   :  { %vm1816_vm7 = vcmp.eq.s32.totalorder %v1815_v12, %v2817_v21 }
 0x5e6   :  { %1754 = vperm.xlu0 %2090, %v1741_v18  }
 0x5ea   :  { %2105 = vset.pattern.permute.xlu0 %v2537_v53 }
 0x5fb   :  { %v1541_v23 = vpop.f32.mrb[8].mxu1 }
 0x5fc   :  { %v2050_v56 = vpop.f32.mrb[9].mxu1  ;;  %v2982_v0 = vadd.f32 %v1968_v3, %v1541_v23 }
 0x5fd   :  { %v1544_v57 = vpop.f32.mrb[10].mxu1 }
 0x5fe   :  { %v2051_v60 = vpop.f32.mrb[11].mxu1 }
 0x65d   :  { %v2975_v61 = vpop.xlane.xlu0 %1734 }
 0x65e   :  { %v1736_v35 = vsub.f32 %v1732_v48, %v2975_v61 }
 0x660   :  { %v1737_v63 = vmul.f32 1.442695, %v1736_v35 }
 0x662   :  { %2264 = vpow2.f32 %v1737_v63 }
 0x665   :  { %v1755_v52 = vpop.permute.xlu0 %1754 }
 0x666   :  { %vm1756_vm0 = vcmp.eq.s32.totalorder %v1755_v52, %v2817_v21 }
 0x66c   :  { %v2265_v45 = vpop.eup %2264 }
 0x66d   :  { %v1740_v4 = vmul.f32 %v2265_v45, %v1739_v2  ;;  %v1823_v5 = vsel %vm846_vm8, %v2265_v45, 0.0  ;;  %vm1828_vm8 = vcmp.lt.s32.totalorder %v2817_v21, 40 }
 0x66e   :  { %1824 = vadd.xlane.f32.xlu0 %v1823_v5 }
 0x66f   :  { %1748 = vperm.xlu1 %2097, %v1740_v4  }
 0x672   :  { %1830 = vmax.xlane.f32.xlu0 %v2982_v0 }
 0x673   :  { %2098 = vset.pattern.permute.xlu1 %v2531_v19 }
 0x674   :  { %1758 = vperm.xlu1 %2098, %v1740_v4  }
 0x678   :  { %2099 = vset.pattern.permute.xlu1 %v2532_v20 }
 0x679   :  { %1768 = vperm.xlu1 %2099, %v1740_v4  }
 0x67d   :  { %2100 = vset.pattern.permute.xlu1 %v2533_v55 }
 0x67e   :  { %1778 = vperm.xlu1 %2100, %v1740_v4  }
 0x682   :  { %2101 = vset.pattern.permute.xlu1 %v2534_v22 }
 0x683   :  { %1788 = vperm.xlu1 %2101, %v1740_v4  }
 0x687   :  { %2102 = vset.pattern.permute.xlu1 %v2535_v9 }
 0x688   :  { %1798 = vperm.xlu1 %2102, %v1740_v4  }
 0x68c   :  { %2103 = vset.pattern.permute.xlu1 %v2536_v51 }
 0x68d   :  { %1808 = vperm.xlu1 %2103, %v1740_v4  }
 0x691   :  { %2104 = vset.pattern.permute.xlu1 %v2537_v53 }
 0x692   :  { %1818 = vperm.xlu1 %2104, %v1740_v4  }
 0x6ee   :  { %v1749_v13 = vpop.permute.xlu1 %1748 }
 0x6ef   :  { %v1751_v16 = vsel %vm1745_vm1, %v1749_v13, 0.0 }
 0x6f3   :  { %v1759_v36 = vpop.permute.xlu1 %1758 }
 0x6f4   :  { %v1761_v38 = vsel %vm1756_vm0, %v1759_v36, 0.0 }
 0x6f5   :  { %v1762_v41 = vadd.f32 %v1761_v38, %v1751_v16 }
 0x6f8   :  { %v1769_v14 = vpop.permute.xlu1 %1768 }
 0x6f9   :  { %v1771_v49 = vsel %vm1766_vm2, %v1769_v14, 0.0 }
 0x6fa   :  { %v1772_v20 = vadd.f32 %v1771_v49, %v1762_v41 }
 0x6fb   :  { %v1825_v54 = vpop.xlane.xlu0 %1824 }
 0x6fc   :  { %v1826_v39 = vmul.f32 1e-10, %v1825_v54 }
 0x6fd   :  { %v1779_v15 = vpop.permute.xlu1 %1778 }
 0x6fe   :  { %v1781_v19 = vsel %vm1776_vm3, %v1779_v15, 0.0 }
 0x6ff   :  { %v1782_v22 = vadd.f32 %v1781_v19, %v1772_v20  ;;  %v1831_v24 = vpop.xlane.xlu0 %1830 }
 0x702   :  { %v1789_v59 = vpop.permute.xlu1 %1788 }
 0x703   :  { %v1791_v55 = vsel %vm1786_vm4, %v1789_v59, 0.0 }
 0x704   :  { %v1792_v26 = vadd.f32 %v1791_v55, %v1782_v22 }
 0x707   :  { %v1799_v18 = vpop.permute.xlu1 %1798 }
 0x708   :  { %v1801_v7 = vsel %vm1796_vm5, %v1799_v18, 0.0 }
 0x709   :  { %v1802_v28 = vadd.f32 %v1801_v7, %v1792_v26 }
 0x70c   :  { %v1809_v25 = vpop.permute.xlu1 %1808 }
 0x70d   :  { %v1811_v27 = vsel %vm1806_vm6, %v1809_v25, 0.0 }
 0x70e   :  { %v1812_v29 = vadd.f32 %v1811_v27, %v1802_v28 }
 0x711   :  { %v1819_v42 = vpop.permute.xlu1 %1818 }
 0x712   :  { %v1821_v50 = vsel %vm1816_vm7, %v1819_v42, 0.0 }
 0x713   :  { %v1822_v44 = vadd.f32 %v1821_v50, %v1812_v29 }
 0x715   :  { %v1827_v31 = vadd.f32 %v1826_v39, %v1822_v44 }
 0x717   :  { %v1829_v32 = vsel %vm1828_vm8, %v1827_v31, 0.0 }
 0x718   :  { %1832 = vmax.xlane.f32.xlu1 %v1829_v32 }
 0x7a5   :  { %v1833_v58 = vpop.xlane.xlu1 %1832 }
 0x7a6   :  { %2266 = vlog2.f32 %v1833_v58 }
 0x7b0   :  { %v2267_v47 = vpop.eup %2266 }
 0x7b1   :  { %v1835_v1 = vmul.f32 0.6931472, %v2267_v47 }
 0x7b3   :  { %v1836_v17 = vadd.f32 %v1835_v1, %v2975_v61 }
 0x7b5   :  { %v1837_v30 = vmax.f32 %v1831_v24, %v1836_v17 }
 0x7b7   :  { %v1838_v43 = vsub.f32 %v2982_v0, %v1837_v30  ;;  %v1841_v40 = vsub.f32 %v2975_v61, %v1837_v30 }
 0x7b9   :  { %v1839_v46 = vmul.f32 1.442695, %v1838_v43  ;;  %v1842_v62 = vmul.f32 1.442695, %v1841_v40 }
 0x7bb   :  { %2268 = vpow2.f32 %v1839_v46 }
 0x7bc   :  { %2270 = vpow2.f32 %v1842_v62 }
 0x7c5   :  { %v2269_v21 = vpop.eup %2268 }
 0x7c6   :  { %v2271_v48 = vpop.eup %2270  ;;  %1845 = vadd.xlane.f32.xlu0 %v2269_v21 }
 0x7c7   :  { %v1844_v37 = vmul.f32 %v2271_v48, %v1829_v32 }
 0x7c9   :  { %v1851_v9 = vadd.f32 %v2269_v21, %v1844_v37 }
 0x7ca   :  { %1847 = vadd.xlane.f32.xlu0 %v1844_v37 }
 0x7cb   :  { %2462 = shalt.err (!%p2459_p12)
}
 0x7cc   :  { %s2463_s2 = scalar_lea.hbm %s3040_s15, 128 }
 0x7cd   :  { %p2464_p13 = scmp.ne.s32.totalorder %s3040_s15, %s2463_s2  ;;  %p2467_p0 = scmp.lt.u32.totalorder %s2463_s2, %s3040_s15 }
 0x7cf   :  { %p2469_p1 = pnand %p2467_p0, %p2464_p13 }
 0x7d1   :  { %2472 = shalt.err (!%p2469_p1)
}
 0x7d2   :  { %1864 = dma.vmem_to_hbm [thread:$0]  %s1862_s22, 128, %s3040_s15, [#allocation4]  }
 0x7d3   :  { %s2539_s21 = smov [#allocation17]  }
 0x7d4   :  { %s1871_s25 = sshll.u32 %s2539_s21, 4  ;;  %s1872_s25 = int_to_ptr.vmem [resolvable:$true] %s1871_s25 }
 0x7d5   :  { %s2473_s26 = scalar_lea.vmem %s1872_s25, 128  ;;  %p2478_p3 = scmp.lt.s32.totalorder %s1872_s25, %s1872_s25 }
 0x7d6   :  { %p2474_p2 = scmp.ne.s32.totalorder %s1872_s25, %s2473_s26  ;;  %p2479_p4 = scmp.lt.s32.totalorder %s2473_s26, %s2473_s26 }
 0x7d8   :  { %p2480_p5 = por %p2479_p4, %p2478_p3 }
 0x7da   :  { %p2481_p6 = pnand %p2480_p5, %p2474_p2 }
 0x853   :  { %v1846_v51 = vpop.xlane.xlu0 %1845 }
 0x857   :  { %v1848_v53 = vpop.xlane.xlu0 %1847 }
 0x858   :  { %v1849_v23 = vadd.f32 %v1848_v53, %v1846_v51 }
 0x85a   :  { %2272 = vrcp.f32 %v1849_v23 }
 0x864   :  { %v2273_v56 = vpop.eup %2272 }
 0x865   :  { %v1853_v57 = vmul.f32 %v2273_v56, %v1851_v9 }
 0x867   :  { %1854 = vst [vmem:[#allocation17] sm:$0xff] %v1853_v57 }
 0x868   :  { %2484 = shalt.err (!%p2481_p6)
}
 0x869   :  { %s2485_s15 = scalar_lea.hbm %s3041_s16, 128 }
 0x86a   :  { %p2486_p7 = scmp.ne.s32.totalorder %s3041_s16, %s2485_s15  ;;  %p2489_p8 = scmp.lt.u32.totalorder %s2485_s15, %s3041_s16 }
 0x86c   :  { %p2491_p9 = pnand %p2489_p8, %p2486_p7 }
 0x86e   :  { %2494 = shalt.err (!%p2491_p9)
}
 0x86f   :  { %1874 = dma.vmem_to_hbm [thread:$0]  %s1872_s25, 128, %s3041_s16, [#allocation18]  }
 0x870   :  { %2505 = dma.done.wait [#allocation4], 128  }
 0x871   :  { %2506 = vsyncadd [#allocation4], 4294967168 }
 0x872   :  { %2507 = dma.done.wait [#allocation18], 128  }
 0x873   :  { %2508 = vsyncadd [#allocation18], 4294967168 }
 0x874   :  { %1881 = vsyncpa [#allocation3], 1 }
 0x875   :  { %1882 = vsyncpa [#allocation6], 1 }
 0x876   :  { %1883 = vsyncpa [#allocation9], 1 }
 0x877   :  { %1884 = vsyncpa [#allocation12], 1 }
 0x878   :  { %1885 = vsyncpa [#allocation15], 1 }
 0x879   :  { %1886 = vsyncpa [#allocation4], 1 }
 0x87a   :  { %1887 = vsyncpa [#allocation18], 1 }

</bundles_post_ra>
